<compile_context>
chip_gen: v7x
topology: tpu7x:2x2x1
jax: 0.10.0
libtpu: 0.0.40
codegen_flags: <defaults>
</compile_context>

<pallas_src>
import functools

import jax
import jax.numpy as jnp
from jax.experimental import pallas as pl
from jax.experimental.pallas import tpu as pltpu

MATMUL_DTYPE = jnp.bfloat16   # MXU operand dtype; accumulation is always float32.
NUM_CLASSES = 10
OUT_PAD = 128                 # lane-dense padded output width


# ----------------------------- fused forward kernel -----------------------------

def _cnn_fused_kernel(x_ref,
                      w1_ref, b1_ref, rse1_ref, rso1_ref, cse1_ref, cso1_ref,
                      w2_ref, b2_ref, rse2_ref, rso2_ref, cse2_ref, cso2_ref,
                      wfc1_ref, bfc1_ref, wfc2_ref, bfc2_ref,
                      out_ref, *, bt):
    f32 = jnp.float32

    def mm(a, b):
        return jnp.dot(a, b, preferred_element_type=f32)

    # ---- per-sample conv/pool pipeline (unrolled over the batch tile) ----
    p2_list = []
    for b in range(bt):
        # conv1: 3x3, 1 -> 16.  Banded (unfold) formulation: one matmul per kernel row.
        # Activation layout: rows = output height (sublanes), lanes = (width, Cout).
        xb = x_ref[b].astype(MATMUL_DTYPE)                                  # [28, 28]
        y1 = (mm(xb[0:26, :], w1_ref[0:28, :]) +
              mm(xb[1:27, :], w1_ref[28:56, :]) +
              mm(xb[2:28, :], w1_ref[56:84, :]) + b1_ref[...])              # [26, 416]

        # 2x2 max-pool + ReLU via exact f32 0/1 selection matmuls (all in VMEM/regs).
        yh1 = jnp.maximum(mm(rse1_ref[...], y1), mm(rso1_ref[...], y1))     # [13, 416]
        p1 = jnp.maximum(mm(yh1, cse1_ref[...]), mm(yh1, cso1_ref[...]))    # [13, 208]
        p1 = jnp.maximum(p1, 0.0)

        # conv2: 3x3, 16 -> 32.
        p1b = p1.astype(MATMUL_DTYPE)
        y2 = (mm(p1b[0:11, :], w2_ref[0:208, :]) +
              mm(p1b[1:12, :], w2_ref[208:416, :]) +
              mm(p1b[2:13, :], w2_ref[416:624, :]) + b2_ref[...])           # [11, 352]

        yh2 = jnp.maximum(mm(rse2_ref[...], y2), mm(rso2_ref[...], y2))     # [5, 352]
        p2 = jnp.maximum(mm(yh2, cse2_ref[...]), mm(yh2, cso2_ref[...]))    # [5, 160]
        p2 = jnp.maximum(p2, 0.0)
        p2_list.append(p2)                                                  # f32 [5, 160]

    # ---- fc1 (+ReLU), batched across the tile.  torch's (C,H,W) flatten order is
    # folded into the pre-permuted fc1 weights; row r of each sample's p2 multiplies
    # the r-th 160-row block, so no in-kernel reshape/transpose is needed.
    acc = jnp.zeros((bt, 128), f32)
    for r in range(5):
        rows_r = jnp.concatenate([p2_list[b][r:r + 1, :] for b in range(bt)],
                                 axis=0)                                    # [bt, 160]
        acc = acc + mm(rows_r.astype(MATMUL_DTYPE),
                       wfc1_ref[r * 160:(r + 1) * 160, :])
    h1 = jnp.maximum(acc + bfc1_ref[...], 0.0)                              # [bt, 128]

    # ---- fc2 (output padded to 128 lanes for an unmasked, lane-dense store) ----
    out = mm(h1.astype(MATMUL_DTYPE), wfc2_ref[...]) + bfc2_ref[...]        # [bt, 128]
    out_ref[...] = out.astype(out_ref.dtype)


# --------------------------- one-time weight preparation ---------------------------

def _conv_band_matrix(w_oihw, in_w):
    """[Cout, Cin, KH, KW] -> [KH*in_w*Cin, (in_w-KW+1)*Cout] banded (unfold) matrix B.

    With activation A laid out as A[h, w*Cin + ci], the row block di of B satisfies
      sum_di  A[oh+di, :] @ B[di]  ==  conv_valid(A, w)[oh, ow*Cout + co].
    """
    Cout, Cin, KH, KW = w_oihw.shape
    out_w = in_w - KW + 1
    iw = jnp.arange(in_w)
    ow = jnp.arange(out_w)
    delta = iw[:, None] - ow[None, :]                      # [in_w, out_w]  (= dj)
    valid = (delta >= 0) & (delta < KW)
    dcl = jnp.clip(delta, 0, KW - 1)
    blocks = []
    for di in range(KH):
        wk = w_oihw[:, :, di, :]                           # [Cout, Cin, KW]
        g = wk[:, :, dcl] * valid[None, None, :, :]        # [Cout, Cin, in_w, out_w]
        g = jnp.transpose(g, (2, 1, 3, 0))                 # [in_w, Cin, out_w, Cout]
        blocks.append(g.reshape(in_w * Cin, out_w * Cout))
    return jnp.concatenate(blocks, axis=0)                 # [KH*in_w*Cin, out_w*Cout]


def _pool_row_select(in_rows, out_rows, offset):
    """[out_rows, in_rows] 0/1 matrix: S @ Y selects rows 2*r + offset of Y."""
    m = jnp.zeros((out_rows, in_rows), jnp.float32)
    return m.at[jnp.arange(out_rows), 2 * jnp.arange(out_rows) + offset].set(1.0)


def _pool_col_select(in_w, out_w, c, offset):
    """[in_w*c, out_w*c] 0/1 matrix: Y @ S selects lane groups (2*pw + offset)*c + co."""
    src_w = jnp.arange(in_w * c) // c
    src_c = jnp.arange(in_w * c) % c
    dst_w = jnp.arange(out_w * c) // c
    dst_c = jnp.arange(out_w * c) % c
    m = (src_w[:, None] == 2 * dst_w[None, :] + offset) & (src_c[:, None] == dst_c[None, :])
    return m.astype(jnp.float32)


def prepare_params(params, matmul_dtype=MATMUL_DTYPE):
    """One-time transform of PyTorch-layout params into kernel-resident matrices."""
    f32 = jnp.float32
    w1big = _conv_band_matrix(params["w1"].astype(f32), in_w=28)    # [84, 416]
    w2big = _conv_band_matrix(params["w2"].astype(f32), in_w=13)    # [624, 352]
    b1row = jnp.tile(params["b1"].astype(f32), 26).reshape(1, 26 * 16)
    b2row = jnp.tile(params["b2"].astype(f32), 11).reshape(1, 11 * 32)

    # fc1: fold torch's (C, H, W) flatten order into a row permutation, so the kernel's
    # native (H, W, C)-packed activation multiplies it directly.
    j = jnp.arange(32 * 5 * 5)
    h, rem = j // (5 * 32), j % (5 * 32)
    w, c = rem // 32, rem % 32
    src = c * 25 + h * 5 + w
    wfc1p = params["wfc1"][src, :]                                  # [800, 128]

    # fc2: zero-pad output columns 10 -> 128 for a lane-dense (unmasked) output store.
    wfc2p = jnp.zeros((128, OUT_PAD), f32).at[:, :NUM_CLASSES].set(params["wfc2"].astype(f32))
    bfc2p = jnp.zeros((1, OUT_PAD), f32).at[0, :NUM_CLASSES].set(params["bfc2"].astype(f32))

    return {
        "w1big": w1big.astype(matmul_dtype),
        "b1row": b1row,
        "rse1": _pool_row_select(26, 13, 0), "rso1": _pool_row_select(26, 13, 1),
        "cse1": _pool_col_select(26, 13, 16, 0), "cso1": _pool_col_select(26, 13, 16, 1),
        "w2big": w2big.astype(matmul_dtype),
        "b2row": b2row,
        "rse2": _pool_row_select(11, 5, 0), "rso2": _pool_row_select(11, 5, 1),
        "cse2": _pool_col_select(11, 5, 32, 0), "cso2": _pool_col_select(11, 5, 32, 1),
        "wfc1": wfc1p.astype(matmul_dtype),
        "bfc1": params["bfc1"].astype(f32).reshape(1, 128),
        "wfc2": wfc2p.astype(matmul_dtype),
        "bfc2": bfc2p,
    }


# ----------------------------------- wrapper -----------------------------------

_CONST_ORDER = ("w1big", "b1row", "rse1", "rso1", "cse1", "cso1",
                "w2big", "b2row", "rse2", "rso2", "cse2", "cso2",
                "wfc1", "bfc1", "wfc2", "bfc2")


def cnn_forward(prep, x_nchw, batch_tile=8):
    # x_nchw: [B, 1, 28, 28] float32 (PyTorch layout at the boundary).
    B = x_nchw.shape[0]
    assert x_nchw.shape[1:] == (1, 28, 28)
    bt = max(1, min(batch_tile, B))
    b_pad = ((B + bt - 1) // bt) * bt

    x = x_nchw.reshape(B, 28, 28).astype(jnp.float32)
    if b_pad != B:
        x = jnp.concatenate([x, jnp.zeros((b_pad - B, 28, 28), jnp.float32)], axis=0)

    in_specs = [pl.BlockSpec((bt, 28, 28), lambda i: (i, 0, 0))]
    in_specs += [pl.BlockSpec(prep[k].shape, lambda i: (0, 0)) for k in _CONST_ORDER]

    out = pl.pallas_call(
        functools.partial(_cnn_fused_kernel, bt=bt),
        out_shape=jax.ShapeDtypeStruct((b_pad, OUT_PAD), jnp.float32),
        grid=(b_pad // bt,),
        in_specs=in_specs,
        out_specs=pl.BlockSpec((bt, OUT_PAD), lambda i: (i, 0)),
        compiler_params=pltpu.CompilerParams(
            dimension_semantics=("parallel",),
            vmem_limit_bytes=32 * 1024 * 1024),
    )(x, *[prep[k] for k in _CONST_ORDER])
    return out[:B, :NUM_CLASSES]


# ------------------------------ init & pure-JAX reference ------------------------------

def init_params(key):
    # Deterministic synthetic init (PyTorch-like uniform fan-in scaling).
    ks = jax.random.split(key, 8)

    def unif(k, shape, fan_in):
        bound = 1.0 / jnp.sqrt(jnp.float32(fan_in))
        return jax.random.uniform(k, shape, jnp.float32, -bound, bound)

    return {
        "w1": unif(ks[0], (16, 1, 3, 3), 1 * 3 * 3),         # Conv2d(1, 16, 3)
        "b1": unif(ks[1], (16,), 1 * 3 * 3),
        "w2": unif(ks[2], (32, 16, 3, 3), 16 * 3 * 3),       # Conv2d(16, 32, 3)
        "b2": unif(ks[3], (32,), 16 * 3 * 3),
        "wfc1": unif(ks[4], (32 * 5 * 5, 128), 32 * 5 * 5),  # Linear(800,128).weight.T
        "bfc1": unif(ks[5], (128,), 32 * 5 * 5),
        "wfc2": unif(ks[6], (128, 10), 128),                 # Linear(128,10).weight.T
        "bfc2": unif(ks[7], (10,), 128),
    }


def _pool_relu_ref(y):
    B, C, H, W = y.shape
    PH, PW = H // 2, W // 2
    y = y[:, :, :2 * PH, :2 * PW]
    m = jnp.maximum(jnp.maximum(y[:, :, 0::2, 0::2], y[:, :, 0::2, 1::2]),
                    jnp.maximum(y[:, :, 1::2, 0::2], y[:, :, 1::2, 1::2]))
    return jnp.maximum(m, 0.0)


def reference_forward(params, x_nchw):
    dn = ("NCHW", "OIHW", "NCHW")
    y = jax.lax.conv_general_dilated(x_nchw, params["w1"], (1, 1), "VALID",
                                     dimension_numbers=dn)
    y = _pool_relu_ref(y + params["b1"][None, :, None, None])
    y = jax.lax.conv_general_dilated(y, params["w2"], (1, 1), "VALID",
                                     dimension_numbers=dn)
    y = _pool_relu_ref(y + params["b2"][None, :, None, None])
    y = y.reshape(y.shape[0], -1)                          # torch flatten: (C, H, W)
    y = jnp.maximum(y @ params["wfc1"] + params["bfc1"], 0.0)
    return y @ params["wfc2"] + params["bfc2"]


if __name__ == "__main__":
    key = jax.random.PRNGKey(0)
    k_params, k_x = jax.random.split(key)
    params = init_params(k_params)
    # 28x28 input is required so that 32*5*5 matches fc1 (as in the original module).
    x = jax.random.normal(k_x, (2, 1, 28, 28), jnp.float32)

    prep = prepare_params(params)
    fwd = jax.jit(cnn_forward)
    out = jax.block_until_ready(fwd(prep, x))

    assert out.shape == (2, 10) and out.dtype == jnp.float32

    ref = reference_forward(params, x)
    max_err = float(jnp.max(jnp.abs(out - ref)))
    # bf16 matmul operands (f32 accumulation) -> small drift vs. the f32 reference.
    assert max_err < 5e-2, f"max abs err vs reference: {max_err}"

    print("KERNEL_OK")
</pallas_src>

<mosaic_0001>
module attributes {stable_mosaic.version = 11 : i64} {
  func.func @_cnn_fused_kernel(%arg0: i32, %arg1: memref<2x28x28xf32, #tpu.memory_space<vmem>>, %arg2: memref<84x416xbf16, #tpu.memory_space<vmem>>, %arg3: memref<1x416xf32, #tpu.memory_space<vmem>>, %arg4: memref<13x26xf32, #tpu.memory_space<vmem>>, %arg5: memref<13x26xf32, #tpu.memory_space<vmem>>, %arg6: memref<416x208xf32, #tpu.memory_space<vmem>>, %arg7: memref<416x208xf32, #tpu.memory_space<vmem>>, %arg8: memref<624x352xbf16, #tpu.memory_space<vmem>>, %arg9: memref<1x352xf32, #tpu.memory_space<vmem>>, %arg10: memref<5x11xf32, #tpu.memory_space<vmem>>, %arg11: memref<5x11xf32, #tpu.memory_space<vmem>>, %arg12: memref<352x160xf32, #tpu.memory_space<vmem>>, %arg13: memref<352x160xf32, #tpu.memory_space<vmem>>, %arg14: memref<800x128xbf16, #tpu.memory_space<vmem>>, %arg15: memref<1x128xf32, #tpu.memory_space<vmem>>, %arg16: memref<128x128xbf16, #tpu.memory_space<vmem>>, %arg17: memref<1x128xf32, #tpu.memory_space<vmem>>, %arg18: memref<2x128xf32, #tpu.memory_space<vmem>>) attributes {dimension_semantics = [#tpu.dimension_semantics<parallel>], iteration_bounds = array<i64: 1>, scalar_prefetch = 0 : i64, scratch_operands = 0 : i64, tpu.core_type = #tpu.core_type<tc>, window_params = [{transform_indices = @transform_0, window_bounds = array<i64: 2, 28, 28>}, {pipeline_mode = #tpu.pipeline_mode<synchronous>, transform_indices = @transform_1, window_bounds = array<i64: 84, 416>}, {pipeline_mode = #tpu.pipeline_mode<synchronous>, transform_indices = @transform_2, window_bounds = array<i64: 1, 416>}, {pipeline_mode = #tpu.pipeline_mode<synchronous>, transform_indices = @transform_3, window_bounds = array<i64: 13, 26>}, {pipeline_mode = #tpu.pipeline_mode<synchronous>, transform_indices = @transform_4, window_bounds = array<i64: 13, 26>}, {pipeline_mode = #tpu.pipeline_mode<synchronous>, transform_indices = @transform_5, window_bounds = array<i64: 416, 208>}, {pipeline_mode = #tpu.pipeline_mode<synchronous>, transform_indices = @transform_6, window_bounds = array<i64: 416, 208>}, {pipeline_mode = #tpu.pipeline_mode<synchronous>, transform_indices = @transform_7, window_bounds = array<i64: 624, 352>}, {pipeline_mode = #tpu.pipeline_mode<synchronous>, transform_indices = @transform_8, window_bounds = array<i64: 1, 352>}, {pipeline_mode = #tpu.pipeline_mode<synchronous>, transform_indices = @transform_9, window_bounds = array<i64: 5, 11>}, {pipeline_mode = #tpu.pipeline_mode<synchronous>, transform_indices = @transform_10, window_bounds = array<i64: 5, 11>}, {pipeline_mode = #tpu.pipeline_mode<synchronous>, transform_indices = @transform_11, window_bounds = array<i64: 352, 160>}, {pipeline_mode = #tpu.pipeline_mode<synchronous>, transform_indices = @transform_12, window_bounds = array<i64: 352, 160>}, {pipeline_mode = #tpu.pipeline_mode<synchronous>, transform_indices = @transform_13, window_bounds = array<i64: 800, 128>}, {pipeline_mode = #tpu.pipeline_mode<synchronous>, transform_indices = @transform_14, window_bounds = array<i64: 1, 128>}, {pipeline_mode = #tpu.pipeline_mode<synchronous>, transform_indices = @transform_15, window_bounds = array<i64: 128, 128>}, {pipeline_mode = #tpu.pipeline_mode<synchronous>, transform_indices = @transform_16, window_bounds = array<i64: 1, 128>}, {transform_indices = @transform_17, window_bounds = array<i64: 2, 128>}]} {
    %c0 = arith.constant 0 : index
    %c0_0 = arith.constant 0 : index
    %c0_1 = arith.constant 0 : index
    %0 = vector.load %arg1[%c0, %c0_0, %c0_1] : memref<2x28x28xf32, #tpu.memory_space<vmem>>, vector<1x28x28xf32>
    %1 = vector.shape_cast %0 : vector<1x28x28xf32> to vector<28x28xf32>
    %2 = arith.truncf %1 : vector<28x28xf32> to vector<28x28xbf16>
    %3 = vector.extract_strided_slice %2 {offsets = [0, 0], sizes = [26, 28], strides = [1, 1]} : vector<28x28xbf16> to vector<26x28xbf16>
    %c0_2 = arith.constant 0 : index
    %c0_3 = arith.constant 0 : index
    %4 = vector.load %arg2[%c0_2, %c0_3] : memref<84x416xbf16, #tpu.memory_space<vmem>>, vector<28x416xbf16>
    %cst = arith.constant dense<0.000000e+00> : vector<26x416xf32>
    %5 = tpu.matmul %3, %4, %cst {dimension_numbers = #tpu.dot_dimension_numbers<[1], [0], [0], [1], [0, 0, 1, 1], [], []>} : vector<26x28xbf16>, vector<28x416xbf16>, vector<26x416xf32> -> vector<26x416xf32>
    %6 = vector.extract_strided_slice %2 {offsets = [1, 0], sizes = [26, 28], strides = [1, 1]} : vector<28x28xbf16> to vector<26x28xbf16>
    %c28 = arith.constant 28 : index
    %c0_4 = arith.constant 0 : index
    %7 = vector.load %arg2[%c28, %c0_4] : memref<84x416xbf16, #tpu.memory_space<vmem>>, vector<28x416xbf16>
    %cst_5 = arith.constant dense<0.000000e+00> : vector<26x416xf32>
    %8 = tpu.matmul %6, %7, %cst_5 {dimension_numbers = #tpu.dot_dimension_numbers<[1], [0], [0], [1], [0, 0, 1, 1], [], []>} : vector<26x28xbf16>, vector<28x416xbf16>, vector<26x416xf32> -> vector<26x416xf32>
    %9 = arith.addf %5, %8 : vector<26x416xf32>
    %10 = vector.extract_strided_slice %2 {offsets = [2, 0], sizes = [26, 28], strides = [1, 1]} : vector<28x28xbf16> to vector<26x28xbf16>
    %c56 = arith.constant 56 : index
    %c0_6 = arith.constant 0 : index
    %11 = vector.load %arg2[%c56, %c0_6] : memref<84x416xbf16, #tpu.memory_space<vmem>>, vector<28x416xbf16>
    %cst_7 = arith.constant dense<0.000000e+00> : vector<26x416xf32>
    %12 = tpu.matmul %10, %11, %cst_7 {dimension_numbers = #tpu.dot_dimension_numbers<[1], [0], [0], [1], [0, 0, 1, 1], [], []>} : vector<26x28xbf16>, vector<28x416xbf16>, vector<26x416xf32> -> vector<26x416xf32>
    %13 = arith.addf %9, %12 : vector<26x416xf32>
    %c0_8 = arith.constant 0 : index
    %c0_9 = arith.constant 0 : index
    %14 = vector.load %arg3[%c0_8, %c0_9] : memref<1x416xf32, #tpu.memory_space<vmem>>, vector<1x416xf32>
    %15 = vector.broadcast %14 : vector<1x416xf32> to vector<26x416xf32>
    %16 = arith.addf %13, %15 : vector<26x416xf32>
    %c0_10 = arith.constant 0 : index
    %c0_11 = arith.constant 0 : index
    %17 = vector.load %arg4[%c0_10, %c0_11] : memref<13x26xf32, #tpu.memory_space<vmem>>, vector<13x26xf32>
    %cst_12 = arith.constant dense<0.000000e+00> : vector<13x416xf32>
    %18 = tpu.matmul %17, %16, %cst_12 {dimension_numbers = #tpu.dot_dimension_numbers<[1], [0], [0], [1], [0, 0, 1, 1], [], []>} : vector<13x26xf32>, vector<26x416xf32>, vector<13x416xf32> -> vector<13x416xf32>
    %c0_13 = arith.constant 0 : index
    %c0_14 = arith.constant 0 : index
    %19 = vector.load %arg5[%c0_13, %c0_14] : memref<13x26xf32, #tpu.memory_space<vmem>>, vector<13x26xf32>
    %cst_15 = arith.constant dense<0.000000e+00> : vector<13x416xf32>
    %20 = tpu.matmul %19, %16, %cst_15 {dimension_numbers = #tpu.dot_dimension_numbers<[1], [0], [0], [1], [0, 0, 1, 1], [], []>} : vector<13x26xf32>, vector<26x416xf32>, vector<13x416xf32> -> vector<13x416xf32>
    %21 = arith.maximumf %18, %20 : vector<13x416xf32>
    %c0_16 = arith.constant 0 : index
    %c0_17 = arith.constant 0 : index
    %22 = vector.load %arg6[%c0_16, %c0_17] : memref<416x208xf32, #tpu.memory_space<vmem>>, vector<416x208xf32>
    %cst_18 = arith.constant dense<0.000000e+00> : vector<13x208xf32>
    %23 = tpu.matmul %21, %22, %cst_18 {dimension_numbers = #tpu.dot_dimension_numbers<[1], [0], [0], [1], [0, 0, 1, 1], [], []>} : vector<13x416xf32>, vector<416x208xf32>, vector<13x208xf32> -> vector<13x208xf32>
    %c0_19 = arith.constant 0 : index
    %c0_20 = arith.constant 0 : index
    %24 = vector.load %arg7[%c0_19, %c0_20] : memref<416x208xf32, #tpu.memory_space<vmem>>, vector<416x208xf32>
    %cst_21 = arith.constant dense<0.000000e+00> : vector<13x208xf32>
    %25 = tpu.matmul %21, %24, %cst_21 {dimension_numbers = #tpu.dot_dimension_numbers<[1], [0], [0], [1], [0, 0, 1, 1], [], []>} : vector<13x416xf32>, vector<416x208xf32>, vector<13x208xf32> -> vector<13x208xf32>
    %26 = arith.maximumf %23, %25 : vector<13x208xf32>
    %cst_22 = arith.constant 0.000000e+00 : f32
    %27 = vector.broadcast %cst_22 : f32 to vector<13x208xf32>
    %28 = arith.maximumf %26, %27 : vector<13x208xf32>
    %29 = arith.truncf %28 : vector<13x208xf32> to vector<13x208xbf16>
    %30 = vector.extract_strided_slice %29 {offsets = [0, 0], sizes = [11, 208], strides = [1, 1]} : vector<13x208xbf16> to vector<11x208xbf16>
    %c0_23 = arith.constant 0 : index
    %c0_24 = arith.constant 0 : index
    %31 = vector.load %arg8[%c0_23, %c0_24] : memref<624x352xbf16, #tpu.memory_space<vmem>>, vector<208x352xbf16>
    %cst_25 = arith.constant dense<0.000000e+00> : vector<11x352xf32>
    %32 = tpu.matmul %30, %31, %cst_25 {dimension_numbers = #tpu.dot_dimension_numbers<[1], [0], [0], [1], [0, 0, 1, 1], [], []>} : vector<11x208xbf16>, vector<208x352xbf16>, vector<11x352xf32> -> vector<11x352xf32>
    %33 = vector.extract_strided_slice %29 {offsets = [1, 0], sizes = [11, 208], strides = [1, 1]} : vector<13x208xbf16> to vector<11x208xbf16>
    %c208 = arith.constant 208 : index
    %c0_26 = arith.constant 0 : index
    %34 = vector.load %arg8[%c208, %c0_26] : memref<624x352xbf16, #tpu.memory_space<vmem>>, vector<208x352xbf16>
    %cst_27 = arith.constant dense<0.000000e+00> : vector<11x352xf32>
    %35 = tpu.matmul %33, %34, %cst_27 {dimension_numbers = #tpu.dot_dimension_numbers<[1], [0], [0], [1], [0, 0, 1, 1], [], []>} : vector<11x208xbf16>, vector<208x352xbf16>, vector<11x352xf32> -> vector<11x352xf32>
    %36 = arith.addf %32, %35 : vector<11x352xf32>
    %37 = vector.extract_strided_slice %29 {offsets = [2, 0], sizes = [11, 208], strides = [1, 1]} : vector<13x208xbf16> to vector<11x208xbf16>
    %c416 = arith.constant 416 : index
    %c0_28 = arith.constant 0 : index
    %38 = vector.load %arg8[%c416, %c0_28] : memref<624x352xbf16, #tpu.memory_space<vmem>>, vector<208x352xbf16>
    %cst_29 = arith.constant dense<0.000000e+00> : vector<11x352xf32>
    %39 = tpu.matmul %37, %38, %cst_29 {dimension_numbers = #tpu.dot_dimension_numbers<[1], [0], [0], [1], [0, 0, 1, 1], [], []>} : vector<11x208xbf16>, vector<208x352xbf16>, vector<11x352xf32> -> vector<11x352xf32>
    %40 = arith.addf %36, %39 : vector<11x352xf32>
    %c0_30 = arith.constant 0 : index
    %c0_31 = arith.constant 0 : index
    %41 = vector.load %arg9[%c0_30, %c0_31] : memref<1x352xf32, #tpu.memory_space<vmem>>, vector<1x352xf32>
    %42 = vector.broadcast %41 : vector<1x352xf32> to vector<11x352xf32>
    %43 = arith.addf %40, %42 : vector<11x352xf32>
    %c0_32 = arith.constant 0 : index
    %c0_33 = arith.constant 0 : index
    %44 = vector.load %arg10[%c0_32, %c0_33] : memref<5x11xf32, #tpu.memory_space<vmem>>, vector<5x11xf32>
    %cst_34 = arith.constant dense<0.000000e+00> : vector<5x352xf32>
    %45 = tpu.matmul %44, %43, %cst_34 {dimension_numbers = #tpu.dot_dimension_numbers<[1], [0], [0], [1], [0, 0, 1, 1], [], []>} : vector<5x11xf32>, vector<11x352xf32>, vector<5x352xf32> -> vector<5x352xf32>
    %c0_35 = arith.constant 0 : index
    %c0_36 = arith.constant 0 : index
    %46 = vector.load %arg11[%c0_35, %c0_36] : memref<5x11xf32, #tpu.memory_space<vmem>>, vector<5x11xf32>
    %cst_37 = arith.constant dense<0.000000e+00> : vector<5x352xf32>
    %47 = tpu.matmul %46, %43, %cst_37 {dimension_numbers = #tpu.dot_dimension_numbers<[1], [0], [0], [1], [0, 0, 1, 1], [], []>} : vector<5x11xf32>, vector<11x352xf32>, vector<5x352xf32> -> vector<5x352xf32>
    %48 = arith.maximumf %45, %47 : vector<5x352xf32>
    %c0_38 = arith.constant 0 : index
    %c0_39 = arith.constant 0 : index
    %49 = vector.load %arg12[%c0_38, %c0_39] : memref<352x160xf32, #tpu.memory_space<vmem>>, vector<352x160xf32>
    %cst_40 = arith.constant dense<0.000000e+00> : vector<5x160xf32>
    %50 = tpu.matmul %48, %49, %cst_40 {dimension_numbers = #tpu.dot_dimension_numbers<[1], [0], [0], [1], [0, 0, 1, 1], [], []>} : vector<5x352xf32>, vector<352x160xf32>, vector<5x160xf32> -> vector<5x160xf32>
    %c0_41 = arith.constant 0 : index
    %c0_42 = arith.constant 0 : index
    %51 = vector.load %arg13[%c0_41, %c0_42] : memref<352x160xf32, #tpu.memory_space<vmem>>, vector<352x160xf32>
    %cst_43 = arith.constant dense<0.000000e+00> : vector<5x160xf32>
    %52 = tpu.matmul %48, %51, %cst_43 {dimension_numbers = #tpu.dot_dimension_numbers<[1], [0], [0], [1], [0, 0, 1, 1], [], []>} : vector<5x352xf32>, vector<352x160xf32>, vector<5x160xf32> -> vector<5x160xf32>
    %53 = arith.maximumf %50, %52 : vector<5x160xf32>
    %cst_44 = arith.constant 0.000000e+00 : f32
    %54 = vector.broadcast %cst_44 : f32 to vector<5x160xf32>
    %55 = arith.maximumf %53, %54 : vector<5x160xf32>
    %c1 = arith.constant 1 : index
    %c0_45 = arith.constant 0 : index
    %c0_46 = arith.constant 0 : index
    %56 = vector.load %arg1[%c1, %c0_45, %c0_46] : memref<2x28x28xf32, #tpu.memory_space<vmem>>, vector<1x28x28xf32>
    %57 = vector.shape_cast %56 : vector<1x28x28xf32> to vector<28x28xf32>
    %58 = arith.truncf %57 : vector<28x28xf32> to vector<28x28xbf16>
    %59 = vector.extract_strided_slice %58 {offsets = [0, 0], sizes = [26, 28], strides = [1, 1]} : vector<28x28xbf16> to vector<26x28xbf16>
    %c0_47 = arith.constant 0 : index
    %c0_48 = arith.constant 0 : index
    %60 = vector.load %arg2[%c0_47, %c0_48] : memref<84x416xbf16, #tpu.memory_space<vmem>>, vector<28x416xbf16>
    %cst_49 = arith.constant dense<0.000000e+00> : vector<26x416xf32>
    %61 = tpu.matmul %59, %60, %cst_49 {dimension_numbers = #tpu.dot_dimension_numbers<[1], [0], [0], [1], [0, 0, 1, 1], [], []>} : vector<26x28xbf16>, vector<28x416xbf16>, vector<26x416xf32> -> vector<26x416xf32>
    %62 = vector.extract_strided_slice %58 {offsets = [1, 0], sizes = [26, 28], strides = [1, 1]} : vector<28x28xbf16> to vector<26x28xbf16>
    %c28_50 = arith.constant 28 : index
    %c0_51 = arith.constant 0 : index
    %63 = vector.load %arg2[%c28_50, %c0_51] : memref<84x416xbf16, #tpu.memory_space<vmem>>, vector<28x416xbf16>
    %cst_52 = arith.constant dense<0.000000e+00> : vector<26x416xf32>
    %64 = tpu.matmul %62, %63, %cst_52 {dimension_numbers = #tpu.dot_dimension_numbers<[1], [0], [0], [1], [0, 0, 1, 1], [], []>} : vector<26x28xbf16>, vector<28x416xbf16>, vector<26x416xf32> -> vector<26x416xf32>
    %65 = arith.addf %61, %64 : vector<26x416xf32>
    %66 = vector.extract_strided_slice %58 {offsets = [2, 0], sizes = [26, 28], strides = [1, 1]} : vector<28x28xbf16> to vector<26x28xbf16>
    %c56_53 = arith.constant 56 : index
    %c0_54 = arith.constant 0 : index
    %67 = vector.load %arg2[%c56_53, %c0_54] : memref<84x416xbf16, #tpu.memory_space<vmem>>, vector<28x416xbf16>
    %cst_55 = arith.constant dense<0.000000e+00> : vector<26x416xf32>
    %68 = tpu.matmul %66, %67, %cst_55 {dimension_numbers = #tpu.dot_dimension_numbers<[1], [0], [0], [1], [0, 0, 1, 1], [], []>} : vector<26x28xbf16>, vector<28x416xbf16>, vector<26x416xf32> -> vector<26x416xf32>
    %69 = arith.addf %65, %68 : vector<26x416xf32>
    %c0_56 = arith.constant 0 : index
    %c0_57 = arith.constant 0 : index
    %70 = vector.load %arg3[%c0_56, %c0_57] : memref<1x416xf32, #tpu.memory_space<vmem>>, vector<1x416xf32>
    %71 = vector.broadcast %70 : vector<1x416xf32> to vector<26x416xf32>
    %72 = arith.addf %69, %71 : vector<26x416xf32>
    %c0_58 = arith.constant 0 : index
    %c0_59 = arith.constant 0 : index
    %73 = vector.load %arg4[%c0_58, %c0_59] : memref<13x26xf32, #tpu.memory_space<vmem>>, vector<13x26xf32>
    %cst_60 = arith.constant dense<0.000000e+00> : vector<13x416xf32>
    %74 = tpu.matmul %73, %72, %cst_60 {dimension_numbers = #tpu.dot_dimension_numbers<[1], [0], [0], [1], [0, 0, 1, 1], [], []>} : vector<13x26xf32>, vector<26x416xf32>, vector<13x416xf32> -> vector<13x416xf32>
    %c0_61 = arith.constant 0 : index
    %c0_62 = arith.constant 0 : index
    %75 = vector.load %arg5[%c0_61, %c0_62] : memref<13x26xf32, #tpu.memory_space<vmem>>, vector<13x26xf32>
    %cst_63 = arith.constant dense<0.000000e+00> : vector<13x416xf32>
    %76 = tpu.matmul %75, %72, %cst_63 {dimension_numbers = #tpu.dot_dimension_numbers<[1], [0], [0], [1], [0, 0, 1, 1], [], []>} : vector<13x26xf32>, vector<26x416xf32>, vector<13x416xf32> -> vector<13x416xf32>
    %77 = arith.maximumf %74, %76 : vector<13x416xf32>
    %c0_64 = arith.constant 0 : index
    %c0_65 = arith.constant 0 : index
    %78 = vector.load %arg6[%c0_64, %c0_65] : memref<416x208xf32, #tpu.memory_space<vmem>>, vector<416x208xf32>
    %cst_66 = arith.constant dense<0.000000e+00> : vector<13x208xf32>
    %79 = tpu.matmul %77, %78, %cst_66 {dimension_numbers = #tpu.dot_dimension_numbers<[1], [0], [0], [1], [0, 0, 1, 1], [], []>} : vector<13x416xf32>, vector<416x208xf32>, vector<13x208xf32> -> vector<13x208xf32>
    %c0_67 = arith.constant 0 : index
    %c0_68 = arith.constant 0 : index
    %80 = vector.load %arg7[%c0_67, %c0_68] : memref<416x208xf32, #tpu.memory_space<vmem>>, vector<416x208xf32>
    %cst_69 = arith.constant dense<0.000000e+00> : vector<13x208xf32>
    %81 = tpu.matmul %77, %80, %cst_69 {dimension_numbers = #tpu.dot_dimension_numbers<[1], [0], [0], [1], [0, 0, 1, 1], [], []>} : vector<13x416xf32>, vector<416x208xf32>, vector<13x208xf32> -> vector<13x208xf32>
    %82 = arith.maximumf %79, %81 : vector<13x208xf32>
    %cst_70 = arith.constant 0.000000e+00 : f32
    %83 = vector.broadcast %cst_70 : f32 to vector<13x208xf32>
    %84 = arith.maximumf %82, %83 : vector<13x208xf32>
    %85 = arith.truncf %84 : vector<13x208xf32> to vector<13x208xbf16>
    %86 = vector.extract_strided_slice %85 {offsets = [0, 0], sizes = [11, 208], strides = [1, 1]} : vector<13x208xbf16> to vector<11x208xbf16>
    %c0_71 = arith.constant 0 : index
    %c0_72 = arith.constant 0 : index
    %87 = vector.load %arg8[%c0_71, %c0_72] : memref<624x352xbf16, #tpu.memory_space<vmem>>, vector<208x352xbf16>
    %cst_73 = arith.constant dense<0.000000e+00> : vector<11x352xf32>
    %88 = tpu.matmul %86, %87, %cst_73 {dimension_numbers = #tpu.dot_dimension_numbers<[1], [0], [0], [1], [0, 0, 1, 1], [], []>} : vector<11x208xbf16>, vector<208x352xbf16>, vector<11x352xf32> -> vector<11x352xf32>
    %89 = vector.extract_strided_slice %85 {offsets = [1, 0], sizes = [11, 208], strides = [1, 1]} : vector<13x208xbf16> to vector<11x208xbf16>
    %c208_74 = arith.constant 208 : index
    %c0_75 = arith.constant 0 : index
    %90 = vector.load %arg8[%c208_74, %c0_75] : memref<624x352xbf16, #tpu.memory_space<vmem>>, vector<208x352xbf16>
    %cst_76 = arith.constant dense<0.000000e+00> : vector<11x352xf32>
    %91 = tpu.matmul %89, %90, %cst_76 {dimension_numbers = #tpu.dot_dimension_numbers<[1], [0], [0], [1], [0, 0, 1, 1], [], []>} : vector<11x208xbf16>, vector<208x352xbf16>, vector<11x352xf32> -> vector<11x352xf32>
    %92 = arith.addf %88, %91 : vector<11x352xf32>
    %93 = vector.extract_strided_slice %85 {offsets = [2, 0], sizes = [11, 208], strides = [1, 1]} : vector<13x208xbf16> to vector<11x208xbf16>
    %c416_77 = arith.constant 416 : index
    %c0_78 = arith.constant 0 : index
    %94 = vector.load %arg8[%c416_77, %c0_78] : memref<624x352xbf16, #tpu.memory_space<vmem>>, vector<208x352xbf16>
    %cst_79 = arith.constant dense<0.000000e+00> : vector<11x352xf32>
    %95 = tpu.matmul %93, %94, %cst_79 {dimension_numbers = #tpu.dot_dimension_numbers<[1], [0], [0], [1], [0, 0, 1, 1], [], []>} : vector<11x208xbf16>, vector<208x352xbf16>, vector<11x352xf32> -> vector<11x352xf32>
    %96 = arith.addf %92, %95 : vector<11x352xf32>
    %c0_80 = arith.constant 0 : index
    %c0_81 = arith.constant 0 : index
    %97 = vector.load %arg9[%c0_80, %c0_81] : memref<1x352xf32, #tpu.memory_space<vmem>>, vector<1x352xf32>
    %98 = vector.broadcast %97 : vector<1x352xf32> to vector<11x352xf32>
    %99 = arith.addf %96, %98 : vector<11x352xf32>
    %c0_82 = arith.constant 0 : index
    %c0_83 = arith.constant 0 : index
    %100 = vector.load %arg10[%c0_82, %c0_83] : memref<5x11xf32, #tpu.memory_space<vmem>>, vector<5x11xf32>
    %cst_84 = arith.constant dense<0.000000e+00> : vector<5x352xf32>
    %101 = tpu.matmul %100, %99, %cst_84 {dimension_numbers = #tpu.dot_dimension_numbers<[1], [0], [0], [1], [0, 0, 1, 1], [], []>} : vector<5x11xf32>, vector<11x352xf32>, vector<5x352xf32> -> vector<5x352xf32>
    %c0_85 = arith.constant 0 : index
    %c0_86 = arith.constant 0 : index
    %102 = vector.load %arg11[%c0_85, %c0_86] : memref<5x11xf32, #tpu.memory_space<vmem>>, vector<5x11xf32>
    %cst_87 = arith.constant dense<0.000000e+00> : vector<5x352xf32>
    %103 = tpu.matmul %102, %99, %cst_87 {dimension_numbers = #tpu.dot_dimension_numbers<[1], [0], [0], [1], [0, 0, 1, 1], [], []>} : vector<5x11xf32>, vector<11x352xf32>, vector<5x352xf32> -> vector<5x352xf32>
    %104 = arith.maximumf %101, %103 : vector<5x352xf32>
    %c0_88 = arith.constant 0 : index
    %c0_89 = arith.constant 0 : index
    %105 = vector.load %arg12[%c0_88, %c0_89] : memref<352x160xf32, #tpu.memory_space<vmem>>, vector<352x160xf32>
    %cst_90 = arith.constant dense<0.000000e+00> : vector<5x160xf32>
    %106 = tpu.matmul %104, %105, %cst_90 {dimension_numbers = #tpu.dot_dimension_numbers<[1], [0], [0], [1], [0, 0, 1, 1], [], []>} : vector<5x352xf32>, vector<352x160xf32>, vector<5x160xf32> -> vector<5x160xf32>
    %c0_91 = arith.constant 0 : index
    %c0_92 = arith.constant 0 : index
    %107 = vector.load %arg13[%c0_91, %c0_92] : memref<352x160xf32, #tpu.memory_space<vmem>>, vector<352x160xf32>
    %cst_93 = arith.constant dense<0.000000e+00> : vector<5x160xf32>
    %108 = tpu.matmul %104, %107, %cst_93 {dimension_numbers = #tpu.dot_dimension_numbers<[1], [0], [0], [1], [0, 0, 1, 1], [], []>} : vector<5x352xf32>, vector<352x160xf32>, vector<5x160xf32> -> vector<5x160xf32>
    %109 = arith.maximumf %106, %108 : vector<5x160xf32>
    %cst_94 = arith.constant 0.000000e+00 : f32
    %110 = vector.broadcast %cst_94 : f32 to vector<5x160xf32>
    %111 = arith.maximumf %109, %110 : vector<5x160xf32>
    %cst_95 = arith.constant 0.000000e+00 : f32
    %112 = vector.broadcast %cst_95 : f32 to vector<2x128xf32>
    %113 = vector.extract_strided_slice %55 {offsets = [0, 0], sizes = [1, 160], strides = [1, 1]} : vector<5x160xf32> to vector<1x160xf32>
    %114 = vector.extract_strided_slice %111 {offsets = [0, 0], sizes = [1, 160], strides = [1, 1]} : vector<5x160xf32> to vector<1x160xf32>
    %115 = tpu.concatenate %113, %114 in 0 : vector<1x160xf32>, vector<1x160xf32> -> vector<2x160xf32>
    %116 = arith.truncf %115 : vector<2x160xf32> to vector<2x160xbf16>
    %c0_96 = arith.constant 0 : index
    %c0_97 = arith.constant 0 : index
    %117 = vector.load %arg14[%c0_96, %c0_97] : memref<800x128xbf16, #tpu.memory_space<vmem>>, vector<160x128xbf16>
    %cst_98 = arith.constant dense<0.000000e+00> : vector<2x128xf32>
    %118 = tpu.matmul %116, %117, %cst_98 {dimension_numbers = #tpu.dot_dimension_numbers<[1], [0], [0], [1], [0, 0, 1, 1], [], []>} : vector<2x160xbf16>, vector<160x128xbf16>, vector<2x128xf32> -> vector<2x128xf32>
    %119 = arith.addf %112, %118 : vector<2x128xf32>
    %120 = vector.extract_strided_slice %55 {offsets = [1, 0], sizes = [1, 160], strides = [1, 1]} : vector<5x160xf32> to vector<1x160xf32>
    %121 = vector.extract_strided_slice %111 {offsets = [1, 0], sizes = [1, 160], strides = [1, 1]} : vector<5x160xf32> to vector<1x160xf32>
    %122 = tpu.concatenate %120, %121 in 0 : vector<1x160xf32>, vector<1x160xf32> -> vector<2x160xf32>
    %123 = arith.truncf %122 : vector<2x160xf32> to vector<2x160xbf16>
    %c160 = arith.constant 160 : index
    %c0_99 = arith.constant 0 : index
    %124 = vector.load %arg14[%c160, %c0_99] : memref<800x128xbf16, #tpu.memory_space<vmem>>, vector<160x128xbf16>
    %cst_100 = arith.constant dense<0.000000e+00> : vector<2x128xf32>
    %125 = tpu.matmul %123, %124, %cst_100 {dimension_numbers = #tpu.dot_dimension_numbers<[1], [0], [0], [1], [0, 0, 1, 1], [], []>} : vector<2x160xbf16>, vector<160x128xbf16>, vector<2x128xf32> -> vector<2x128xf32>
    %126 = arith.addf %119, %125 : vector<2x128xf32>
    %127 = vector.extract_strided_slice %55 {offsets = [2, 0], sizes = [1, 160], strides = [1, 1]} : vector<5x160xf32> to vector<1x160xf32>
    %128 = vector.extract_strided_slice %111 {offsets = [2, 0], sizes = [1, 160], strides = [1, 1]} : vector<5x160xf32> to vector<1x160xf32>
    %129 = tpu.concatenate %127, %128 in 0 : vector<1x160xf32>, vector<1x160xf32> -> vector<2x160xf32>
    %130 = arith.truncf %129 : vector<2x160xf32> to vector<2x160xbf16>
    %c320 = arith.constant 320 : index
    %c0_101 = arith.constant 0 : index
    %131 = vector.load %arg14[%c320, %c0_101] : memref<800x128xbf16, #tpu.memory_space<vmem>>, vector<160x128xbf16>
    %cst_102 = arith.constant dense<0.000000e+00> : vector<2x128xf32>
    %132 = tpu.matmul %130, %131, %cst_102 {dimension_numbers = #tpu.dot_dimension_numbers<[1], [0], [0], [1], [0, 0, 1, 1], [], []>} : vector<2x160xbf16>, vector<160x128xbf16>, vector<2x128xf32> -> vector<2x128xf32>
    %133 = arith.addf %126, %132 : vector<2x128xf32>
    %134 = vector.extract_strided_slice %55 {offsets = [3, 0], sizes = [1, 160], strides = [1, 1]} : vector<5x160xf32> to vector<1x160xf32>
    %135 = vector.extract_strided_slice %111 {offsets = [3, 0], sizes = [1, 160], strides = [1, 1]} : vector<5x160xf32> to vector<1x160xf32>
    %136 = tpu.concatenate %134, %135 in 0 : vector<1x160xf32>, vector<1x160xf32> -> vector<2x160xf32>
    %137 = arith.truncf %136 : vector<2x160xf32> to vector<2x160xbf16>
    %c480 = arith.constant 480 : index
    %c0_103 = arith.constant 0 : index
    %138 = vector.load %arg14[%c480, %c0_103] : memref<800x128xbf16, #tpu.memory_space<vmem>>, vector<160x128xbf16>
    %cst_104 = arith.constant dense<0.000000e+00> : vector<2x128xf32>
    %139 = tpu.matmul %137, %138, %cst_104 {dimension_numbers = #tpu.dot_dimension_numbers<[1], [0], [0], [1], [0, 0, 1, 1], [], []>} : vector<2x160xbf16>, vector<160x128xbf16>, vector<2x128xf32> -> vector<2x128xf32>
    %140 = arith.addf %133, %139 : vector<2x128xf32>
    %141 = vector.extract_strided_slice %55 {offsets = [4, 0], sizes = [1, 160], strides = [1, 1]} : vector<5x160xf32> to vector<1x160xf32>
    %142 = vector.extract_strided_slice %111 {offsets = [4, 0], sizes = [1, 160], strides = [1, 1]} : vector<5x160xf32> to vector<1x160xf32>
    %143 = tpu.concatenate %141, %142 in 0 : vector<1x160xf32>, vector<1x160xf32> -> vector<2x160xf32>
    %144 = arith.truncf %143 : vector<2x160xf32> to vector<2x160xbf16>
    %c640 = arith.constant 640 : index
    %c0_105 = arith.constant 0 : index
    %145 = vector.load %arg14[%c640, %c0_105] : memref<800x128xbf16, #tpu.memory_space<vmem>>, vector<160x128xbf16>
    %cst_106 = arith.constant dense<0.000000e+00> : vector<2x128xf32>
    %146 = tpu.matmul %144, %145, %cst_106 {dimension_numbers = #tpu.dot_dimension_numbers<[1], [0], [0], [1], [0, 0, 1, 1], [], []>} : vector<2x160xbf16>, vector<160x128xbf16>, vector<2x128xf32> -> vector<2x128xf32>
    %147 = arith.addf %140, %146 : vector<2x128xf32>
    %c0_107 = arith.constant 0 : index
    %c0_108 = arith.constant 0 : index
    %148 = vector.load %arg15[%c0_107, %c0_108] : memref<1x128xf32, #tpu.memory_space<vmem>>, vector<1x128xf32>
    %149 = vector.broadcast %148 : vector<1x128xf32> to vector<2x128xf32>
    %150 = arith.addf %147, %149 : vector<2x128xf32>
    %cst_109 = arith.constant 0.000000e+00 : f32
    %151 = vector.broadcast %cst_109 : f32 to vector<2x128xf32>
    %152 = arith.maximumf %150, %151 : vector<2x128xf32>
    %153 = arith.truncf %152 : vector<2x128xf32> to vector<2x128xbf16>
    %c0_110 = arith.constant 0 : index
    %c0_111 = arith.constant 0 : index
    %154 = vector.load %arg16[%c0_110, %c0_111] : memref<128x128xbf16, #tpu.memory_space<vmem>>, vector<128x128xbf16>
    %cst_112 = arith.constant dense<0.000000e+00> : vector<2x128xf32>
    %155 = tpu.matmul %153, %154, %cst_112 {dimension_numbers = #tpu.dot_dimension_numbers<[1], [0], [0], [1], [0, 0, 1, 1], [], []>} : vector<2x128xbf16>, vector<128x128xbf16>, vector<2x128xf32> -> vector<2x128xf32>
    %c0_113 = arith.constant 0 : index
    %c0_114 = arith.constant 0 : index
    %156 = vector.load %arg17[%c0_113, %c0_114] : memref<1x128xf32, #tpu.memory_space<vmem>>, vector<1x128xf32>
    %157 = vector.broadcast %156 : vector<1x128xf32> to vector<2x128xf32>
    %158 = arith.addf %155, %157 : vector<2x128xf32>
    %c0_115 = arith.constant 0 : index
    %c0_116 = arith.constant 0 : index
    %159 = vector.load %arg18[%c0_115, %c0_116] : memref<2x128xf32, #tpu.memory_space<vmem>>, vector<2x128xf32>
    tpu.vector_store %arg18[%c0_115, %c0_116], %158 {strides = array<i32>} : memref<2x128xf32, #tpu.memory_space<vmem>>, vector<2x128xf32>,
    return
  }
  func.func @transform_0(%arg0: i32) -> (i32, i32, i32) {
    %c0_i32 = arith.constant 0 : i32
    %c0_i32_0 = arith.constant 0 : i32
    %c0_i32_1 = arith.constant 0 : i32
    return %arg0, %c0_i32, %c0_i32_0 : i32, i32, i32
  }
  func.func @transform_1(%arg0: i32) -> (i32, i32) {
    %c0_i32 = arith.constant 0 : i32
    %c0_i32_0 = arith.constant 0 : i32
    %c0_i32_1 = arith.constant 0 : i32
    return %c0_i32, %c0_i32_0 : i32, i32
  }
  func.func @transform_2(%arg0: i32) -> (i32, i32) {
    %c0_i32 = arith.constant 0 : i32
    %c0_i32_0 = arith.constant 0 : i32
    %c0_i32_1 = arith.constant 0 : i32
    return %c0_i32, %c0_i32_0 : i32, i32
  }
  func.func @transform_3(%arg0: i32) -> (i32, i32) {
    %c0_i32 = arith.constant 0 : i32
    %c0_i32_0 = arith.constant 0 : i32
    %c0_i32_1 = arith.constant 0 : i32
    return %c0_i32, %c0_i32_0 : i32, i32
  }
  func.func @transform_4(%arg0: i32) -> (i32, i32) {
    %c0_i32 = arith.constant 0 : i32
    %c0_i32_0 = arith.constant 0 : i32
    %c0_i32_1 = arith.constant 0 : i32
    return %c0_i32, %c0_i32_0 : i32, i32
  }
  func.func @transform_5(%arg0: i32) -> (i32, i32) {
    %c0_i32 = arith.constant 0 : i32
    %c0_i32_0 = arith.constant 0 : i32
    %c0_i32_1 = arith.constant 0 : i32
    return %c0_i32, %c0_i32_0 : i32, i32
  }
  func.func @transform_6(%arg0: i32) -> (i32, i32) {
    %c0_i32 = arith.constant 0 : i32
    %c0_i32_0 = arith.constant 0 : i32
    %c0_i32_1 = arith.constant 0 : i32
    return %c0_i32, %c0_i32_0 : i32, i32
  }
  func.func @transform_7(%arg0: i32) -> (i32, i32) {
    %c0_i32 = arith.constant 0 : i32
    %c0_i32_0 = arith.constant 0 : i32
    %c0_i32_1 = arith.constant 0 : i32
    return %c0_i32, %c0_i32_0 : i32, i32
  }
  func.func @transform_8(%arg0: i32) -> (i32, i32) {
    %c0_i32 = arith.constant 0 : i32
    %c0_i32_0 = arith.constant 0 : i32
    %c0_i32_1 = arith.constant 0 : i32
    return %c0_i32, %c0_i32_0 : i32, i32
  }
  func.func @transform_9(%arg0: i32) -> (i32, i32) {
    %c0_i32 = arith.constant 0 : i32
    %c0_i32_0 = arith.constant 0 : i32
    %c0_i32_1 = arith.constant 0 : i32
    return %c0_i32, %c0_i32_0 : i32, i32
  }
  func.func @transform_10(%arg0: i32) -> (i32, i32) {
    %c0_i32 = arith.constant 0 : i32
    %c0_i32_0 = arith.constant 0 : i32
    %c0_i32_1 = arith.constant 0 : i32
    return %c0_i32, %c0_i32_0 : i32, i32
  }
  func.func @transform_11(%arg0: i32) -> (i32, i32) {
    %c0_i32 = arith.constant 0 : i32
    %c0_i32_0 = arith.constant 0 : i32
    %c0_i32_1 = arith.constant 0 : i32
    return %c0_i32, %c0_i32_0 : i32, i32
  }
  func.func @transform_12(%arg0: i32) -> (i32, i32) {
    %c0_i32 = arith.constant 0 : i32
    %c0_i32_0 = arith.constant 0 : i32
    %c0_i32_1 = arith.constant 0 : i32
    return %c0_i32, %c0_i32_0 : i32, i32
  }
  func.func @transform_13(%arg0: i32) -> (i32, i32) {
    %c0_i32 = arith.constant 0 : i32
    %c0_i32_0 = arith.constant 0 : i32
    %c0_i32_1 = arith.constant 0 : i32
    return %c0_i32, %c0_i32_0 : i32, i32
  }
  func.func @transform_14(%arg0: i32) -> (i32, i32) {
    %c0_i32 = arith.constant 0 : i32
    %c0_i32_0 = arith.constant 0 : i32
    %c0_i32_1 = arith.constant 0 : i32
    return %c0_i32, %c0_i32_0 : i32, i32
  }
  func.func @transform_15(%arg0: i32) -> (i32, i32) {
    %c0_i32 = arith.constant 0 : i32
    %c0_i32_0 = arith.constant 0 : i32
    %c0_i32_1 = arith.constant 0 : i32
    return %c0_i32, %c0_i32_0 : i32, i32
  }
  func.func @transform_16(%arg0: i32) -> (i32, i32) {
    %c0_i32 = arith.constant 0 : i32
    %c0_i32_0 = arith.constant 0 : i32
    %c0_i32_1 = arith.constant 0 : i32
    return %c0_i32, %c0_i32_0 : i32, i32
  }
  func.func @transform_17(%arg0: i32) -> (i32, i32) {
    %c0_i32 = arith.constant 0 : i32
    %c0_i32_0 = arith.constant 0 : i32
    return %arg0, %c0_i32 : i32, i32
  }
}

</mosaic_0001>

<bundles_post_ra>
// kernel: cnn_forward.1
= control target key start
LH: loop header
LB: loop body
LE: loop exit
PB: predicated region body
PF: predicated region fallthrough
CT: control target
= control target key end

     0   :  { %s11632_s0 = inlined_call_operand.vmem [shape: f32[2,28,28], index: 0, kind: input, shape index: {}]   ;;  %s11633_s1 = inlined_call_operand.vmem [shape: bf16[84,416], index: 1, kind: input, shape index: {}]   ;;  %s11634_s2 = inlined_call_operand.vmem [shape: f32[1,416], index: 2, kind: input, shape index: {}]   ;;  %s11635_s3 = inlined_call_operand.vmem [shape: f32[13,26], index: 3, kind: input, shape index: {}]   ;;  %s11636_s4 = inlined_call_operand.vmem [shape: f32[13,26], index: 4, kind: input, shape index: {}]   ;;  %s11637_s5 = inlined_call_operand.vmem [shape: f32[416,208], index: 5, kind: input, shape index: {}]   ;;  %s11638_s6 = inlined_call_operand.vmem [shape: f32[416,208], index: 6, kind: input, shape index: {}]   ;;  %s11639_s7 = inlined_call_operand.vmem [shape: bf16[624,352], index: 7, kind: input, shape index: {}]   ;;  %s11640_s8 = inlined_call_operand.vmem [shape: f32[1,352], index: 8, kind: input, shape index: {}]   ;;  %s11641_s9 = inlined_call_operand.vmem [shape: f32[5,11], index: 9, kind: input, shape index: {}]   ;;  %s11642_s10 = inlined_call_operand.vmem [shape: f32[5,11], index: 10, kind: input, shape index: {}]   ;;  %s11643_s11 = inlined_call_operand.vmem [shape: f32[352,160], index: 11, kind: input, shape index: {}]   ;;  %s11644_s12 = inlined_call_operand.vmem [shape: f32[352,160], index: 12, kind: input, shape index: {}]   ;;  %s11645_s13 = inlined_call_operand.vmem [shape: bf16[800,128], index: 13, kind: input, shape index: {}]   ;;  %s11646_s14 = inlined_call_operand.vmem [shape: f32[1,128], index: 14, kind: input, shape index: {}]   ;;  %s11647_s15 = inlined_call_operand.vmem [shape: bf16[128,128], index: 15, kind: input, shape index: {}]   ;;  %s11648_s16 = inlined_call_operand.vmem [shape: f32[1,128], index: 16, kind: input, shape index: {}]   ;;  %s11649_s17 = inlined_call_operand.hbm [shape: f32[2,128], index: 17, kind: output, shape index: {}]  }
   0x1   :  { %11830 = sst [smem:[#allocation170_spill]] %s11632_s0 }
   0x2   :  { %11831 = sst [smem:[#allocation171_spill]] %s11633_s1 }
   0x3   :  { %s11832_s26 = sld [smem:[#allocation171_spill]]  ;;  %v11657_v2 = vmov 0   ;;  %vm128_vm0 = vcmask 1045504   ;;  %s11833_s22 = sld [smem:[#allocation170_spill]]  ;;  %vm80_vm1 = vsmask.f32 7424 }
   0x4   :  { %197 = vmatprep.mubr.bf16.mxu0 %v11657_v2  ;;  %250 = vmatprep.mubr.bf16.mxu1 %v11657_v2  ;;  %vm145_vm2 = vcmask 228352   ;;  %vm439_vm3 = vcmask 1046528  }
   0x9   :  { %v7520_v0 = vld [vmem:[%s11832_s26 + $0x34] ss:$16 sps:$4 sm:$0xfc]   ;;  %v7524_v5 = vld [vmem:[%s11832_s26 + $0x3c] ss:$16 sps:$4 sm:$0xfc]  }
   0xa   :  { %v7522_v1 = vld [vmem:[%s11832_s26 + $0x54] ss:$16 sps:$4 sm:$0xff]   ;;  %v132_v3 = vrot.slane %v7520_v0, 2  ;;  %v7526_v6 = vld [vmem:[%s11832_s26 + $0x5c] ss:$16 sps:$4 sm:$0xff]   ;;  %v138_v10 = vrot.slane %v7524_v5, 2 }
   0xb   :  { %v8033_v4 = vrot.slane %v7522_v1, 2  ;;  %v7528_v7 = vld [vmem:[%s11832_s26 + $0x30] ss:$16 sps:$4 sm:$0xfc]   ;;  %v8058_v13 = vrot.slane %v7526_v6, 2  ;;  %v59_v16 = vld [vmem:[%s11833_s22 + $0x8] sm:$0xff] }
   0xc   :  { %v58_v8 = vld [vmem:[%s11833_s22] sm:$0xff]  ;;  %v7530_v12 = vld [vmem:[%s11832_s26 + $0x38] ss:$16 sps:$4 sm:$0xfc]   ;;  %v129_v14 = vrot.slane %v7528_v7, 2  ;;  %v60_v17 = vld [vmem:[%s11833_s22 + $0x10] sm:$0xff] }
   0xd   :  { %v8049_v9 = vsel %vm128_vm0, %v132_v3, %v8033_v4  ;;  %v7529_v11 = vld [vmem:[%s11832_s26 + $0x50] ss:$16 sps:$4 sm:$0xff]   ;;  %v7531_v15 = vld [vmem:[%s11832_s26 + $0x58] ss:$16 sps:$4 sm:$0xff]   ;;  %v135_v19 = vrot.slane %v7530_v12, 2  ;;  %v8072_v21 = vpack.c.bf16 %v59_v16, %v58_v8  ;;  %v8076_v22 = vsel %vm128_vm0, %v138_v10, %v8058_v13 }
   0xe   :  { %165 = vmatprep.subr.bf16.mxu0 %v8049_v9  ;;  %v130_v18 = vrot.slane %v7529_v11, 2  ;;  %v61_v20 = vld [vmem:[%s11833_s22 + $0x18] sm:$0xf]  ;;  %v136_v23 = vrot.slane %v7531_v15, 2  ;;  %218 = vmatprep.subr.bf16.mxu1 %v8076_v22  ;;  %v7534_v30 = vld [vmem:[%s11832_s26 + $0x4] ss:$16 sps:$4 sm:$0xff]  }
   0xf   :  { %v8078_v24 = vpack.c.bf16 %v61_v20, %v60_v17  ;;  %v82_v26 = vshrl.u32 %v8072_v21, 16  ;;  %v84_v27 = vshll.u32 %v8072_v21, 16  ;;  %v7537_v35 = vld [vmem:[%s11832_s26 + $0xc] ss:$16 sps:$4 sm:$0xff]   ;;  %v7532_v37 = vld [vmem:[%s11832_s26] ss:$16 sps:$4 sm:$0xff]  }
  0x10   :  { %v8082_v25 = vsel %vm128_vm0, %v129_v14, %v130_v18  ;;  %v8088_v28 = vsel %vm128_vm0, %v135_v19, %v136_v23  ;;  %v8098_v31 = vsel %vm128_vm0, %v130_v18, 0  ;;  %v8103_v33 = vsel %vm128_vm0, %v136_v23, 0  ;;  %v7538_v38 = vld [vmem:[%s11832_s26 + $0x24] ss:$16 sps:$4 sm:$0x3f]  }
  0x11   :  { %166 = vmatpush1.bf16.msra.mxu0 %v8082_v25  ;;  %v89_v29 = vshll.u32 %v8078_v24, 16  ;;  %219 = vmatpush1.bf16.msra.mxu1 %v8088_v28  ;;  %v86_v32 = vrot.slane %v84_v27, 1  ;;  %v93_v40 = vshrl.u32 %v8078_v24, 16  ;;  %v7542_v41 = vld [vmem:[%s11832_s26 + $0x20] ss:$16 sps:$4 sm:$0x3f]  }
  0x12   :  { %6139 = vmatprep.subr.msk.bf16.mxu0 %vm128_vm0, %v8033_v4  ;;  %6142 = vmatprep.subr.msk.bf16.mxu1 %vm128_vm0, %v8058_v13  ;;  %v7535_v42 = vld [vmem:[%s11832_s26 + $0x8] ss:$16 sps:$4 sm:$0xff]   ;;  %v7540_v43 = vld [vmem:[%s11832_s26 + $0x2c] ss:$16 sps:$4 sm:$0x3f]   ;;  %v8135_v45 = vsel %vm128_vm0, %v7542_v41, 0 }
  0x13   :  { %v91_v34 = vrot.slane %v89_v29, 1  ;;  %v87_v36 = vor.u32 %v86_v32, %v82_v26  ;;  %v7543_v44 = vld [vmem:[%s11832_s26 + $0x28] ss:$16 sps:$4 sm:$0x3f]   ;;  %v7546_v46 = vld [vmem:[%s11832_s26 + $0x74] ss:$16 sps:$4 sm:$0xff]  }
  0x14   :  { %v7549_v47 = vld [vmem:[%s11832_s26 + $0x7c] ss:$16 sps:$4 sm:$0xff]   ;;  %v8146_v49 = vsel %vm128_vm0, %v7543_v44, 0  ;;  %v7544_v50 = vld [vmem:[%s11832_s26 + $0x70] ss:$16 sps:$4 sm:$0xff]   ;;  %v440_v58 = vrot.slane %v8072_v21, 1 }
  0x15   :  { %168 = vmatpush1.bf16.msra.mxu0 %v8098_v31  ;;  %221 = vmatpush1.bf16.msra.mxu1 %v8103_v33  ;;  %v92_v39 = vsel %vm80_vm1, %v87_v36, %v91_v34  ;;  %v95_v48 = vor.u32 %v93_v40, %v91_v34  ;;  %v7554_v51 = vld [vmem:[%s11832_s26 + $0x90] ss:$16 sps:$4 sm:$0x3f]   ;;  %v7547_v52 = vld [vmem:[%s11832_s26 + $0x78] ss:$16 sps:$4 sm:$0xff]   ;;  %v441_v59 = vrot.slane %v8078_v24, 1 }
  0x16   :  { %323 = vmatprep.subr.bf16.mxu0 %v7534_v30  ;;  %376 = vmatprep.subr.bf16.mxu1 %v7537_v35  ;;  %v7550_v53 = vld [vmem:[%s11832_s26 + $0x94] ss:$16 sps:$4 sm:$0x3f]   ;;  %v7552_v54 = vld [vmem:[%s11832_s26 + $0x9c] ss:$16 sps:$4 sm:$0x3f]  }
  0x17   :  { %v7555_v55 = vld [vmem:[%s11832_s26 + $0x98] ss:$16 sps:$4 sm:$0x3f]   ;;  %v8179_v56 = vsel %vm128_vm0, %v7554_v51, 0  ;;  %v442_v60 = vsel %vm439_vm3, %v440_v58, %v441_v59 }
  0x18   :  { %6140 = vmatmul.mubr.msk.bf16.vlgmr.msra.gmra.mrb[0].mxu0 %vm145_vm2, %v92_v39  ;;  %6143 = vmatmul.mubr.msk.bf16.vlgmr.msra.gmra.mrb[0].mxu1 %vm145_vm2, %v92_v39  ;;  %v8184_v57 = vsel %vm128_vm0, %v7555_v55, 0 }
  0x19   :  { %324 = vmatpush1.bf16.msra.mxu0 %v7532_v37  ;;  %207 = vmatprep.mubr.bf16.mxu0 %v11657_v2 }
  0x1a   :  { %260 = vmatprep.mubr.bf16.mxu1 %v11657_v2  ;;  %377 = vmatpush1.bf16.msra.mxu1 %v7535_v42 }
  0x1b   :  { %6153 = vmatprep.subr.msk.bf16.mxu0 %vm128_vm0, %v7538_v38  ;;  %6156 = vmatprep.subr.msk.bf16.mxu1 %vm128_vm0, %v7540_v43 }
  0x1d   :  { %326 = vmatpush1.bf16.msra.mxu0 %v8135_v45 }
  0x1e   :  { %497 = vmatprep.subr.bf16.mxu0 %v7546_v46  ;;  %379 = vmatpush1.bf16.msra.mxu1 %v8146_v49 }
  0x1f   :  { %550 = vmatprep.subr.bf16.mxu1 %v7549_v47 }
  0x20   :  { %6141 = vmatmul.mubr.msk.bf16.gmra.mrb[4].mxu0 %vm145_vm2, %v95_v48  ;;  %6144 = vmatmul.mubr.msk.bf16.gmra.mrb[4].mxu1 %vm145_vm2, %v95_v48 }
  0x21   :  { %355 = vmatprep.mubr.bf16.mxu0 %v11657_v2  ;;  %408 = vmatprep.mubr.bf16.mxu1 %v11657_v2 }
  0x28   :  { %6154 = vmatmul.mubr.msk.bf16.vlgmr.msra.gmra.mrb[0].mxu0 %vm145_vm2, %v8072_v21  ;;  %6157 = vmatmul.mubr.msk.bf16.vlgmr.msra.gmra.mrb[0].mxu1 %vm145_vm2, %v8072_v21 }
  0x29   :  { %498 = vmatpush1.bf16.msra.mxu0 %v7544_v50  ;;  %365 = vmatprep.mubr.bf16.mxu0 %v11657_v2 }
  0x2a   :  { %418 = vmatprep.mubr.bf16.mxu1 %v11657_v2  ;;  %551 = vmatpush1.bf16.msra.mxu1 %v7547_v52 }
  0x2b   :  { %6167 = vmatprep.subr.msk.bf16.mxu0 %vm128_vm0, %v7550_v53  ;;  %6170 = vmatprep.subr.msk.bf16.mxu1 %vm128_vm0, %v7552_v54 }
  0x2d   :  { %500 = vmatpush1.bf16.msra.mxu0 %v8179_v56 }
  0x2e   :  { %553 = vmatpush1.bf16.msra.mxu1 %v8184_v57 }
  0x30   :  { %6155 = vmatmul.mubr.msk.bf16.gmra.mrb[4].mxu0 %vm145_vm2, %v8078_v24  ;;  %6158 = vmatmul.mubr.msk.bf16.gmra.mrb[4].mxu1 %vm145_vm2, %v8078_v24 }
  0x31   :  { %529 = vmatprep.mubr.bf16.mxu0 %v11657_v2  ;;  %582 = vmatprep.mubr.bf16.mxu1 %v11657_v2 }
  0x38   :  { %6168 = vmatmul.mubr.msk.bf16.vlgmr.msra.gmra.mrb[0].mxu0 %vm145_vm2, %v442_v60  ;;  %6171 = vmatmul.mubr.msk.bf16.vlgmr.msra.gmra.mrb[0].mxu1 %vm145_vm2, %v442_v60 }
  0x39   :  { %539 = vmatprep.mubr.bf16.mxu0 %v11657_v2  ;;  %592 = vmatprep.mubr.bf16.mxu1 %v11657_v2 }
  0x40   :  { %6169 = vmatmul.mubr.msk.bf16.gmra.mrb[4].mxu0 %vm145_vm2, %v441_v59  ;;  %6172 = vmatmul.mubr.msk.bf16.gmra.mrb[4].mxu1 %vm145_vm2, %v441_v59 }
  0x41   :  { %22 = vsyncpa [#allocation3], 0  ;;  %v11655_v61 = vmov 0.0   ;;  %v621_v62 = vlaneseq  ;;  %v619_v5 = vld [vmem:[%s11634_s2] sm:$0xf]  ;;  %vm666_vm4 = vcmask 1041408  }
  0x42   :  { %743 = vmatprep.mubr.f32.mxu0 %v11655_v61  ;;  %820 = vmatprep.mubr.f32.mxu1 %v11655_v61  ;;  %vm7931_vm5 = vmmov 1   ;;  %vm659_vm7 = vcmask 211968   ;;  %vm1107_vm8 = vcmask 261120   ;;  %vm1863_vm9 = vcmask 654336   ;;  %s7934_s24 = smov [#allocation2]  }
  0x43   :  { %v8205_v63 = vshrl.u32 %v621_v62, 7  ;;  %vm8245_vm6 = vmpackc.low %vm666_vm4, %vm7931_vm5  ;;  %vm2631_vm10 = vcmask 1042432   ;;  %vm2627_vm12 = vcmask 89088   ;;  %vm7933_vm13 = vmmov 0  }
  0x44   :  { %vm9681_vm11 = vmpackc.low %vm2631_vm10, %vm7931_vm5  ;;  %vm3018_vm14 = vcmask 785408   ;;  %vm5326_vm15 = vcmask 1040384  }
  0x45   :  { %v11652_v0 = vsub.s32 2, %v8205_v63  ;;  %v11654_v1 = vsub.s32 0, %v8205_v63  ;;  %v635_v3 = vsub.s32 3, %v8205_v63  ;;  %v11653_v6 = vsub.s32 1, %v8205_v63 }
  0x47   :  { %v8216_v7 = vrot.slane %v619_v5, %v11652_v0  ;;  %v8220_v8 = vrot.slane %v619_v5, %v11654_v1  ;;  %v8222_v10 = vrot.slane %v619_v5, %v635_v3  ;;  %v8226_v12 = vrot.slane %v619_v5, %v11653_v6  ;;  %v657_v5 = vld [vmem:[%s11635_s3] sm:$0xff]  ;;  %v1302_v1 = vld [vmem:[%s11638_s6 + $0x110] sm:$0xff] }
  0x48   :  { %v1300_v6 = vld [vmem:[%s11638_s6 + $0x100] sm:$0xff] }
 0x10b   :  { %v531_v11 = vpop.f32.mrb[0].mxu0  ;;  %v584_v15 = vpop.f32.mrb[0].mxu1 }
 0x10c   :  { %v533_v14 = vpop.f32.mrb[1].mxu0  ;;  %v643_v17 = vadd.f32 %v8216_v7, %v584_v15  ;;  %v586_v18 = vpop.f32.mrb[1].mxu1  ;;  %v641_v19 = vadd.f32 %v8220_v8, %v531_v11  ;;  %v1004_v11 = vld [vmem:[%s11637_s5 + $0x8] sm:$0xff] }
 0x10d   :  { %v535_v16 = vpop.f32.mrb[2].mxu0  ;;  %v644_v23 = vadd.f32 %v8222_v10, %v586_v18  ;;  %v588_v24 = vpop.f32.mrb[2].mxu1  ;;  %v642_v26 = vadd.f32 %v8226_v12, %v533_v14  ;;  %v1006_v14 = vld [vmem:[%s11637_s5 + $0x18] sm:$0xff]  ;;  %v1269_v15 = vld [vmem:[%s11638_s6 + $0x8] sm:$0xff] }
 0x10e   :  { %v645_v20 = vadd.f32 %v8220_v8, %v535_v16  ;;  %v537_v21 = vpop.f32.mrb[3].mxu0  ;;  %v647_v29 = vadd.f32 %v8216_v7, %v588_v24  ;;  %v590_v30 = vpop.f32.mrb[3].mxu1  ;;  %v1271_v16 = vld [vmem:[%s11638_s6 + $0x18] sm:$0xff]  ;;  %v8279_v18 = vpack.c.bf16 %v1006_v14, %v1004_v11  ;;  %v1281_v11 = vld [vmem:[%s11638_s6 + $0x68] sm:$0xff]  ;;  %v1015_v14 = vld [vmem:[%s11637_s5 + $0x60] sm:$0xff] }
 0x10f   :  { %v646_v27 = vadd.f32 %v8226_v12, %v537_v21  ;;  %v648_v34 = vadd.f32 %v8222_v10, %v590_v30  ;;  %v8290_v21 = vpack.c.bf16 %v1271_v16, %v1269_v15  ;;  %v1010_v24 = vld [vmem:[%s11637_s5 + $0x38] sm:$0xff]  ;;  %v1270_v30 = vld [vmem:[%s11638_s6 + $0x10] sm:$0xff] }
 0x110   :  { %v6524_v32 = vpack.c.bf16 %v645_v20, %v641_v19  ;;  %v6534_v36 = vpack.c.bf16 %v647_v29, %v643_v17  ;;  %v658_v17 = vld [vmem:[%s11635_s3 + $0x8] sm:$0x1f]  ;;  %v1003_v19 = vld [vmem:[%s11637_s5] sm:$0xff]  ;;  %v1005_v20 = vld [vmem:[%s11637_s5 + $0x10] sm:$0xff] }
 0x111   :  { %v6522_v35 = vpack.c.bf16 %v646_v27, %v642_v26  ;;  %v6532_v37 = vpack.c.bf16 %v648_v34, %v644_v23  ;;  %v1008_v23 = vld [vmem:[%s11637_s5 + $0x28] sm:$0xff]  ;;  %v833_v26 = vld [vmem:[%s11636_s4] sm:$0xff]  ;;  %v8306_v27 = vpack.c.bf16 %v1005_v20, %v1003_v19  ;;  %v1017_v15 = vld [vmem:[%s11637_s5 + $0x70] sm:$0xff] }
 0x112   :  { %v1268_v29 = vld [vmem:[%s11638_s6] sm:$0xff]  ;;  %v1273_v34 = vld [vmem:[%s11638_s6 + $0x28] sm:$0xff]  ;;  %v1283_v16 = vld [vmem:[%s11638_s6 + $0x78] sm:$0xff] }
 0x113   :  { %v541_v38 = vpop.f32.mrb[4].mxu0  ;;  %6523 = vmatprep.subr.bf16.mxu0 %v6522_v35  ;;  %v594_v39 = vpop.f32.mrb[4].mxu1  ;;  %6533 = vmatprep.subr.bf16.mxu1 %v6532_v37  ;;  %v1022_v19 = vld [vmem:[%s11637_s5 + $0x98] sm:$0xff] }
 0x114   :  { %v543_v40 = vpop.f32.mrb[5].mxu0  ;;  %6525 = vmatpush1.bf16.msra.mxu0 %v6524_v32  ;;  %v651_v41 = vadd.f32 %v8216_v7, %v594_v39  ;;  %v596_v42 = vpop.f32.mrb[5].mxu1  ;;  %6535 = vmatpush1.bf16.msra.mxu1 %v6534_v36  ;;  %v649_v44 = vadd.f32 %v8220_v8, %v541_v38  ;;  %v1012_v38 = vld [vmem:[%s11637_s5 + $0x48] sm:$0xff]  ;;  %v1014_v39 = vld [vmem:[%s11637_s5 + $0x58] sm:$0xff] }
 0x115   :  { %v545_v43 = vpop.f32.mrb[6].mxu0  ;;  %v652_v46 = vadd.f32 %v8222_v10, %v596_v42  ;;  %v598_v48 = vpop.f32.mrb[6].mxu1  ;;  %v650_v51 = vadd.f32 %v8226_v12, %v543_v40  ;;  %v834_v40 = vld [vmem:[%s11636_s4 + $0x8] sm:$0x1f] }
 0x116   :  { %v653_v47 = vadd.f32 %v8220_v8, %v545_v43  ;;  %v547_v50 = vpop.f32.mrb[7].mxu0  ;;  %v655_v52 = vadd.f32 %v8216_v7, %v598_v48  ;;  %v600_v54 = vpop.f32.mrb[7].mxu1  ;;  %v1272_v43 = vld [vmem:[%s11638_s6 + $0x20] sm:$0xff]  ;;  %v1277_v48 = vld [vmem:[%s11638_s6 + $0x48] sm:$0xff] }
 0x117   :  { %v654_v53 = vadd.f32 %v8226_v12, %v547_v50  ;;  %v656_v58 = vadd.f32 %v8222_v10, %v600_v54  ;;  %v1011_v50 = vld [vmem:[%s11637_s5 + $0x40] sm:$0xff]  ;;  %v1018_v54 = vld [vmem:[%s11637_s5 + $0x78] sm:$0xff] }
 0x118   :  { %v6529_v55 = vpack.c.bf16 %v653_v47, %v649_v44  ;;  %v6539_v60 = vpack.c.bf16 %v655_v52, %v651_v41  ;;  %v8346_v41 = vpack.c.bf16 %v1270_v30, %v1268_v29  ;;  %v1274_v44 = vld [vmem:[%s11638_s6 + $0x30] sm:$0xff]  ;;  %v8359_v47 = vpack.c.bf16 %v1014_v39, %v1012_v38  ;;  %v1279_v52 = vld [vmem:[%s11638_s6 + $0x58] sm:$0xff]  ;;  %v1024_v38 = vld [vmem:[%s11637_s5 + $0xa8] sm:$0xff] }
 0x119   :  { %v6526_v62 = vpack.c.bf16 %v654_v53, %v650_v51  ;;  %v6536_v3 = vpack.c.bf16 %v656_v58, %v652_v46  ;;  %v1013_v51 = vld [vmem:[%s11637_s5 + $0x50] sm:$0xff]  ;;  %v1016_v53 = vld [vmem:[%s11637_s5 + $0x68] sm:$0xff]  ;;  %v8433_v29 = vpack.c.bf16 %v1283_v16, %v1281_v11  ;;  %v1026_v39 = vld [vmem:[%s11637_s5 + $0xb8] sm:$0xff] }
 0x11a   :  { %v8386_v58 = vpack.c.bf16 %v1013_v51, %v1011_v50  ;;  %v8471_v51 = vpack.c.bf16 %v1026_v39, %v1024_v38  ;;  %v1030_v11 = vld [vmem:[%s11637_s5 + $0xd8] sm:$0xff]  ;;  %v1288_v16 = vld [vmem:[%s11638_s6 + $0xa0] sm:$0xff] }
 0x11b   :  { %6528 = vmatprep.subr.msk.bf16.mxu0 %vm8245_vm6, %v6526_v62  ;;  %6538 = vmatprep.subr.msk.bf16.mxu1 %vm8245_vm6, %v6536_v3  ;;  %v1034_v38 = vld [vmem:[%s11637_s5 + $0xf8] sm:$0xff] }
 0x11c   :  { %6531 = vmatpush1.bf16.msk.msra.mxu0 %vm8245_vm6, %v6529_v55  ;;  %6541 = vmatpush1.bf16.msk.msra.mxu1 %vm8245_vm6, %v6539_v60  ;;  %11838 = vst [vmem:[#allocation7_spill] sm:$0xff] %v8471_v51 }
 0x11d   :  { %6543 = vmatprep.subr.bf16.mxu0 %v6522_v35  ;;  %6553 = vmatprep.subr.bf16.mxu1 %v6532_v37  ;;  %v1007_v35 = vld [vmem:[%s11637_s5 + $0x20] sm:$0xff]  ;;  %v1275_v37 = vld [vmem:[%s11638_s6 + $0x38] sm:$0xff] }
 0x11e   :  { %v8357_v46 = vpack.c.bf16 %v1275_v37, %v1273_v34  ;;  %v1285_v34 = vld [vmem:[%s11638_s6 + $0x88] sm:$0xff]  ;;  %v1287_v37 = vld [vmem:[%s11638_s6 + $0x98] sm:$0xff] }
 0x11f   :  { %6175 = vmatmul.mubr.msk.f32.vlgmr.msra.gmra.mrb[8].mxu0 %vm659_vm7, %v657_v5  ;;  %6179 = vmatmul.mubr.msk.f32.vlgmr.msra.gmra.mrb[8].mxu1 %vm659_vm7, %v657_v5  ;;  %v8398_v5 = vpack.c.bf16 %v1018_v54, %v1016_v53  ;;  %v8469_v50 = vpack.c.bf16 %v1287_v37, %v1285_v34  ;;  %v1023_v53 = vld [vmem:[%s11637_s5 + $0xa0] sm:$0xff]  ;;  %v1025_v54 = vld [vmem:[%s11637_s5 + $0xb0] sm:$0xff]  ;;  %v1032_v37 = vld [vmem:[%s11637_s5 + $0xe8] sm:$0xff] }
 0x120   :  { %6545 = vmatpush1.bf16.msra.mxu0 %v6524_v32  ;;  %6555 = vmatpush1.bf16.msra.mxu1 %v6534_v36  ;;  %v8317_v32 = vpack.c.bf16 %v1010_v24, %v1008_v23  ;;  %v1009_v36 = vld [vmem:[%s11637_s5 + $0x30] sm:$0xff]  ;;  %v8423_v23 = vpack.c.bf16 %v1017_v15, %v1015_v14  ;;  %v1280_v24 = vld [vmem:[%s11638_s6 + $0x60] sm:$0xff]  ;;  %v8495_v15 = vpack.c.bf16 %v1025_v54, %v1023_v53 }
 0x121   :  { %6548 = vmatprep.subr.msk.bf16.mxu0 %vm8245_vm6, %v6526_v62  ;;  %6558 = vmatprep.subr.msk.bf16.mxu1 %vm8245_vm6, %v6536_v3  ;;  %v8348_v42 = vpack.c.bf16 %v1009_v36, %v1007_v35  ;;  %v1278_v62 = vld [vmem:[%s11638_s6 + $0x50] sm:$0xff]  ;;  %v8396_v3 = vpack.c.bf16 %v1279_v52, %v1277_v48  ;;  %v1019_v35 = vld [vmem:[%s11637_s5 + $0x80] sm:$0xff]  ;;  %11837 = vst [vmem:[#allocation6_spill] sm:$0xff] %v8469_v50  ;;  %v1289_v52 = vld [vmem:[%s11638_s6 + $0xa8] sm:$0xff] }
 0x122   :  { %749 = vmatprep.mubr.f32.mxu0 %v11655_v61  ;;  %826 = vmatprep.mubr.f32.mxu1 %v11655_v61  ;;  %v1021_v36 = vld [vmem:[%s11637_s5 + $0x90] sm:$0xff]  ;;  %11840 = vst [vmem:[#allocation9_spill] sm:$0xff] %v8495_v15  ;;  %v1027_v34 = vld [vmem:[%s11637_s5 + $0xc0] sm:$0xff]  ;;  %v8543_v54 = vpack.c.bf16 %v1034_v38, %v1032_v37 }
 0x123   :  { %6176 = vmatmul.mubr.msk.f32.gmra.mrb[10].mxu0 %vm659_vm7, %v658_v17  ;;  %6180 = vmatmul.mubr.msk.f32.gmra.mrb[10].mxu1 %vm659_vm7, %v658_v17  ;;  %v1020_v17 = vld [vmem:[%s11637_s5 + $0x88] sm:$0xff]  ;;  %v1286_v48 = vld [vmem:[%s11638_s6 + $0x90] sm:$0xff] }
 0x124   :  { %6551 = vmatpush1.bf16.msk.msra.mxu0 %vm8245_vm6, %v6529_v55  ;;  %905 = vmatprep.mubr.f32.mxu0 %v11655_v61  ;;  %v8384_v55 = vpack.c.bf16 %v1274_v44, %v1272_v43  ;;  %v8435_v30 = vpack.c.bf16 %v1022_v19, %v1020_v17  ;;  %v8459_v43 = vpack.c.bf16 %v1021_v36, %v1019_v35  ;;  %v1284_v44 = vld [vmem:[%s11638_s6 + $0x80] sm:$0xff]  ;;  %v1290_v17 = vld [vmem:[%s11638_s6 + $0xb0] sm:$0xff]  ;;  %v1295_v36 = vld [vmem:[%s11638_s6 + $0xd8] sm:$0xff] }
 0x125   :  { %6561 = vmatpush1.bf16.msk.msra.mxu1 %vm8245_vm6, %v6539_v60  ;;  %6563 = vmatprep.subr.bf16.mxu0 %v8279_v18  ;;  %v1276_v60 = vld [vmem:[%s11638_s6 + $0x40] sm:$0xff]  ;;  %v8493_v14 = vpack.c.bf16 %v1286_v48, %v1284_v44  ;;  %v1029_v35 = vld [vmem:[%s11637_s5 + $0xd0] sm:$0xff]  ;;  %v8529_v39 = vpack.c.bf16 %v1290_v17, %v1288_v16  ;;  %11846 = vst [vmem:[#allocation15_spill] sm:$0xff] %v8543_v54  ;;  %v1299_v16 = vld [vmem:[%s11638_s6 + $0xf8] sm:$0xff] }
 0x126   :  { %6667 = vmatprep.subr.bf16.mxu1 %v8290_v21  ;;  %982 = vmatprep.mubr.f32.mxu1 %v11655_v61  ;;  %v8421_v20 = vpack.c.bf16 %v1278_v62, %v1276_v60  ;;  %11836 = vst [vmem:[#allocation5_spill] sm:$0xff] %v8459_v43  ;;  %v1291_v60 = vld [vmem:[%s11638_s6 + $0xb8] sm:$0xff]  ;;  %v1028_v62 = vld [vmem:[%s11637_s5 + $0xc8] sm:$0xff]  ;;  %v8531_v44 = vpack.c.bf16 %v1029_v35, %v1027_v34  ;;  %v1292_v48 = vld [vmem:[%s11638_s6 + $0xc0] sm:$0xff] }
 0x127   :  { %6183 = vmatmul.mubr.msk.f32.vlgmr.msra.gmra.mrb[12].mxu0 %vm659_vm7, %v833_v26  ;;  %11839 = vst [vmem:[#allocation8_spill] sm:$0xff] %v8493_v14  ;;  %v8505_v19 = vpack.c.bf16 %v1291_v60, %v1289_v52  ;;  %11843 = vst [vmem:[#allocation12_spill] sm:$0xff] %v8529_v39  ;;  %v1294_v52 = vld [vmem:[%s11638_s6 + $0xd0] sm:$0xff]  ;;  %v1297_v60 = vld [vmem:[%s11638_s6 + $0xe8] sm:$0xff] }
 0x128   :  { %911 = vmatprep.mubr.f32.mxu0 %v11655_v61  ;;  %6565 = vmatpush1.bf16.msra.mxu0 %v8306_v27  ;;  %11844 = vst [vmem:[#allocation13_spill] sm:$0xff] %v8531_v44  ;;  %v1036_v17 = vld [vmem:[%s11637_s5 + $0x108] sm:$0xff]  ;;  %v8565_v34 = vpack.c.bf16 %v1294_v52, %v1292_v48  ;;  %v1298_v37 = vld [vmem:[%s11638_s6 + $0xf0] sm:$0xff]  ;;  %v8577_v38 = vpack.c.bf16 %v1299_v16, %v1297_v60  ;;  %v1035_v52 = vld [vmem:[%s11637_s5 + $0x100] sm:$0xff] }
 0x129   :  { %6567 = vmatprep.subr.bf16.mxu0 %v8317_v32  ;;  %6187 = vmatmul.mubr.msk.f32.vlgmr.msra.gmra.mrb[12].mxu1 %vm659_vm7, %v833_v26  ;;  %v1282_v26 = vld [vmem:[%s11638_s6 + $0x70] sm:$0xff]  ;;  %11841 = vst [vmem:[#allocation10_spill] sm:$0xff] %v8505_v19  ;;  %v1301_v48 = vld [vmem:[%s11638_s6 + $0x108] sm:$0xff]  ;;  %v1042_v16 = vld [vmem:[%s11637_s5 + $0x138] sm:$0xff] }
 0x12a   :  { %988 = vmatprep.mubr.f32.mxu1 %v11655_v61  ;;  %6669 = vmatpush1.bf16.msra.mxu1 %v8346_v41  ;;  %11847 = vst [vmem:[#allocation16_spill] sm:$0xff] %v8565_v34  ;;  %11849 = vst [vmem:[#allocation18_spill] sm:$0xff] %v8577_v38  ;;  %v1040_v60 = vld [vmem:[%s11637_s5 + $0x128] sm:$0xff] }
 0x12b   :  { %6184 = vmatmul.mubr.msk.f32.gmra.mrb[14].mxu0 %vm659_vm7, %v834_v40  ;;  %6671 = vmatprep.subr.bf16.mxu1 %v8357_v46  ;;  %v8615_v2 = vpack.c.bf16 %v1042_v16, %v1040_v60  ;;  %v8637_v60 = vpack.c.bf16 %v1302_v1, %v1300_v6  ;;  %v1309_v1 = vld [vmem:[%s11638_s6 + $0x148] sm:$0xff]  ;;  %v1043_v6 = vld [vmem:[%s11637_s5 + $0x140] sm:$0xff] }
 0x12c   :  { %6569 = vmatpush1.bf16.msra.mxu0 %v8348_v42  ;;  %v12008_v59 = vld [vmem:[#allocation6_spill] sm:$0xff] }
 0x12d   :  { %6571 = vmatprep.subr.bf16.mxu0 %v8359_v47  ;;  %6188 = vmatmul.mubr.msk.f32.gmra.mrb[14].mxu1 %vm659_vm7, %v834_v40  ;;  %v8457_v40 = vpack.c.bf16 %v1282_v26, %v1280_v24  ;;  %v8507_v24 = vpack.c.bf16 %v1030_v11, %v1028_v62  ;;  %v1293_v26 = vld [vmem:[%s11638_s6 + $0xc8] sm:$0xff]  ;;  %v1031_v62 = vld [vmem:[%s11637_s5 + $0xe0] sm:$0xff]  ;;  %v1033_v11 = vld [vmem:[%s11637_s5 + $0xf0] sm:$0xff]  ;;  %11854 = vst [vmem:[#allocation23_spill] sm:$0xff] %v8615_v2 }
 0x12e   :  { %6673 = vmatpush1.bf16.msra.mxu1 %v8384_v55  ;;  %v8541_v53 = vpack.c.bf16 %v1295_v36, %v1293_v26  ;;  %v1038_v26 = vld [vmem:[%s11637_s5 + $0x118] sm:$0xff]  ;;  %v8567_v35 = vpack.c.bf16 %v1033_v11, %v1031_v62  ;;  %v1296_v36 = vld [vmem:[%s11638_s6 + $0xe0] sm:$0xff]  ;;  %v1037_v62 = vld [vmem:[%s11637_s5 + $0x110] sm:$0xff]  ;;  %11855 = vst [vmem:[#allocation24_spill] sm:$0xff] %v8637_v60 }
 0x12f   :  { %6675 = vmatprep.subr.bf16.mxu1 %v8396_v3  ;;  %11842 = vst [vmem:[#allocation11_spill] sm:$0xff] %v8507_v24  ;;  %v8579_v0 = vpack.c.bf16 %v1038_v26, %v1036_v17  ;;  %v1303_v11 = vld [vmem:[%s11638_s6 + $0x118] sm:$0xff]  ;;  %v8601_v17 = vpack.c.bf16 %v1298_v37, %v1296_v36  ;;  %v8603_v26 = vpack.c.bf16 %v1037_v62, %v1035_v52  ;;  %v1305_v36 = vld [vmem:[%s11638_s6 + $0x128] sm:$0xff]  ;;  %v1039_v37 = vld [vmem:[%s11637_s5 + $0x120] sm:$0xff] }
 0x130   :  { %6573 = vmatpush1.bf16.msra.mxu0 %v8386_v58  ;;  %11845 = vst [vmem:[#allocation14_spill] sm:$0xff] %v8541_v53  ;;  %11848 = vst [vmem:[#allocation17_spill] sm:$0xff] %v8567_v35  ;;  %v8613_v61 = vpack.c.bf16 %v1303_v11, %v1301_v48  ;;  %v1041_v52 = vld [vmem:[%s11637_s5 + $0x130] sm:$0xff]  ;;  %v1307_v62 = vld [vmem:[%s11638_s6 + $0x138] sm:$0xff] }
 0x131   :  { %6575 = vmatprep.subr.bf16.mxu0 %v8398_v5  ;;  %11850 = vst [vmem:[#allocation19_spill] sm:$0xff] %v8579_v0  ;;  %11851 = vst [vmem:[#allocation20_spill] sm:$0xff] %v8601_v17  ;;  %v1044_v48 = vld [vmem:[%s11637_s5 + $0x148] sm:$0xff]  ;;  %v1046_v11 = vld [vmem:[%s11637_s5 + $0x158] sm:$0xff]  ;;  %v8639_v16 = vpack.c.bf16 %v1041_v52, %v1039_v37 }
 0x132   :  { %6677 = vmatpush1.bf16.msra.mxu1 %v8421_v20  ;;  %11852 = vst [vmem:[#allocation21_spill] sm:$0xff] %v8603_v26  ;;  %11853 = vst [vmem:[#allocation22_spill] sm:$0xff] %v8613_v61  ;;  %v1045_v37 = vld [vmem:[%s11637_s5 + $0x150] sm:$0xff]  ;;  %v1311_v52 = vld [vmem:[%s11638_s6 + $0x158] sm:$0xff] }
 0x133   :  { %6679 = vmatprep.subr.bf16.mxu1 %v8433_v29  ;;  %11856 = vst [vmem:[#allocation25_spill] sm:$0xff] %v8639_v16 }
 0x134   :  { %6577 = vmatpush1.bf16.msra.mxu0 %v8423_v23 }
 0x135   :  { %6579 = vmatprep.subr.bf16.mxu0 %v8435_v30 }
 0x136   :  { %6681 = vmatpush1.bf16.msra.mxu1 %v8457_v40 }
 0x137   :  { %6683 = vmatprep.subr.bf16.mxu1 %v8469_v50 }
 0x138   :  { %6581 = vmatpush1.bf16.msra.mxu0 %v8459_v43 }
 0x139   :  { %6583 = vmatprep.subr.bf16.mxu0 %v8471_v51 }
 0x13a   :  { %6685 = vmatpush1.bf16.msra.mxu1 %v8493_v14 }
 0x13b   :  { %6687 = vmatprep.subr.bf16.mxu1 %v8505_v19 }
 0x13c   :  { %6585 = vmatpush1.bf16.msra.mxu0 %v8495_v15  ;;  %v1073_v15 = vld [vmem:[%s11637_s5 + $0x230] sm:$0xff] }
 0x13d   :  { %6587 = vmatprep.subr.bf16.mxu0 %v8507_v24 }
 0x13e   :  { %6689 = vmatpush1.bf16.msra.mxu1 %v8529_v39  ;;  %v1071_v39 = vld [vmem:[%s11637_s5 + $0x220] sm:$0xff] }
 0x13f   :  { %6691 = vmatprep.subr.bf16.mxu1 %v8541_v53  ;;  %v8945_v43 = vpack.c.bf16 %v1073_v15, %v1071_v39  ;;  %v1340_v15 = vld [vmem:[%s11638_s6 + $0x240] sm:$0xff]  ;;  %v1342_v39 = vld [vmem:[%s11638_s6 + $0x250] sm:$0xff] }
 0x140   :  { %6589 = vmatpush1.bf16.msra.mxu0 %v8531_v44 }
 0x141   :  { %6591 = vmatprep.subr.bf16.mxu0 %v8543_v54 }
 0x142   :  { %6693 = vmatpush1.bf16.msra.mxu1 %v8565_v34 }
 0x143   :  { %6695 = vmatprep.subr.bf16.mxu1 %v8577_v38  ;;  %v8649_v38 = vpack.c.bf16 %v1307_v62, %v1305_v36  ;;  %v1048_v36 = vld [vmem:[%s11637_s5 + $0x168] sm:$0xff]  ;;  %v1050_v62 = vld [vmem:[%s11637_s5 + $0x178] sm:$0xff] }
 0x144   :  { %6593 = vmatpush1.bf16.msra.mxu0 %v8567_v35  ;;  %v1306_v35 = vld [vmem:[%s11638_s6 + $0x130] sm:$0xff] }
 0x145   :  { %6595 = vmatprep.subr.bf16.mxu0 %v8579_v0  ;;  %v1304_v0 = vld [vmem:[%s11638_s6 + $0x120] sm:$0xff]  ;;  %11857 = vst [vmem:[#allocation26_spill] sm:$0xff] %v8649_v38 }
 0x146   :  { %6697 = vmatpush1.bf16.msra.mxu1 %v8601_v17  ;;  %v8651_v17 = vpack.c.bf16 %v1046_v11, %v1044_v48  ;;  %v8673_v48 = vpack.c.bf16 %v1306_v35, %v1304_v0  ;;  %v8675_v11 = vpack.c.bf16 %v1045_v37, %v1043_v6  ;;  %v1313_v0 = vld [vmem:[%s11638_s6 + $0x168] sm:$0xff]  ;;  %v1047_v35 = vld [vmem:[%s11637_s5 + $0x160] sm:$0xff]  ;;  %v1049_v6 = vld [vmem:[%s11637_s5 + $0x170] sm:$0xff] }
 0x147   :  { %6699 = vmatprep.subr.bf16.mxu1 %v8613_v61  ;;  %v8685_v61 = vpack.c.bf16 %v1311_v52, %v1309_v1  ;;  %v1315_v37 = vld [vmem:[%s11638_s6 + $0x178] sm:$0xff]  ;;  %v1052_v1 = vld [vmem:[%s11637_s5 + $0x188] sm:$0xff] }
 0x148   :  { %6597 = vmatpush1.bf16.msra.mxu0 %v8603_v26  ;;  %11858 = vst [vmem:[#allocation27_spill] sm:$0xff] %v8651_v17  ;;  %11859 = vst [vmem:[#allocation28_spill] sm:$0xff] %v8673_v48  ;;  %v1310_v26 = vld [vmem:[%s11638_s6 + $0x150] sm:$0xff]  ;;  %v1054_v52 = vld [vmem:[%s11637_s5 + $0x198] sm:$0xff] }
 0x149   :  { %6599 = vmatprep.subr.bf16.mxu0 %v8615_v2  ;;  %11860 = vst [vmem:[#allocation29_spill] sm:$0xff] %v8675_v11  ;;  %v1308_v2 = vld [vmem:[%s11638_s6 + $0x140] sm:$0xff]  ;;  %11861 = vst [vmem:[#allocation30_spill] sm:$0xff] %v8685_v61 }
 0x14a   :  { %6701 = vmatpush1.bf16.msra.mxu1 %v8637_v60  ;;  %v8687_v60 = vpack.c.bf16 %v1050_v62, %v1048_v36  ;;  %v8709_v36 = vpack.c.bf16 %v1310_v26, %v1308_v2  ;;  %v8711_v62 = vpack.c.bf16 %v1049_v6, %v1047_v35  ;;  %v1051_v2 = vld [vmem:[%s11637_s5 + $0x180] sm:$0xff]  ;;  %v1053_v26 = vld [vmem:[%s11637_s5 + $0x190] sm:$0xff]  ;;  %v1317_v35 = vld [vmem:[%s11638_s6 + $0x188] sm:$0xff] }
 0x14b   :  { %6703 = vmatprep.subr.bf16.mxu1 %v8649_v38  ;;  %v8723_v38 = vpack.c.bf16 %v1054_v52, %v1052_v1  ;;  %v1316_v52 = vld [vmem:[%s11638_s6 + $0x180] sm:$0xff] }
 0x14c   :  { %6601 = vmatpush1.bf16.msra.mxu0 %v8639_v16  ;;  %11862 = vst [vmem:[#allocation31_spill] sm:$0xff] %v8687_v60  ;;  %11863 = vst [vmem:[#allocation32_spill] sm:$0xff] %v8709_v36  ;;  %v8718_v16 = vpack.c.bf16 %v1315_v37, %v1313_v0  ;;  %v1319_v0 = vld [vmem:[%s11638_s6 + $0x198] sm:$0xff]  ;;  %v8741_v37 = vpack.c.bf16 %v1053_v26, %v1051_v2  ;;  %v1321_v26 = vld [vmem:[%s11638_s6 + $0x1a8] sm:$0xff] }
 0x14d   :  { %6603 = vmatprep.subr.bf16.mxu0 %v8651_v17  ;;  %11864 = vst [vmem:[#allocation33_spill] sm:$0xff] %v8711_v62  ;;  %v1312_v17 = vld [vmem:[%s11638_s6 + $0x160] sm:$0xff]  ;;  %11866 = vst [vmem:[#allocation35_spill] sm:$0xff] %v8723_v38  ;;  %v8745_v1 = vpack.c.bf16 %v1319_v0, %v1317_v35  ;;  %v1058_v2 = vld [vmem:[%s11637_s5 + $0x1b8] sm:$0xff] }
 0x14e   :  { %6705 = vmatpush1.bf16.msra.mxu1 %v8673_v48  ;;  %11865 = vst [vmem:[#allocation34_spill] sm:$0xff] %v8718_v16  ;;  %v1314_v48 = vld [vmem:[%s11638_s6 + $0x170] sm:$0xff]  ;;  %11868 = vst [vmem:[#allocation37_spill] sm:$0xff] %v8741_v37  ;;  %v1055_v0 = vld [vmem:[%s11637_s5 + $0x1a0] sm:$0xff] }
 0x14f   :  { %6707 = vmatprep.subr.bf16.mxu1 %v8685_v61  ;;  %v8739_v6 = vpack.c.bf16 %v1314_v48, %v1312_v17  ;;  %11869 = vst [vmem:[#allocation38_spill] sm:$0xff] %v8745_v1  ;;  %v1056_v48 = vld [vmem:[%s11637_s5 + $0x1a8] sm:$0xff] }
 0x150   :  { %6605 = vmatpush1.bf16.msra.mxu0 %v8675_v11  ;;  %v8768_v35 = vpack.c.bf16 %v1058_v2, %v1056_v48  ;;  %v1320_v48 = vld [vmem:[%s11638_s6 + $0x1a0] sm:$0xff]  ;;  %v1322_v2 = vld [vmem:[%s11638_s6 + $0x1b0] sm:$0xff]  ;;  %v1339_v11 = vld [vmem:[%s11638_s6 + $0x238] sm:$0xff] }
 0x151   :  { %6607 = vmatprep.subr.bf16.mxu0 %v8687_v60  ;;  %11867 = vst [vmem:[#allocation36_spill] sm:$0xff] %v8739_v6  ;;  %v1318_v60 = vld [vmem:[%s11638_s6 + $0x190] sm:$0xff] }
 0x152   :  { %6709 = vmatpush1.bf16.msra.mxu1 %v8709_v36  ;;  %v8755_v17 = vpack.c.bf16 %v1318_v60, %v1316_v52  ;;  %11871 = vst [vmem:[#allocation40_spill] sm:$0xff] %v8768_v35  ;;  %v1323_v60 = vld [vmem:[%s11638_s6 + $0x1b8] sm:$0xff]  ;;  %v1057_v52 = vld [vmem:[%s11637_s5 + $0x1b0] sm:$0xff]  ;;  %v1337_v36 = vld [vmem:[%s11638_s6 + $0x228] sm:$0xff] }
 0x153   :  { %6711 = vmatprep.subr.bf16.mxu1 %v8718_v16  ;;  %v1074_v16 = vld [vmem:[%s11637_s5 + $0x238] sm:$0xff]  ;;  %v8921_v51 = vpack.c.bf16 %v1339_v11, %v1337_v36  ;;  %v1341_v11 = vld [vmem:[%s11638_s6 + $0x248] sm:$0xff] }
 0x154   :  { %6609 = vmatpush1.bf16.msra.mxu0 %v8711_v62  ;;  %11870 = vst [vmem:[#allocation39_spill] sm:$0xff] %v8755_v17  ;;  %v1343_v36 = vld [vmem:[%s11638_s6 + $0x258] sm:$0xff] }
 0x155   :  { %6611 = vmatprep.subr.bf16.mxu0 %v8723_v38 }
 0x156   :  { %6713 = vmatpush1.bf16.msra.mxu1 %v8739_v6 }
 0x157   :  { %6715 = vmatprep.subr.bf16.mxu1 %v8745_v1  ;;  %v8790_v1 = vpack.c.bf16 %v1322_v2, %v1320_v48  ;;  %v1327_v48 = vld [vmem:[%s11638_s6 + $0x1d8] sm:$0xff]  ;;  %v1059_v2 = vld [vmem:[%s11637_s5 + $0x1c0] sm:$0xff] }
 0x158   :  { %6613 = vmatpush1.bf16.msra.mxu0 %v8741_v37  ;;  %v8781_v37 = vpack.c.bf16 %v1057_v52, %v1055_v0  ;;  %v1325_v0 = vld [vmem:[%s11638_s6 + $0x1c8] sm:$0xff] }
 0x159   :  { %6615 = vmatprep.subr.bf16.mxu0 %v8768_v35  ;;  %11874 = vst [vmem:[#allocation43_spill] sm:$0xff] %v8790_v1 }
 0x15a   :  { %6717 = vmatpush1.bf16.msra.mxu1 %v8755_v17  ;;  %v8779_v17 = vpack.c.bf16 %v1323_v60, %v1321_v26  ;;  %11873 = vst [vmem:[#allocation42_spill] sm:$0xff] %v8781_v37  ;;  %v1060_v26 = vld [vmem:[%s11637_s5 + $0x1c8] sm:$0xff]  ;;  %v1062_v60 = vld [vmem:[%s11637_s5 + $0x1d8] sm:$0xff] }
 0x15b   :  { %v8804_v52 = vpack.c.bf16 %v1062_v60, %v1060_v26  ;;  %v1324_v26 = vld [vmem:[%s11638_s6 + $0x1c0] sm:$0xff]  ;;  %v1326_v60 = vld [vmem:[%s11638_s6 + $0x1d0] sm:$0xff] }
 0x15c   :  { %11872 = vst [vmem:[#allocation41_spill] sm:$0xff] %v8779_v17  ;;  %6719 = vmatprep.subr.bf16.mxu1 %v8779_v17  ;;  %6617 = vmatpush1.bf16.msra.mxu0 %v8781_v37  ;;  %v1061_v37 = vld [vmem:[%s11637_s5 + $0x1d0] sm:$0xff]  ;;  %v8815_v17 = vpack.c.bf16 %v1327_v48, %v1325_v0  ;;  %v1066_v0 = vld [vmem:[%s11637_s5 + $0x1f8] sm:$0xff]  ;;  %v1329_v48 = vld [vmem:[%s11638_s6 + $0x1e8] sm:$0xff] }
 0x15d   :  { %11875 = vst [vmem:[#allocation44_spill] sm:$0xff] %v8804_v52  ;;  %v8817_v35 = vpack.c.bf16 %v1061_v37, %v1059_v2  ;;  %6619 = vmatprep.subr.bf16.mxu0 %v8804_v52  ;;  %v1064_v37 = vld [vmem:[%s11637_s5 + $0x1e8] sm:$0xff] }
 0x15e   :  { %6721 = vmatpush1.bf16.msra.mxu1 %v8790_v1  ;;  %11876 = vst [vmem:[#allocation45_spill] sm:$0xff] %v8815_v17  ;;  %v8826_v1 = vpack.c.bf16 %v1326_v60, %v1324_v26  ;;  %v8840_v2 = vpack.c.bf16 %v1066_v0, %v1064_v37  ;;  %v1331_v26 = vld [vmem:[%s11638_s6 + $0x1f8] sm:$0xff]  ;;  %v1063_v60 = vld [vmem:[%s11637_s5 + $0x1e0] sm:$0xff]  ;;  %v1330_v0 = vld [vmem:[%s11638_s6 + $0x1f0] sm:$0xff] }
 0x15f   :  { %11877 = vst [vmem:[#allocation46_spill] sm:$0xff] %v8817_v35  ;;  %6723 = vmatprep.subr.bf16.mxu1 %v8815_v17  ;;  %v8851_v17 = vpack.c.bf16 %v1331_v26, %v1329_v48  ;;  %v1328_v37 = vld [vmem:[%s11638_s6 + $0x1e0] sm:$0xff]  ;;  %v1070_v48 = vld [vmem:[%s11637_s5 + $0x218] sm:$0xff]  ;;  %v1333_v26 = vld [vmem:[%s11638_s6 + $0x208] sm:$0xff] }
 0x160   :  { %11878 = vst [vmem:[#allocation47_spill] sm:$0xff] %v8826_v1  ;;  %6621 = vmatpush1.bf16.msra.mxu0 %v8817_v35  ;;  %11879 = vst [vmem:[#allocation48_spill] sm:$0xff] %v8840_v2  ;;  %v1065_v35 = vld [vmem:[%s11637_s5 + $0x1f0] sm:$0xff] }
 0x161   :  { %11880 = vst [vmem:[#allocation49_spill] sm:$0xff] %v8851_v17  ;;  %v8853_v52 = vpack.c.bf16 %v1065_v35, %v1063_v60  ;;  %6623 = vmatprep.subr.bf16.mxu0 %v8840_v2  ;;  %v1068_v35 = vld [vmem:[%s11637_s5 + $0x208] sm:$0xff] }
 0x162   :  { %6725 = vmatpush1.bf16.msra.mxu1 %v8826_v1  ;;  %v8862_v1 = vpack.c.bf16 %v1330_v0, %v1328_v37  ;;  %v8876_v60 = vpack.c.bf16 %v1070_v48, %v1068_v35  ;;  %v1335_v37 = vld [vmem:[%s11638_s6 + $0x218] sm:$0xff]  ;;  %v1067_v35 = vld [vmem:[%s11637_s5 + $0x200] sm:$0xff]  ;;  %v1069_v48 = vld [vmem:[%s11637_s5 + $0x210] sm:$0xff] }
 0x163   :  { %11881 = vst [vmem:[#allocation50_spill] sm:$0xff] %v8853_v52  ;;  %6727 = vmatprep.subr.bf16.mxu1 %v8851_v17  ;;  %v8881_v0 = vpack.c.bf16 %v1335_v37, %v1333_v26  ;;  %v1332_v26 = vld [vmem:[%s11638_s6 + $0x200] sm:$0xff]  ;;  %v1334_v37 = vld [vmem:[%s11638_s6 + $0x210] sm:$0xff]  ;;  %v8909_v53 = vpack.c.bf16 %v1069_v48, %v1067_v35 }
 0x164   :  { %11882 = vst [vmem:[#allocation51_spill] sm:$0xff] %v8862_v1  ;;  %6625 = vmatpush1.bf16.msra.mxu0 %v8853_v52  ;;  %11883 = vst [vmem:[#allocation52_spill] sm:$0xff] %v8876_v60  ;;  %v8911_v24 = vpack.c.bf16 %v1334_v37, %v1332_v26 }
 0x165   :  { %11884 = vst [vmem:[#allocation53_spill] sm:$0xff] %v8881_v0  ;;  %6627 = vmatprep.subr.bf16.mxu0 %v8876_v60 }
 0x166   :  { %6729 = vmatpush1.bf16.msra.mxu1 %v8862_v1 }
 0x167   :  { %6731 = vmatprep.subr.bf16.mxu1 %v8881_v0  ;;  %v1072_v0 = vld [vmem:[%s11637_s5 + $0x228] sm:$0xff] }
 0x168   :  { %v8919_v19 = vpack.c.bf16 %v1074_v16, %v1072_v0  ;;  %v1078_v16 = vld [vmem:[%s11637_s5 + $0x258] sm:$0xff] }
 0x1f2   :  { %v745_v52 = vpop.f32.mrb[8].mxu0  ;;  %v822_v2 = vpop.f32.mrb[8].mxu1 }
 0x1f3   :  { %v747_v17 = vpop.f32.mrb[9].mxu0  ;;  %v824_v38 = vpop.f32.mrb[9].mxu1 }
 0x1f6   :  { %v751_v6 = vpop.f32.mrb[10].mxu0  ;;  %v828_v60 = vpop.f32.mrb[10].mxu1 }
 0x1f7   :  { %v753_v62 = vpop.f32.mrb[11].mxu0  ;;  %v830_v61 = vpop.f32.mrb[11].mxu1 }
 0x1fa   :  { %v907_v1 = vpop.f32.mrb[12].mxu0 }
 0x1fb   :  { %v995_v54 = vmax.f32 %v745_v52, %v907_v1  ;;  %v909_v34 = vpop.f32.mrb[13].mxu0  ;;  %v1338_v1 = vld [vmem:[%s11638_s6 + $0x230] sm:$0xff] }
 0x1fc   :  { %v996_v44 = vmax.f32 %v747_v17, %v909_v34  ;;  %v1336_v34 = vld [vmem:[%s11638_s6 + $0x220] sm:$0xff]  ;;  %v1076_v17 = vld [vmem:[%s11637_s5 + $0x248] sm:$0xff]  ;;  %v984_v52 = vpop.f32.mrb[12].mxu1 }
 0x1fd   :  { %v8941_v0 = vmax.f32 %v822_v2, %v984_v52  ;;  %v986_v48 = vpop.f32.mrb[13].mxu1  ;;  %v8947_v50 = vpack.c.bf16 %v1338_v1, %v1336_v34  ;;  %v1075_v2 = vld [vmem:[%s11637_s5 + $0x240] sm:$0xff]  ;;  %v1082_v1 = vld [vmem:[%s11637_s5 + $0x278] sm:$0xff] }
 0x1fe   :  { %v913_v35 = vpop.f32.mrb[14].mxu0  ;;  %1178 = vmatprep.mubr.f32.mxu0 %v996_v44  ;;  %1436 = vmatprep.mubr.f32.mxu1 %v996_v44  ;;  %v998_v44 = vmax.f32 %v824_v38, %v986_v48  ;;  %v8959_v38 = vpack.c.bf16 %v1343_v36, %v1341_v11  ;;  %v1347_v52 = vld [vmem:[%s11638_s6 + $0x278] sm:$0xff]  ;;  %v8987_v36 = vpack.c.bf16 %v1342_v39, %v1340_v15  ;;  %v1079_v48 = vld [vmem:[%s11637_s5 + $0x260] sm:$0xff]  ;;  %v1349_v39 = vld [vmem:[%s11638_s6 + $0x288] sm:$0xff] }
 0x1ff   :  { %v999_v26 = vmax.f32 %v751_v6, %v913_v35  ;;  %v915_v37 = vpop.f32.mrb[15].mxu0  ;;  %1179 = vmatmul.mubr.f32.vlgmr.msra.gmra.mrb[16].mxu0 %v995_v54  ;;  %1437 = vmatmul.mubr.f32.vlgmr.msra.gmra.mrb[16].mxu1 %v995_v54  ;;  %v1077_v6 = vld [vmem:[%s11637_s5 + $0x250] sm:$0xff]  ;;  %v8957_v54 = vpack.c.bf16 %v1078_v16, %v1076_v17  ;;  %v1345_v17 = vld [vmem:[%s11638_s6 + $0x268] sm:$0xff]  ;;  %v1086_v15 = vld [vmem:[%s11637_s5 + $0x298] sm:$0xff] }
 0x200   :  { %v1000_v14 = vmax.f32 %v753_v62, %v915_v37  ;;  %6629 = vmatpush1.bf16.msra.mxu0 %v8909_v53  ;;  %6733 = vmatpush1.bf16.msra.mxu1 %v8911_v24  ;;  %11885 = vst [vmem:[#allocation54_spill] sm:$0xff] %v8959_v38  ;;  %v1080_v62 = vld [vmem:[%s11637_s5 + $0x268] sm:$0xff]  ;;  %v990_v34 = vpop.f32.mrb[14].mxu1  ;;  %11887 = vst [vmem:[#allocation56_spill] sm:$0xff] %v8987_v36  ;;  %v1344_v37 = vld [vmem:[%s11638_s6 + $0x260] sm:$0xff] }
 0x201   :  { %6631 = vmatprep.subr.bf16.mxu0 %v8919_v19  ;;  %6735 = vmatprep.subr.bf16.mxu1 %v8921_v51  ;;  %v8979_v35 = vmax.f32 %v828_v60, %v990_v34  ;;  %v992_v16 = vpop.f32.mrb[15].mxu1  ;;  %v1081_v60 = vld [vmem:[%s11637_s5 + $0x270] sm:$0xff] }
 0x202   :  { %1184 = vmatprep.mubr.f32.mxu0 %v1000_v14  ;;  %1442 = vmatprep.mubr.f32.mxu1 %v1000_v14  ;;  %v8981_v11 = vmax.f32 %v830_v61, %v992_v16  ;;  %v8985_v14 = vpack.c.bf16 %v1077_v6, %v1075_v2  ;;  %v8997_v61 = vpack.c.bf16 %v1082_v1, %v1080_v62  ;;  %v1346_v2 = vld [vmem:[%s11638_s6 + $0x270] sm:$0xff]  ;;  %v1084_v6 = vld [vmem:[%s11637_s5 + $0x288] sm:$0xff]  ;;  %v1351_v62 = vld [vmem:[%s11638_s6 + $0x298] sm:$0xff] }
 0x203   :  { %1185 = vmatmul.mubr.f32.gmra.mrb[18].mxu0 %v999_v26  ;;  %1443 = vmatmul.mubr.f32.gmra.mrb[18].mxu1 %v999_v26  ;;  %v8999_v26 = vpack.c.bf16 %v1347_v52, %v1345_v17  ;;  %v9023_v34 = vpack.c.bf16 %v1081_v60, %v1079_v48  ;;  %v9025_v1 = vpack.c.bf16 %v1346_v2, %v1344_v37  ;;  %v1083_v17 = vld [vmem:[%s11637_s5 + $0x280] sm:$0xff]  ;;  %v1085_v52 = vld [vmem:[%s11637_s5 + $0x290] sm:$0xff]  ;;  %v1088_v37 = vld [vmem:[%s11637_s5 + $0x2a8] sm:$0xff] }
 0x204   :  { %6633 = vmatpush1.bf16.msra.mxu0 %v8945_v43  ;;  %6737 = vmatpush1.bf16.msra.mxu1 %v8947_v50  ;;  %11886 = vst [vmem:[#allocation55_spill] sm:$0xff] %v8985_v14  ;;  %11888 = vst [vmem:[#allocation57_spill] sm:$0xff] %v8997_v61  ;;  %v9037_v16 = vpack.c.bf16 %v1351_v62, %v1349_v39  ;;  %v1348_v48 = vld [vmem:[%s11638_s6 + $0x280] sm:$0xff]  ;;  %v1350_v60 = vld [vmem:[%s11638_s6 + $0x290] sm:$0xff]  ;;  %v9059_v39 = vpack.c.bf16 %v1085_v52, %v1083_v17 }
 0x205   :  { %6635 = vmatprep.subr.bf16.mxu0 %v8957_v54  ;;  %6739 = vmatprep.subr.bf16.mxu1 %v8959_v38  ;;  %11889 = vst [vmem:[#allocation58_spill] sm:$0xff] %v8999_v26  ;;  %11890 = vst [vmem:[#allocation59_spill] sm:$0xff] %v9023_v34  ;;  %v1090_v2 = vld [vmem:[%s11637_s5 + $0x2b8] sm:$0xff]  ;;  %v9061_v62 = vpack.c.bf16 %v1350_v60, %v1348_v48  ;;  %v1352_v17 = vld [vmem:[%s11638_s6 + $0x2a0] sm:$0xff] }
 0x206   :  { %6189 = vmatprep.mubr.msk.f32.mxu0 %vm1107_vm8, %v998_v44  ;;  %6191 = vmatprep.mubr.msk.f32.mxu1 %vm1107_vm8, %v998_v44  ;;  %11891 = vst [vmem:[#allocation60_spill] sm:$0xff] %v9025_v1  ;;  %v9035_v44 = vpack.c.bf16 %v1086_v15, %v1084_v6  ;;  %11893 = vst [vmem:[#allocation62_spill] sm:$0xff] %v9037_v16  ;;  %v1353_v6 = vld [vmem:[%s11638_s6 + $0x2a8] sm:$0xff]  ;;  %v1355_v15 = vld [vmem:[%s11638_s6 + $0x2b8] sm:$0xff] }
 0x207   :  { %11894 = vst [vmem:[#allocation63_spill] sm:$0xff] %v9059_v39  ;;  %11895 = vst [vmem:[#allocation64_spill] sm:$0xff] %v9061_v62  ;;  %v1354_v52 = vld [vmem:[%s11638_s6 + $0x2b0] sm:$0xff]  ;;  %v1092_v48 = vld [vmem:[%s11637_s5 + $0x2c8] sm:$0xff] }
 0x208   :  { %6637 = vmatpush1.bf16.msra.mxu0 %v8985_v14  ;;  %6741 = vmatpush1.bf16.msra.mxu1 %v8987_v36  ;;  %11892 = vst [vmem:[#allocation61_spill] sm:$0xff] %v9035_v44  ;;  %v9071_v36 = vpack.c.bf16 %v1090_v2, %v1088_v37  ;;  %v1094_v60 = vld [vmem:[%s11637_s5 + $0x2d8] sm:$0xff]  ;;  %v1357_v37 = vld [vmem:[%s11638_s6 + $0x2c8] sm:$0xff] }
 0x209   :  { %6639 = vmatprep.subr.bf16.mxu0 %v8997_v61  ;;  %6743 = vmatprep.subr.bf16.mxu1 %v8999_v26  ;;  %v1087_v26 = vld [vmem:[%s11637_s5 + $0x2a0] sm:$0xff]  ;;  %v1089_v61 = vld [vmem:[%s11637_s5 + $0x2b0] sm:$0xff]  ;;  %v1359_v2 = vld [vmem:[%s11638_s6 + $0x2d8] sm:$0xff] }
 0x20a   :  { %11896 = vst [vmem:[#allocation65_spill] sm:$0xff] %v9071_v36 }
 0x20c   :  { %6641 = vmatpush1.bf16.msra.mxu0 %v9023_v34  ;;  %6745 = vmatpush1.bf16.msra.mxu1 %v9025_v1  ;;  %v9073_v34 = vpack.c.bf16 %v1355_v15, %v1353_v6  ;;  %v9095_v6 = vpack.c.bf16 %v1089_v61, %v1087_v26  ;;  %v9097_v15 = vpack.c.bf16 %v1354_v52, %v1352_v17  ;;  %v1356_v61 = vld [vmem:[%s11638_s6 + $0x2c0] sm:$0xff]  ;;  %v1358_v26 = vld [vmem:[%s11638_s6 + $0x2d0] sm:$0xff]  ;;  %v1096_v17 = vld [vmem:[%s11637_s5 + $0x2e8] sm:$0xff] }
 0x20d   :  { %6643 = vmatprep.subr.bf16.mxu0 %v9035_v44  ;;  %6747 = vmatprep.subr.bf16.mxu1 %v9037_v16  ;;  %v1091_v16 = vld [vmem:[%s11637_s5 + $0x2c0] sm:$0xff]  ;;  %v1093_v44 = vld [vmem:[%s11637_s5 + $0x2d0] sm:$0xff]  ;;  %v9107_v1 = vpack.c.bf16 %v1094_v60, %v1092_v48  ;;  %v1098_v52 = vld [vmem:[%s11637_s5 + $0x2f8] sm:$0xff] }
 0x20e   :  { %11897 = vst [vmem:[#allocation66_spill] sm:$0xff] %v9073_v34  ;;  %11898 = vst [vmem:[#allocation67_spill] sm:$0xff] %v9095_v6  ;;  %v1361_v48 = vld [vmem:[%s11638_s6 + $0x2e8] sm:$0xff]  ;;  %v1363_v60 = vld [vmem:[%s11638_s6 + $0x2f8] sm:$0xff] }
 0x20f   :  { %11899 = vst [vmem:[#allocation68_spill] sm:$0xff] %v9097_v15  ;;  %11900 = vst [vmem:[#allocation69_spill] sm:$0xff] %v9107_v1 }
 0x210   :  { %6645 = vmatpush1.bf16.msra.mxu0 %v9059_v39  ;;  %6749 = vmatpush1.bf16.msra.mxu1 %v9061_v62  ;;  %v9109_v39 = vpack.c.bf16 %v1359_v2, %v1357_v37  ;;  %v9131_v37 = vpack.c.bf16 %v1093_v44, %v1091_v16  ;;  %v9133_v2 = vpack.c.bf16 %v1358_v26, %v1356_v61  ;;  %v1360_v44 = vld [vmem:[%s11638_s6 + $0x2e0] sm:$0xff]  ;;  %v1362_v16 = vld [vmem:[%s11638_s6 + $0x2f0] sm:$0xff]  ;;  %v1100_v61 = vld [vmem:[%s11637_s5 + $0x308] sm:$0xff] }
 0x211   :  { %6647 = vmatprep.subr.bf16.mxu0 %v9071_v36  ;;  %6751 = vmatprep.subr.bf16.mxu1 %v9073_v34  ;;  %v1095_v34 = vld [vmem:[%s11637_s5 + $0x2e0] sm:$0xff]  ;;  %v1097_v36 = vld [vmem:[%s11637_s5 + $0x2f0] sm:$0xff]  ;;  %v9143_v62 = vpack.c.bf16 %v1098_v52, %v1096_v17  ;;  %v1102_v26 = vld [vmem:[%s11637_s5 + $0x318] sm:$0xff] }
 0x212   :  { %11901 = vst [vmem:[#allocation70_spill] sm:$0xff] %v9109_v39  ;;  %11902 = vst [vmem:[#allocation71_spill] sm:$0xff] %v9131_v37  ;;  %v1365_v17 = vld [vmem:[%s11638_s6 + $0x308] sm:$0xff]  ;;  %v1367_v52 = vld [vmem:[%s11638_s6 + $0x318] sm:$0xff] }
 0x213   :  { %11903 = vst [vmem:[#allocation72_spill] sm:$0xff] %v9133_v2  ;;  %11904 = vst [vmem:[#allocation73_spill] sm:$0xff] %v9143_v62 }
 0x214   :  { %6649 = vmatpush1.bf16.msra.mxu0 %v9095_v6  ;;  %6753 = vmatpush1.bf16.msra.mxu1 %v9097_v15  ;;  %v9145_v6 = vpack.c.bf16 %v1363_v60, %v1361_v48  ;;  %v9167_v48 = vpack.c.bf16 %v1097_v36, %v1095_v34  ;;  %v9169_v60 = vpack.c.bf16 %v1362_v16, %v1360_v44  ;;  %v1364_v36 = vld [vmem:[%s11638_s6 + $0x300] sm:$0xff]  ;;  %v1366_v34 = vld [vmem:[%s11638_s6 + $0x310] sm:$0xff]  ;;  %v1104_v44 = vld [vmem:[%s11637_s5 + $0x328] sm:$0xff] }
 0x215   :  { %6651 = vmatprep.subr.bf16.mxu0 %v9107_v1  ;;  %6755 = vmatprep.subr.bf16.mxu1 %v9109_v39  ;;  %v1099_v39 = vld [vmem:[%s11637_s5 + $0x300] sm:$0xff]  ;;  %v1101_v1 = vld [vmem:[%s11637_s5 + $0x310] sm:$0xff]  ;;  %v9179_v15 = vpack.c.bf16 %v1102_v26, %v1100_v61  ;;  %v1106_v16 = vld [vmem:[%s11637_s5 + $0x338] sm:$0xff] }
 0x216   :  { %11905 = vst [vmem:[#allocation74_spill] sm:$0xff] %v9145_v6  ;;  %11906 = vst [vmem:[#allocation75_spill] sm:$0xff] %v9167_v48  ;;  %v1369_v61 = vld [vmem:[%s11638_s6 + $0x328] sm:$0xff]  ;;  %v1371_v26 = vld [vmem:[%s11638_s6 + $0x338] sm:$0xff] }
 0x217   :  { %11907 = vst [vmem:[#allocation76_spill] sm:$0xff] %v9169_v60  ;;  %11908 = vst [vmem:[#allocation77_spill] sm:$0xff] %v9179_v15 }
 0x218   :  { %6653 = vmatpush1.bf16.msra.mxu0 %v9131_v37  ;;  %6757 = vmatpush1.bf16.msra.mxu1 %v9133_v2  ;;  %v9181_v37 = vpack.c.bf16 %v1367_v52, %v1365_v17  ;;  %v9203_v17 = vpack.c.bf16 %v1101_v1, %v1099_v39  ;;  %v9205_v52 = vpack.c.bf16 %v1366_v34, %v1364_v36  ;;  %v1368_v1 = vld [vmem:[%s11638_s6 + $0x320] sm:$0xff]  ;;  %v1370_v39 = vld [vmem:[%s11638_s6 + $0x330] sm:$0xff] }
 0x219   :  { %6655 = vmatprep.subr.bf16.mxu0 %v9143_v62  ;;  %6759 = vmatprep.subr.bf16.mxu1 %v9145_v6  ;;  %v1103_v6 = vld [vmem:[%s11637_s5 + $0x320] sm:$0xff]  ;;  %v9212_v62 = vpack.c.bf16 %v1106_v16, %v1104_v44  ;;  %v9214_v2 = vpack.c.bf16 %v1371_v26, %v1369_v61  ;;  %v9229_v34 = vpack.c.bf16 %v1370_v39, %v1368_v1  ;;  %v7558_v44 = vld [vmem:[%s11639_s7 + $0x13c] ss:$12 sps:$4 sm:$0xff]  }
 0x21a   :  { %11909 = vst [vmem:[#allocation78_spill] sm:$0xff] %v9181_v37  ;;  %11910 = vst [vmem:[#allocation79_spill] sm:$0xff] %v9203_v17  ;;  %v7556_v16 = vld [vmem:[%s11639_s7 + $0x138] ss:$12 sps:$4 sm:$0xff]   ;;  %v7562_v61 = vld [vmem:[%s11639_s7 + $0x154] ss:$12 sps:$4 sm:$0xff]  }
 0x21b   :  { %11911 = vst [vmem:[#allocation80_spill] sm:$0xff] %v9205_v52  ;;  %11912 = vst [vmem:[#allocation81_spill] sm:$0xff] %v9212_v62  ;;  %v7560_v26 = vld [vmem:[%s11639_s7 + $0x150] ss:$12 sps:$4 sm:$0xff]   ;;  %v7563_v1 = vld [vmem:[%s11639_s7 + $0x158] ss:$12 sps:$4 sm:$0xff]  }
 0x21c   :  { %6657 = vmatpush1.bf16.msra.mxu0 %v9167_v48  ;;  %6761 = vmatpush1.bf16.msra.mxu1 %v9169_v60  ;;  %11913 = vst [vmem:[#allocation82_spill] sm:$0xff] %v9214_v2  ;;  %v1105_v60 = vld [vmem:[%s11637_s5 + $0x330] sm:$0xff]  ;;  %11915 = vst [vmem:[#allocation84_spill] sm:$0xff] %v9229_v34 }
 0x21d   :  { %6659 = vmatprep.subr.bf16.mxu0 %v9179_v15  ;;  %6763 = vmatprep.subr.bf16.mxu1 %v9181_v37  ;;  %v9227_v36 = vpack.c.bf16 %v1105_v60, %v1103_v6  ;;  %v11916_v6 = vmov 0   ;;  %v7559_v60 = vld [vmem:[%s11639_s7 + $0x140] ss:$12 sps:$4 sm:$0xff]   ;;  %v7567_v39 = vld [vmem:[%s11639_s7 + $0x170] ss:$12 sps:$4 sm:$0xff]  }
 0x21f   :  { %11914 = vst [vmem:[#allocation83_spill] sm:$0xff] %v9227_v36 }
 0x220   :  { %6661 = vmatpush1.bf16.msra.mxu0 %v9203_v17  ;;  %6765 = vmatpush1.bf16.msra.mxu1 %v9205_v52 }
 0x221   :  { %6663 = vmatprep.subr.bf16.mxu0 %v9212_v62  ;;  %6767 = vmatprep.subr.bf16.mxu1 %v9214_v2 }
 0x224   :  { %6665 = vmatpush1.bf16.msra.mxu0 %v9227_v36  ;;  %6769 = vmatpush1.bf16.msra.mxu1 %v9229_v34 }
 0x225   :  { %1867 = vmatprep.subr.bf16.mxu0 %v7558_v44  ;;  %1910 = vmatprep.subr.bf16.mxu1 %v11916_v6  ;;  %v7570_v44 = vld [vmem:[%s11639_s7 + $0x184] ss:$12 sps:$4 sm:$0xff]  }
 0x227   :  { %1256 = vmatmul.mubr.f32.vlgmr.msra.gmra.mrb[16].mxu0 %v8941_v0  ;;  %1514 = vmatmul.mubr.f32.vlgmr.msra.gmra.mrb[16].mxu1 %v8941_v0  ;;  %v7566_v0 = vld [vmem:[%s11639_s7 + $0x16c] ss:$12 sps:$4 sm:$0xff]  }
 0x228   :  { %6190 = vmatprep.mubr.msk.f32.mxu0 %vm1107_vm8, %v8981_v11  ;;  %6192 = vmatprep.mubr.msk.f32.mxu1 %vm1107_vm8, %v8981_v11  ;;  %v7564_v11 = vld [vmem:[%s11639_s7 + $0x168] ss:$12 sps:$4 sm:$0xff]  }
 0x229   :  { %1868 = vmatpush1.bf16.msra.mxu0 %v7556_v16  ;;  %1911 = vmatpush1.bf16.msra.mxu1 %v7559_v60  ;;  %v7571_v16 = vld [vmem:[%s11639_s7 + $0x188] ss:$12 sps:$4 sm:$0xff]  }
 0x22a   :  { %1869 = vmatprep.subr.bf16.mxu0 %v7562_v61  ;;  %1912 = vmatprep.subr.bf16.mxu1 %v11916_v6  ;;  %v7574_v60 = vld [vmem:[%s11639_s7 + $0x19c] ss:$12 sps:$4 sm:$0xff]   ;;  %v7572_v61 = vld [vmem:[%s11639_s7 + $0x198] ss:$12 sps:$4 sm:$0xff]  }
 0x22b   :  { %1262 = vmatmul.mubr.f32.gmra.mrb[18].mxu0 %v8979_v35  ;;  %1520 = vmatmul.mubr.f32.gmra.mrb[18].mxu1 %v8979_v35  ;;  %v7568_v35 = vld [vmem:[%s11639_s7 + $0x180] ss:$12 sps:$4 sm:$0xff]  }
 0x22d   :  { %1870 = vmatpush1.bf16.msra.mxu0 %v7560_v26  ;;  %1913 = vmatpush1.bf16.msra.mxu1 %v7563_v1  ;;  %v7575_v26 = vld [vmem:[%s11639_s7 + $0x1a0] ss:$12 sps:$4 sm:$0xff]  }
 0x22e   :  { %1871 = vmatprep.subr.bf16.mxu0 %v7566_v0  ;;  %1914 = vmatprep.subr.bf16.mxu1 %v11916_v6  ;;  %v7578_v1 = vld [vmem:[%s11639_s7 + $0x1b4] ss:$12 sps:$4 sm:$0xff]   ;;  %v7576_v0 = vld [vmem:[%s11639_s7 + $0x1b0] ss:$12 sps:$4 sm:$0xff]  }
 0x231   :  { %1872 = vmatpush1.bf16.msra.mxu0 %v7564_v11  ;;  %1915 = vmatpush1.bf16.msra.mxu1 %v7567_v39  ;;  %v7579_v11 = vld [vmem:[%s11639_s7 + $0x1b8] ss:$12 sps:$4 sm:$0xff]  }
 0x232   :  { %1873 = vmatprep.subr.bf16.mxu0 %v7570_v44  ;;  %1916 = vmatprep.subr.bf16.mxu1 %v11916_v6  ;;  %v7582_v39 = vld [vmem:[%s11639_s7 + $0x1cc] ss:$12 sps:$4 sm:$0xff]   ;;  %v7580_v44 = vld [vmem:[%s11639_s7 + $0x1c8] ss:$12 sps:$4 sm:$0xff]  }
 0x235   :  { %1874 = vmatpush1.bf16.msra.mxu0 %v7568_v35  ;;  %1917 = vmatpush1.bf16.msra.mxu1 %v7571_v16  ;;  %v7583_v35 = vld [vmem:[%s11639_s7 + $0x1d0] ss:$12 sps:$4 sm:$0xff]  }
 0x236   :  { %1875 = vmatprep.subr.bf16.mxu0 %v7574_v60  ;;  %1918 = vmatprep.subr.bf16.mxu1 %v11916_v6  ;;  %v7586_v16 = vld [vmem:[%s11639_s7 + $0x1e4] ss:$12 sps:$4 sm:$0xff]   ;;  %v7584_v60 = vld [vmem:[%s11639_s7 + $0x1e0] ss:$12 sps:$4 sm:$0xff]  }
 0x239   :  { %1876 = vmatpush1.bf16.msra.mxu0 %v7572_v61  ;;  %1919 = vmatpush1.bf16.msra.mxu1 %v7575_v26  ;;  %v7587_v61 = vld [vmem:[%s11639_s7 + $0x1e8] ss:$12 sps:$4 sm:$0xff]  }
 0x23a   :  { %1877 = vmatprep.subr.bf16.mxu0 %v7578_v1  ;;  %1920 = vmatprep.subr.bf16.mxu1 %v11916_v6  ;;  %v7590_v26 = vld [vmem:[%s11639_s7 + $0x1fc] ss:$12 sps:$4 sm:$0xff]   ;;  %v7588_v1 = vld [vmem:[%s11639_s7 + $0x1f8] ss:$12 sps:$4 sm:$0xff]  }
 0x23d   :  { %1878 = vmatpush1.bf16.msra.mxu0 %v7576_v0  ;;  %1921 = vmatpush1.bf16.msra.mxu1 %v7579_v11  ;;  %v7591_v0 = vld [vmem:[%s11639_s7 + $0x200] ss:$12 sps:$4 sm:$0xff]  }
 0x23e   :  { %1879 = vmatprep.subr.bf16.mxu0 %v7582_v39  ;;  %1922 = vmatprep.subr.bf16.mxu1 %v11916_v6  ;;  %v7594_v11 = vld [vmem:[%s11639_s7 + $0x214] ss:$12 sps:$4 sm:$0xff]   ;;  %v7592_v39 = vld [vmem:[%s11639_s7 + $0x210] ss:$12 sps:$4 sm:$0xff]  }
 0x241   :  { %1880 = vmatpush1.bf16.msra.mxu0 %v7580_v44  ;;  %1923 = vmatpush1.bf16.msra.mxu1 %v7583_v35  ;;  %v7595_v44 = vld [vmem:[%s11639_s7 + $0x218] ss:$12 sps:$4 sm:$0xff]  }
 0x242   :  { %1881 = vmatprep.subr.bf16.mxu0 %v7586_v16  ;;  %1924 = vmatprep.subr.bf16.mxu1 %v11916_v6  ;;  %v7598_v35 = vld [vmem:[%s11639_s7 + $0x22c] ss:$12 sps:$4 sm:$0xff]   ;;  %v7596_v16 = vld [vmem:[%s11639_s7 + $0x228] ss:$12 sps:$4 sm:$0xff]  }
 0x245   :  { %1882 = vmatpush1.bf16.msra.mxu0 %v7584_v60  ;;  %1925 = vmatpush1.bf16.msra.mxu1 %v7587_v61  ;;  %v7599_v60 = vld [vmem:[%s11639_s7 + $0x230] ss:$12 sps:$4 sm:$0xff]  }
 0x246   :  { %1883 = vmatprep.subr.bf16.mxu0 %v7590_v26  ;;  %1926 = vmatprep.subr.bf16.mxu1 %v11916_v6  ;;  %v7602_v61 = vld [vmem:[%s11639_s7 + $0x244] ss:$12 sps:$4 sm:$0xff]   ;;  %v7600_v26 = vld [vmem:[%s11639_s7 + $0x240] ss:$12 sps:$4 sm:$0xff]  }
 0x249   :  { %1884 = vmatpush1.bf16.msra.mxu0 %v7588_v1  ;;  %1927 = vmatpush1.bf16.msra.mxu1 %v7591_v0  ;;  %v7603_v1 = vld [vmem:[%s11639_s7 + $0x248] ss:$12 sps:$4 sm:$0xff]  }
 0x24a   :  { %1928 = vmatprep.subr.bf16.mxu1 %v11916_v6  ;;  %1885 = vmatprep.subr.bf16.mxu0 %v7594_v11  ;;  %v7606_v0 = vld [vmem:[%s11639_s7 + $0x25c] ss:$12 sps:$4 sm:$0xff]   ;;  %v7604_v11 = vld [vmem:[%s11639_s7 + $0x258] ss:$12 sps:$4 sm:$0xff]  }
 0x24d   :  { %1886 = vmatpush1.bf16.msra.mxu0 %v7592_v39  ;;  %1929 = vmatpush1.bf16.msra.mxu1 %v7595_v44  ;;  %v7607_v39 = vld [vmem:[%s11639_s7 + $0x260] ss:$12 sps:$4 sm:$0xff]   ;;  %v7610_v44 = vld [vmem:[%s11639_s7 + $0x4] ss:$12 sps:$4 sm:$0xff]  }
 0x24e   :  { %1930 = vmatprep.subr.bf16.mxu1 %v11916_v6  ;;  %1887 = vmatprep.subr.bf16.mxu0 %v7598_v35 }
 0x251   :  { %1888 = vmatpush1.bf16.msra.mxu0 %v7596_v16  ;;  %1931 = vmatpush1.bf16.msra.mxu1 %v7599_v60 }
 0x252   :  { %1932 = vmatprep.subr.bf16.mxu1 %v11916_v6  ;;  %1889 = vmatprep.subr.bf16.mxu0 %v7602_v61 }
 0x255   :  { %1890 = vmatpush1.bf16.msra.mxu0 %v7600_v26  ;;  %1933 = vmatpush1.bf16.msra.mxu1 %v7603_v1 }
 0x256   :  { %1891 = vmatprep.subr.bf16.mxu0 %v7606_v0  ;;  %1934 = vmatprep.subr.bf16.mxu1 %v11916_v6 }
 0x259   :  { %1892 = vmatpush1.bf16.msra.mxu0 %v7604_v11  ;;  %1935 = vmatpush1.bf16.msra.mxu1 %v7607_v39 }
 0x25a   :  { %2204 = vmatprep.subr.bf16.mxu1 %v11916_v6  ;;  %2161 = vmatprep.subr.bf16.mxu0 %v7610_v44 }
 0x2fa   :  { %v1257_v35 = vpop.f32.mrb[16].mxu0  ;;  %v1515_v16 = vpop.f32.mrb[16].mxu1 }
 0x2fb   :  { %v1526_v60 = vmax.f32 %v1257_v35, %v1515_v16  ;;  %v1259_v61 = vpop.f32.mrb[17].mxu0  ;;  %v1517_v26 = vpop.f32.mrb[17].mxu1 }
 0x2fc   :  { %v1527_v1 = vmax.f32 %v1259_v61, %v1517_v26 }
 0x2fd   :  { %v1530_v39 = vmax.f32 %v1526_v60, 0.0  ;;  %v7615_v60 = vld [vmem:[%s11639_s7 + $0x20] ss:$12 sps:$4 sm:$0xff]  }
 0x2fe   :  { %v1263_v34 = vpop.f32.mrb[18].mxu0  ;;  %v1521_v36 = vpop.f32.mrb[18].mxu1  ;;  %v1531_v17 = vmax.f32 %v1527_v1, 0.0  ;;  %v7618_v1 = vld [vmem:[%s11639_s7 + $0x34] ss:$12 sps:$4 sm:$0xff]  }
 0x2ff   :  { %v1528_v0 = vmax.f32 %v1263_v34, %v1521_v36  ;;  %v1265_v2 = vpop.f32.mrb[19].mxu0  ;;  %v1523_v62 = vpop.f32.mrb[19].mxu1  ;;  %v7612_v34 = vld [vmem:[%s11639_s7 + $0x18] ss:$12 sps:$4 sm:$0xff]  }
 0x300   :  { %v1529_v11 = vmax.f32 %v1265_v2, %v1523_v62  ;;  %v7608_v2 = vld [vmem:[%s11639_s7] ss:$12 sps:$4 sm:$0xff]  }
 0x301   :  { %v1532_v52 = vmax.f32 %v1528_v0, 0.0  ;;  %v7616_v0 = vld [vmem:[%s11639_s7 + $0x30] ss:$12 sps:$4 sm:$0xff]  }
 0x302   :  { %v1533_v37 = vmax.f32 %v1529_v11, 0.0  ;;  %v7619_v11 = vld [vmem:[%s11639_s7 + $0x38] ss:$12 sps:$4 sm:$0xff]  }
 0x303   :  { %v9377_v15 = vpack.c.bf16 %v1532_v52, %v1530_v39  ;;  %v7614_v52 = vld [vmem:[%s11639_s7 + $0x1c] ss:$12 sps:$4 sm:$0xff]   ;;  %v7622_v39 = vld [vmem:[%s11639_s7 + $0x4c] ss:$12 sps:$4 sm:$0xff]  }
 0x304   :  { %v9379_v48 = vpack.c.bf16 %v1533_v37, %v1531_v17  ;;  %v7611_v37 = vld [vmem:[%s11639_s7 + $0x8] ss:$12 sps:$4 sm:$0xff]  }
 0x305   :  { %v1643_v44 = vshll.u32 %v9377_v15, 16  ;;  %v1641_v36 = vshrl.u32 %v9377_v15, 16 }
 0x306   :  { %v1650_v35 = vshll.u32 %v9379_v48, 16  ;;  %v1648_v61 = vshrl.u32 %v9379_v48, 16 }
 0x307   :  { %v1645_v16 = vrot.slane %v1643_v44, 1  ;;  %v7620_v44 = vld [vmem:[%s11639_s7 + $0x48] ss:$12 sps:$4 sm:$0xff]  }
 0x308   :  { %v1652_v26 = vrot.slane %v1650_v35, 1  ;;  %v7623_v35 = vld [vmem:[%s11639_s7 + $0x50] ss:$12 sps:$4 sm:$0xff]  }
 0x309   :  { %v1646_v17 = vor.u32 %v1645_v16, %v1641_v36  ;;  %v7626_v16 = vld [vmem:[%s11639_s7 + $0x64] ss:$12 sps:$4 sm:$0xff]   ;;  %v7630_v36 = vld [vmem:[%s11639_s7 + $0x7c] ss:$12 sps:$4 sm:$0xff]  }
 0x30a   :  { %v1653_v62 = vor.u32 %v1652_v26, %v1648_v61  ;;  %v7624_v61 = vld [vmem:[%s11639_s7 + $0x60] ss:$12 sps:$4 sm:$0xff]   ;;  %v7627_v26 = vld [vmem:[%s11639_s7 + $0x68] ss:$12 sps:$4 sm:$0xff]  }
 0x30c   :  { %6232 = vmatprep.mubr.msk.bf16.mxu0 %vm1863_vm9, %v1653_v62  ;;  %6233 = vmatprep.mubr.msk.bf16.mxu1 %vm1863_vm9, %v1653_v62  ;;  %v7628_v62 = vld [vmem:[%s11639_s7 + $0x78] ss:$12 sps:$4 sm:$0xff]  }
 0x30d   :  { %1900 = vmatmul.mubr.bf16.vlgmr.msra.gmra.mrb[20].mxu0 %v1646_v17  ;;  %1943 = vmatmul.mubr.bf16.vlgmr.msra.gmra.mrb[20].mxu1 %v1646_v17  ;;  %v7632_v17 = vld [vmem:[%s11639_s7 + $0x90] ss:$12 sps:$4 sm:$0xff]  }
 0x30e   :  { %2162 = vmatpush1.bf16.msra.mxu0 %v7608_v2  ;;  %2205 = vmatpush1.bf16.msra.mxu1 %v7611_v37  ;;  %v7631_v2 = vld [vmem:[%s11639_s7 + $0x80] ss:$12 sps:$4 sm:$0xff]  }
 0x30f   :  { %6273 = vmatprep.mubr.msk.bf16.mxu0 %vm1863_vm9, %v9379_v48  ;;  %6274 = vmatprep.mubr.msk.bf16.mxu1 %vm1863_vm9, %v9379_v48  ;;  %v7634_v37 = vld [vmem:[%s11639_s7 + $0x94] ss:$12 sps:$4 sm:$0xff]  }
 0x310   :  { %2163 = vmatprep.subr.bf16.mxu0 %v7614_v52  ;;  %2206 = vmatprep.subr.bf16.mxu1 %v11916_v6  ;;  %v7635_v52 = vld [vmem:[%s11639_s7 + $0x98] ss:$12 sps:$4 sm:$0xff]  }
 0x312   :  { %2164 = vmatpush1.bf16.msra.mxu0 %v7612_v34  ;;  %2207 = vmatpush1.bf16.msra.mxu1 %v7615_v60  ;;  %v7638_v34 = vld [vmem:[%s11639_s7 + $0xac] ss:$12 sps:$4 sm:$0xff]   ;;  %v7636_v60 = vld [vmem:[%s11639_s7 + $0xa8] ss:$12 sps:$4 sm:$0xff]  }
 0x313   :  { %2165 = vmatprep.subr.bf16.mxu0 %v7618_v1  ;;  %2208 = vmatprep.subr.bf16.mxu1 %v11916_v6  ;;  %v7639_v1 = vld [vmem:[%s11639_s7 + $0xb0] ss:$12 sps:$4 sm:$0xff]  }
 0x316   :  { %2166 = vmatpush1.bf16.msra.mxu0 %v7616_v0  ;;  %2209 = vmatpush1.bf16.msra.mxu1 %v7619_v11  ;;  %v7642_v0 = vld [vmem:[%s11639_s7 + $0xc4] ss:$12 sps:$4 sm:$0xff]   ;;  %v7640_v11 = vld [vmem:[%s11639_s7 + $0xc0] ss:$12 sps:$4 sm:$0xff]  }
 0x317   :  { %2167 = vmatprep.subr.bf16.mxu0 %v7622_v39  ;;  %2210 = vmatprep.subr.bf16.mxu1 %v11916_v6  ;;  %v7643_v39 = vld [vmem:[%s11639_s7 + $0xc8] ss:$12 sps:$4 sm:$0xff]  }
 0x31a   :  { %2168 = vmatpush1.bf16.msra.mxu0 %v7620_v44  ;;  %2211 = vmatpush1.bf16.msra.mxu1 %v7623_v35  ;;  %v7646_v44 = vld [vmem:[%s11639_s7 + $0xdc] ss:$12 sps:$4 sm:$0xff]   ;;  %v7644_v35 = vld [vmem:[%s11639_s7 + $0xd8] ss:$12 sps:$4 sm:$0xff]  }
 0x31b   :  { %2169 = vmatprep.subr.bf16.mxu0 %v7626_v16  ;;  %2212 = vmatprep.subr.bf16.mxu1 %v11916_v6  ;;  %v7647_v16 = vld [vmem:[%s11639_s7 + $0xe0] ss:$12 sps:$4 sm:$0xff]  }
 0x31e   :  { %2170 = vmatpush1.bf16.msra.mxu0 %v7624_v61  ;;  %2213 = vmatpush1.bf16.msra.mxu1 %v7627_v26  ;;  %v7650_v61 = vld [vmem:[%s11639_s7 + $0xf4] ss:$12 sps:$4 sm:$0xff]   ;;  %v7648_v26 = vld [vmem:[%s11639_s7 + $0xf0] ss:$12 sps:$4 sm:$0xff]  }
 0x31f   :  { %2171 = vmatprep.subr.bf16.mxu0 %v7630_v36  ;;  %2214 = vmatprep.subr.bf16.mxu1 %v11916_v6  ;;  %v7651_v36 = vld [vmem:[%s11639_s7 + $0xf8] ss:$12 sps:$4 sm:$0xff]  }
 0x322   :  { %2172 = vmatpush1.bf16.msra.mxu0 %v7628_v62  ;;  %2215 = vmatpush1.bf16.msra.mxu1 %v7631_v2  ;;  %v7654_v62 = vld [vmem:[%s11639_s7 + $0x10c] ss:$12 sps:$4 sm:$0xff]   ;;  %v7652_v2 = vld [vmem:[%s11639_s7 + $0x108] ss:$12 sps:$4 sm:$0xff]  }
 0x323   :  { %2173 = vmatprep.subr.bf16.mxu0 %v7634_v37  ;;  %2216 = vmatprep.subr.bf16.mxu1 %v11916_v6  ;;  %v7655_v37 = vld [vmem:[%s11639_s7 + $0x110] ss:$12 sps:$4 sm:$0xff]  }
 0x326   :  { %2174 = vmatpush1.bf16.msra.mxu0 %v7632_v17  ;;  %2217 = vmatpush1.bf16.msra.mxu1 %v7635_v52  ;;  %v7658_v17 = vld [vmem:[%s11639_s7 + $0x124] ss:$12 sps:$4 sm:$0xff]   ;;  %v7656_v52 = vld [vmem:[%s11639_s7 + $0x120] ss:$12 sps:$4 sm:$0xff]  }
 0x327   :  { %2175 = vmatprep.subr.bf16.mxu0 %v7638_v34  ;;  %2218 = vmatprep.subr.bf16.mxu1 %v11916_v6  ;;  %v7659_v34 = vld [vmem:[%s11639_s7 + $0x128] ss:$12 sps:$4 sm:$0xff]  }
 0x32a   :  { %2176 = vmatpush1.bf16.msra.mxu0 %v7636_v60  ;;  %2219 = vmatpush1.bf16.msra.mxu1 %v7639_v1  ;;  %v7662_v60 = vld [vmem:[%s11639_s7 + $0x274] ss:$12 sps:$4 sm:$0xff]   ;;  %v7660_v1 = vld [vmem:[%s11639_s7 + $0x270] ss:$12 sps:$4 sm:$0xff]  }
 0x32b   :  { %2177 = vmatprep.subr.bf16.mxu0 %v7642_v0  ;;  %2220 = vmatprep.subr.bf16.mxu1 %v11916_v6  ;;  %v7663_v0 = vld [vmem:[%s11639_s7 + $0x278] ss:$12 sps:$4 sm:$0xff]  }
 0x32e   :  { %2178 = vmatpush1.bf16.msra.mxu0 %v7640_v11  ;;  %2221 = vmatpush1.bf16.msra.mxu1 %v7643_v39  ;;  %v2300_v11 = vrot.slane %v9379_v48, 1  ;;  %v7666_v39 = vld [vmem:[%s11639_s7 + $0x28c] ss:$12 sps:$4 sm:$0xff]   ;;  %v7667_v48 = vld [vmem:[%s11639_s7 + $0x290] ss:$12 sps:$4 sm:$0xff]  }
 0x32f   :  { %2179 = vmatprep.subr.bf16.mxu0 %v7646_v44  ;;  %2222 = vmatprep.subr.bf16.mxu1 %v11916_v6  ;;  %v7664_v44 = vld [vmem:[%s11639_s7 + $0x288] ss:$12 sps:$4 sm:$0xff]  }
 0x332   :  { %2180 = vmatpush1.bf16.msra.mxu0 %v7644_v35  ;;  %2223 = vmatpush1.bf16.msra.mxu1 %v7647_v16  ;;  %v7670_v35 = vld [vmem:[%s11639_s7 + $0x2a4] ss:$12 sps:$4 sm:$0xff]   ;;  %v7668_v16 = vld [vmem:[%s11639_s7 + $0x2a0] ss:$12 sps:$4 sm:$0xff]  }
 0x333   :  { %2181 = vmatprep.subr.bf16.mxu0 %v7650_v61  ;;  %2224 = vmatprep.subr.bf16.mxu1 %v11916_v6  ;;  %v7671_v61 = vld [vmem:[%s11639_s7 + $0x2a8] ss:$12 sps:$4 sm:$0xff]  }
 0x336   :  { %2182 = vmatpush1.bf16.msra.mxu0 %v7648_v26  ;;  %2225 = vmatpush1.bf16.msra.mxu1 %v7651_v36  ;;  %v7674_v26 = vld [vmem:[%s11639_s7 + $0x2bc] ss:$12 sps:$4 sm:$0xff]   ;;  %v7672_v36 = vld [vmem:[%s11639_s7 + $0x2b8] ss:$12 sps:$4 sm:$0xff]  }
 0x337   :  { %2183 = vmatprep.subr.bf16.mxu0 %v7654_v62  ;;  %2226 = vmatprep.subr.bf16.mxu1 %v11916_v6  ;;  %v7675_v62 = vld [vmem:[%s11639_s7 + $0x2c0] ss:$12 sps:$4 sm:$0xff]  }
 0x33a   :  { %2184 = vmatpush1.bf16.msra.mxu0 %v7652_v2  ;;  %2227 = vmatpush1.bf16.msra.mxu1 %v7655_v37  ;;  %v7678_v2 = vld [vmem:[%s11639_s7 + $0x2d4] ss:$12 sps:$4 sm:$0xff]   ;;  %v7676_v37 = vld [vmem:[%s11639_s7 + $0x2d0] ss:$12 sps:$4 sm:$0xff]  }
 0x33b   :  { %2185 = vmatprep.subr.bf16.mxu0 %v7658_v17  ;;  %2228 = vmatprep.subr.bf16.mxu1 %v11916_v6  ;;  %v7679_v17 = vld [vmem:[%s11639_s7 + $0x2d8] ss:$12 sps:$4 sm:$0xff]  }
 0x33e   :  { %2186 = vmatpush1.bf16.msra.mxu0 %v7656_v52  ;;  %2229 = vmatpush1.bf16.msra.mxu1 %v7659_v34  ;;  %v7682_v52 = vld [vmem:[%s11639_s7 + $0x2ec] ss:$12 sps:$4 sm:$0xff]   ;;  %v7680_v34 = vld [vmem:[%s11639_s7 + $0x2e8] ss:$12 sps:$4 sm:$0xff]  }
 0x33f   :  { %2513 = vmatprep.subr.bf16.mxu0 %v7662_v60  ;;  %2556 = vmatprep.subr.bf16.mxu1 %v11916_v6  ;;  %v7683_v60 = vld [vmem:[%s11639_s7 + $0x2f0] ss:$12 sps:$4 sm:$0xff]  }
 0x341   :  { %2194 = vmatmul.mubr.bf16.vlgmr.msra.gmra.mrb[20].mxu0 %v9377_v15  ;;  %2237 = vmatmul.mubr.bf16.vlgmr.msra.gmra.mrb[24].mxu1 %v9377_v15 }
 0x342   :  { %2514 = vmatpush1.bf16.msra.mxu0 %v7660_v1  ;;  %6314 = vmatprep.mubr.msk.bf16.mxu0 %vm1863_vm9, %v2300_v11  ;;  %v7686_v1 = vld [vmem:[%s11639_s7 + $0x304] ss:$12 sps:$4 sm:$0xff]  }
 0x343   :  { %2557 = vmatpush1.bf16.msra.mxu1 %v7663_v0  ;;  %6315 = vmatprep.mubr.msk.bf16.mxu1 %vm1863_vm9, %v2300_v11  ;;  %v7684_v0 = vld [vmem:[%s11639_s7 + $0x300] ss:$12 sps:$4 sm:$0xff]   ;;  %v7687_v11 = vld [vmem:[%s11639_s7 + $0x308] ss:$12 sps:$4 sm:$0xff]  }
 0x344   :  { %2515 = vmatprep.subr.bf16.mxu0 %v7666_v39  ;;  %2558 = vmatprep.subr.bf16.mxu1 %v11916_v6  ;;  %v7690_v39 = vld [vmem:[%s11639_s7 + $0x31c] ss:$12 sps:$4 sm:$0xff]  }
 0x346   :  { %2516 = vmatpush1.bf16.msra.mxu0 %v7664_v44  ;;  %v7688_v44 = vld [vmem:[%s11639_s7 + $0x318] ss:$12 sps:$4 sm:$0xff]  }
 0x347   :  { %2559 = vmatpush1.bf16.msra.mxu1 %v7667_v48  ;;  %2517 = vmatprep.subr.bf16.mxu0 %v7670_v35  ;;  %v7691_v48 = vld [vmem:[%s11639_s7 + $0x320] ss:$12 sps:$4 sm:$0xff]  }
 0x348   :  { %2560 = vmatprep.subr.bf16.mxu1 %v11916_v6  ;;  %v7694_v35 = vld [vmem:[%s11639_s7 + $0x334] ss:$12 sps:$4 sm:$0xff]  }
 0x34a   :  { %2518 = vmatpush1.bf16.msra.mxu0 %v7668_v16  ;;  %v7692_v16 = vld [vmem:[%s11639_s7 + $0x330] ss:$12 sps:$4 sm:$0xff]  }
 0x34b   :  { %2561 = vmatpush1.bf16.msra.mxu1 %v7671_v61  ;;  %2519 = vmatprep.subr.bf16.mxu0 %v7674_v26  ;;  %v7695_v61 = vld [vmem:[%s11639_s7 + $0x338] ss:$12 sps:$4 sm:$0xff]  }
 0x34c   :  { %2562 = vmatprep.subr.bf16.mxu1 %v11916_v6  ;;  %v7698_v26 = vld [vmem:[%s11639_s7 + $0x34c] ss:$12 sps:$4 sm:$0xff]  }
 0x34e   :  { %2520 = vmatpush1.bf16.msra.mxu0 %v7672_v36  ;;  %v7696_v36 = vld [vmem:[%s11639_s7 + $0x348] ss:$12 sps:$4 sm:$0xff]  }
 0x34f   :  { %2563 = vmatpush1.bf16.msra.mxu1 %v7675_v62  ;;  %2521 = vmatprep.subr.bf16.mxu0 %v7678_v2  ;;  %v7699_v62 = vld [vmem:[%s11639_s7 + $0x350] ss:$12 sps:$4 sm:$0xff]  }
 0x350   :  { %2564 = vmatprep.subr.bf16.mxu1 %v11916_v6  ;;  %v7702_v2 = vld [vmem:[%s11639_s7 + $0x364] ss:$12 sps:$4 sm:$0xff]  }
 0x352   :  { %2522 = vmatpush1.bf16.msra.mxu0 %v7676_v37  ;;  %v7700_v37 = vld [vmem:[%s11639_s7 + $0x360] ss:$12 sps:$4 sm:$0xff]  }
 0x353   :  { %2565 = vmatpush1.bf16.msra.mxu1 %v7679_v17  ;;  %2523 = vmatprep.subr.bf16.mxu0 %v7682_v52  ;;  %v7703_v17 = vld [vmem:[%s11639_s7 + $0x368] ss:$12 sps:$4 sm:$0xff]  }
 0x354   :  { %2566 = vmatprep.subr.bf16.mxu1 %v11916_v6  ;;  %v7706_v52 = vld [vmem:[%s11639_s7 + $0x37c] ss:$12 sps:$4 sm:$0xff]  }
 0x356   :  { %2524 = vmatpush1.bf16.msra.mxu0 %v7680_v34  ;;  %v7704_v34 = vld [vmem:[%s11639_s7 + $0x378] ss:$12 sps:$4 sm:$0xff]  }
 0x357   :  { %2567 = vmatpush1.bf16.msra.mxu1 %v7683_v60  ;;  %2525 = vmatprep.subr.bf16.mxu0 %v7686_v1  ;;  %v7707_v60 = vld [vmem:[%s11639_s7 + $0x380] ss:$12 sps:$4 sm:$0xff]  }
 0x358   :  { %2568 = vmatprep.subr.bf16.mxu1 %v11916_v6  ;;  %v7710_v1 = vld [vmem:[%s11639_s7 + $0x394] ss:$12 sps:$4 sm:$0xff]  }
 0x35a   :  { %2526 = vmatpush1.bf16.msra.mxu0 %v7684_v0  ;;  %v7708_v0 = vld [vmem:[%s11639_s7 + $0x390] ss:$12 sps:$4 sm:$0xff]  }
 0x35b   :  { %2569 = vmatpush1.bf16.msra.mxu1 %v7687_v11  ;;  %2527 = vmatprep.subr.bf16.mxu0 %v7690_v39  ;;  %v7711_v11 = vld [vmem:[%s11639_s7 + $0x398] ss:$12 sps:$4 sm:$0xff]   ;;  %v2299_v39 = vrot.slane %v9377_v15, 1  ;;  %v2603_v15 = vld [vmem:[%s11640_s8] sm:$0x7] }
 0x35c   :  { %2570 = vmatprep.subr.bf16.mxu1 %v11916_v6 }
 0x35e   :  { %2528 = vmatpush1.bf16.msra.mxu0 %v7688_v44  ;;  %v11917_v44 = vmov 0.0  }
 0x35f   :  { %2571 = vmatpush1.bf16.msra.mxu1 %v7691_v48  ;;  %2529 = vmatprep.subr.bf16.mxu0 %v7694_v35 }
 0x360   :  { %2572 = vmatprep.subr.bf16.mxu1 %v11916_v6 }
 0x362   :  { %2530 = vmatpush1.bf16.msra.mxu0 %v7692_v16 }
 0x363   :  { %2573 = vmatpush1.bf16.msra.mxu1 %v7695_v61  ;;  %2531 = vmatprep.subr.bf16.mxu0 %v7698_v26 }
 0x364   :  { %2574 = vmatprep.subr.bf16.mxu1 %v11916_v6 }
 0x366   :  { %2532 = vmatpush1.bf16.msra.mxu0 %v7696_v36 }
 0x367   :  { %2575 = vmatpush1.bf16.msra.mxu1 %v7699_v62  ;;  %2533 = vmatprep.subr.bf16.mxu0 %v7702_v2 }
 0x368   :  { %2576 = vmatprep.subr.bf16.mxu1 %v11916_v6 }
 0x36a   :  { %2534 = vmatpush1.bf16.msra.mxu0 %v7700_v37 }
 0x36b   :  { %2577 = vmatpush1.bf16.msra.mxu1 %v7703_v17  ;;  %2535 = vmatprep.subr.bf16.mxu0 %v7706_v52  ;;  %v11918_v52 = vsub.s32 0, %v8205_v63 }
 0x36c   :  { %2578 = vmatprep.subr.bf16.mxu1 %v11916_v6 }
 0x36e   :  { %2536 = vmatpush1.bf16.msra.mxu0 %v7704_v34  ;;  %v9660_v34 = vrot.slane %v2603_v15, %v11918_v52 }
 0x36f   :  { %2579 = vmatpush1.bf16.msra.mxu1 %v7707_v60  ;;  %2537 = vmatprep.subr.bf16.mxu0 %v7710_v1  ;;  %v11920_v1 = vsub.s32 1, %v8205_v63 }
 0x370   :  { %2580 = vmatprep.subr.bf16.mxu1 %v11916_v6  ;;  %11919 = vst [vmem:[#allocation85_spill] sm:$0xff] %v9660_v34 }
 0x372   :  { %2538 = vmatpush1.bf16.msra.mxu0 %v7708_v0  ;;  %v9664_v0 = vrot.slane %v2603_v15, %v11920_v1  ;;  %v2931_v1 = vld [vmem:[%s11643_s11 + $0x8] sm:$0xff] }
 0x373   :  { %2581 = vmatpush1.bf16.msra.mxu1 %v7711_v11 }
 0x374   :  { %11921 = vst [vmem:[#allocation86_spill] sm:$0xff] %v9664_v0 }
 0x375   :  { %2546 = vmatmul.mubr.bf16.vlgmr.msra.gmra.mrb[20].mxu0 %v2299_v39 }
 0x376   :  { %2589 = vmatmul.mubr.bf16.vlgmr.msra.gmra.mrb[28].mxu1 %v2299_v39  ;;  %2850 = vmatprep.mubr.f32.mxu0 %v11917_v44 }
 0x377   :  { %2705 = vmatprep.mubr.f32.mxu1 %v11917_v44 }
 0x3e0   :  { %v1944_v48 = vpop.f32.mrb[20].mxu1 }
 0x3e1   :  { %v1946_v35 = vpop.f32.mrb[21].mxu1 }
 0x3e2   :  { %v1947_v16 = vpop.f32.mrb[22].mxu1  ;;  %v11922_v35 = vsub.s32 2, %v8205_v63 }
 0x3e3   :  { %v1949_v61 = vpop.f32.mrb[23].mxu1 }
 0x414   :  { %v2238_v26 = vpop.f32.mrb[24].mxu1 }
 0x415   :  { %v2239_v36 = vadd.f32 %v2238_v26, %v1944_v48  ;;  %v2240_v62 = vpop.f32.mrb[25].mxu1 }
 0x416   :  { %v2241_v2 = vpop.f32.mrb[26].mxu1 }
 0x417   :  { %v2242_v37 = vadd.f32 %v2241_v2, %v1947_v16  ;;  %v2243_v17 = vpop.f32.mrb[27].mxu1  ;;  %v9668_v16 = vrot.slane %v2603_v15, %v11922_v35 }
 0x419   :  { %11923 = vst [vmem:[#allocation87_spill] sm:$0xff] %v9668_v16 }
 0x448   :  { %v2547_v60 = vpop.f32.mrb[20].mxu0 }
 0x449   :  { %v2590_v11 = vpop.f32.mrb[28].mxu1  ;;  %v2549_v39 = vpop.f32.mrb[21].mxu0  ;;  %v2620_v62 = vadd.f32 %v9660_v34, %v2547_v60  ;;  %v11924_v60 = vmov 0 }
 0x44a   :  { %v2599_v48 = vadd.f32 %v2590_v11, %v2239_v36  ;;  %v2592_v61 = vpop.f32.mrb[29].mxu1  ;;  %v2551_v26 = vpop.f32.mrb[22].mxu0  ;;  %v2933_v36 = vld [vmem:[%s11643_s11 + $0x18] sm:$0xff]  ;;  %v2621_v63 = vadd.f32 %v9664_v0, %v2549_v39  ;;  %v11925_v60 = vsel %vm9681_vm11, 4294967295, %v11924_v60  ;;  %v2932_v39 = vld [vmem:[%s11643_s11 + $0x10] sm:$0xff] }
 0x44b   :  { %v2623_v2 = vadd.f32 %v9660_v34, %v2551_v26  ;;  %v2593_v17 = vpop.f32.mrb[30].mxu1  ;;  %v2553_v52 = vpop.f32.mrb[23].mxu0  ;;  %11926 = vst [vmem:[#allocation88_spill] sm:$0xff] %v11925_v60  ;;  %v9687_v38 = vpack.c.bf16 %v2933_v36, %v2931_v1  ;;  %v3167_v36 = vld [vmem:[%s11644_s12 + $0x18] sm:$0xff] }
 0x44c   :  { %v2602_v15 = vadd.f32 %v2593_v17, %v2242_v37  ;;  %v2624_v11 = vadd.f32 %v9664_v0, %v2553_v52  ;;  %v2595_v35 = vpop.f32.mrb[31].mxu1  ;;  %v2622_v26 = vadd.f32 %v9668_v16, %v2599_v48  ;;  %v2930_v37 = vld [vmem:[%s11643_s11] sm:$0xff]  ;;  %v2935_v48 = vld [vmem:[%s11643_s11 + $0x28] sm:$0xff]  ;;  %v11741_v17 = vmov 0.0|0.0  }
 0x44d   :  { %v6773_v61 = vpack.c.bf16 %v2623_v2, %v2620_v62  ;;  %11927 = vst [vmem:[#allocation89_spill] sm:$0xff] %v9687_v38  ;;  %v2937_v2 = vld [vmem:[%s11643_s11 + $0x38] sm:$0xff]  ;;  %v3165_v52 = vld [vmem:[%s11644_s12 + $0x8] sm:$0xff]  ;;  %v9720_v1 = vpack.c.bf16 %v2932_v39, %v2930_v37  ;;  %v3164_v37 = vld [vmem:[%s11644_s12] sm:$0xff] }
 0x44e   :  { %v2625_v34 = vadd.f32 %v9668_v16, %v2602_v15  ;;  %v6770_v14 = vpack.c.bf16 %v2624_v11, %v2621_v63  ;;  %v9725_v63 = vpack.c.bf16 %v2937_v2, %v2935_v48  ;;  %v2934_v15 = vld [vmem:[%s11643_s11 + $0x20] sm:$0xff]  ;;  %v2936_v11 = vld [vmem:[%s11643_s11 + $0x30] sm:$0xff]  ;;  %v2939_v35 = vld [vmem:[%s11643_s11 + $0x48] sm:$0xff] }
 0x44f   :  { %11928 = vst [vmem:[#allocation90_spill] sm:$0xff] %v9720_v1  ;;  %v3166_v39 = vld [vmem:[%s11644_s12 + $0x10] sm:$0xff]  ;;  %v3169_v48 = vld [vmem:[%s11644_s12 + $0x28] sm:$0xff]  ;;  %v9758_v2 = vpack.c.bf16 %v2936_v11, %v2934_v15  ;;  %v2945_v11 = vld [vmem:[%s11643_s11 + $0x78] sm:$0xff] }
 0x450   :  { %v6777_v62 = vpack.c.bf16 %v2625_v34, %v2622_v26  ;;  %6772 = vmatprep.subr.msk.bf16.mxu1 %vm9681_vm11, %v6770_v14  ;;  %6782 = vmatprep.subr.msk.bf16.mxu0 %vm9681_vm11, %v6770_v14  ;;  %v2626_v34 = vld [vmem:[%s11641_s9] sm:$0x1f]  ;;  %11929 = vst [vmem:[#allocation91_spill] sm:$0xff] %v9725_v63  ;;  %v9746_v26 = vpack.c.bf16 %v3167_v36, %v3165_v52  ;;  %v3171_v52 = vld [vmem:[%s11644_s12 + $0x38] sm:$0xff]  ;;  %v2943_v15 = vld [vmem:[%s11643_s11 + $0x68] sm:$0xff] }
 0x451   :  { %6775 = vmatpush1.bf16.msk.msra.mxu1 %vm9681_vm11, %v6773_v61  ;;  %6785 = vmatpush1.bf16.msk.msra.mxu0 %vm9681_vm11, %v6773_v61  ;;  %v2782_v14 = vld [vmem:[%s11642_s10] sm:$0x1f]  ;;  %v2941_v61 = vld [vmem:[%s11643_s11 + $0x58] sm:$0xff]  ;;  %11931 = vst [vmem:[#allocation93_spill] sm:$0xff] %v9758_v2 }
 0x452   :  { %6776 = vmatprep.subr.bf16.mxu1 %v11741_v17  ;;  %6791 = vmatprep.subr.bf16.mxu0 %v9687_v38  ;;  %11930 = vst [vmem:[#allocation92_spill] sm:$0xff] %v9746_v26  ;;  %v9764_v36 = vpack.c.bf16 %v2941_v61, %v2939_v35  ;;  %v9783_v35 = vpack.c.bf16 %v3166_v39, %v3164_v37  ;;  %v3175_v39 = vld [vmem:[%s11644_s12 + $0x58] sm:$0xff]  ;;  %v3000_v38 = vld [vmem:[%s11643_s11 + $0x230] sm:$0xff] }
 0x453   :  { %v9786_v61 = vpack.c.bf16 %v3171_v52, %v3169_v48  ;;  %v9804_v48 = vpack.c.bf16 %v2945_v11, %v2943_v15  ;;  %v2942_v52 = vld [vmem:[%s11643_s11 + $0x60] sm:$0xff] }
 0x454   :  { %6318 = vmatmul.mubr.msk.f32.vlgmr.msra.gmra.mrb[32].mxu1 %vm2627_vm12, %v2626_v34  ;;  %6323 = vmatmul.mubr.msk.f32.vlgmr.msra.gmra.mrb[24].mxu0 %vm2627_vm12, %v2782_v14  ;;  %11932 = vst [vmem:[#allocation94_spill] sm:$0xff] %v9764_v36  ;;  %11933 = vst [vmem:[#allocation95_spill] sm:$0xff] %v9783_v35 }
 0x455   :  { %6779 = vmatpush3.bf16.msk.msra.mxu1 %vm9681_vm11, %v6777_v62  ;;  %6478 = vmatprep.mubr.msk.f32.mxu1 %vm7933_vm13, %v11917_v44  ;;  %11934 = vst [vmem:[#allocation96_spill] sm:$0xff] %v9786_v61  ;;  %11936 = vst [vmem:[#allocation98_spill] sm:$0xff] %v9804_v48 }
 0x456   :  { %6786 = vmatprep.subr.bf16.mxu1 %v11741_v17  ;;  %6793 = vmatpush1.bf16.msra.mxu0 %v9720_v1  ;;  %v2938_v17 = vld [vmem:[%s11643_s11 + $0x40] sm:$0xff]  ;;  %v2940_v1 = vld [vmem:[%s11643_s11 + $0x50] sm:$0xff] }
 0x457   :  { %6795 = vmatprep.subr.bf16.mxu0 %v9725_v63  ;;  %v3170_v63 = vld [vmem:[%s11644_s12 + $0x30] sm:$0xff]  ;;  %v9798_v37 = vpack.c.bf16 %v2940_v1, %v2938_v17  ;;  %v2947_v17 = vld [vmem:[%s11643_s11 + $0x88] sm:$0xff]  ;;  %v2949_v1 = vld [vmem:[%s11643_s11 + $0x98] sm:$0xff] }
 0x458   :  { %6479 = vmatmul.mubr.msk.f32.vlgmr.msra.gmra.mrb[34].mxu1 %vm2627_vm12, %v2626_v34  ;;  %v3168_v34 = vld [vmem:[%s11644_s12 + $0x20] sm:$0xff] }
 0x459   :  { %6789 = vmatpush3.bf16.msk.msra.mxu1 %vm9681_vm11, %v6777_v62  ;;  %6485 = vmatprep.mubr.msk.f32.mxu1 %vm7933_vm13, %v11917_v44  ;;  %v3173_v62 = vld [vmem:[%s11644_s12 + $0x48] sm:$0xff]  ;;  %11935 = vst [vmem:[#allocation97_spill] sm:$0xff] %v9798_v37  ;;  %v9820_v15 = vpack.c.bf16 %v3170_v63, %v3168_v34  ;;  %v3179_v34 = vld [vmem:[%s11644_s12 + $0x78] sm:$0xff] }
 0x45a   :  { %6879 = vmatprep.subr.bf16.mxu1 %v9746_v26  ;;  %6797 = vmatpush1.bf16.msra.mxu0 %v9758_v2  ;;  %v2944_v2 = vld [vmem:[%s11643_s11 + $0x70] sm:$0xff]  ;;  %v9823_v11 = vpack.c.bf16 %v3175_v39, %v3173_v62  ;;  %v9841_v62 = vpack.c.bf16 %v2949_v1, %v2947_v17  ;;  %v2946_v39 = vld [vmem:[%s11643_s11 + $0x80] sm:$0xff] }
 0x45b   :  { %6799 = vmatprep.subr.bf16.mxu0 %v9764_v36  ;;  %11937 = vst [vmem:[#allocation99_spill] sm:$0xff] %v9820_v15  ;;  %v3174_v36 = vld [vmem:[%s11644_s12 + $0x50] sm:$0xff]  ;;  %v9835_v63 = vpack.c.bf16 %v2944_v2, %v2942_v52  ;;  %v2951_v2 = vld [vmem:[%s11643_s11 + $0xa8] sm:$0xff]  ;;  %v2953_v52 = vld [vmem:[%s11643_s11 + $0xb8] sm:$0xff] }
 0x45c   :  { %6486 = vmatmul.mubr.msk.f32.vlgmr.msra.gmra.mrb[36].mxu1 %vm2627_vm12, %v2782_v14  ;;  %11938 = vst [vmem:[#allocation100_spill] sm:$0xff] %v9823_v11  ;;  %v3172_v14 = vld [vmem:[%s11644_s12 + $0x40] sm:$0xff]  ;;  %11940 = vst [vmem:[#allocation102_spill] sm:$0xff] %v9841_v62 }
 0x45d   :  { %6881 = vmatpush1.bf16.msra.mxu1 %v9783_v35  ;;  %v3177_v35 = vld [vmem:[%s11644_s12 + $0x68] sm:$0xff]  ;;  %11939 = vst [vmem:[#allocation101_spill] sm:$0xff] %v9835_v63  ;;  %v9856_v17 = vpack.c.bf16 %v3174_v36, %v3172_v14  ;;  %v9877_v14 = vpack.c.bf16 %v2953_v52, %v2951_v2  ;;  %v2998_v26 = vld [vmem:[%s11643_s11 + $0x220] sm:$0xff] }
 0x45e   :  { %6883 = vmatprep.subr.bf16.mxu1 %v9786_v61  ;;  %6801 = vmatpush1.bf16.msra.mxu0 %v9798_v37  ;;  %v2948_v37 = vld [vmem:[%s11643_s11 + $0x90] sm:$0xff]  ;;  %v9859_v1 = vpack.c.bf16 %v3179_v34, %v3177_v35  ;;  %v3183_v35 = vld [vmem:[%s11644_s12 + $0x98] sm:$0xff]  ;;  %v2950_v34 = vld [vmem:[%s11643_s11 + $0xa0] sm:$0xff] }
 0x45f   :  { %6803 = vmatprep.subr.bf16.mxu0 %v9804_v48  ;;  %11941 = vst [vmem:[#allocation103_spill] sm:$0xff] %v9856_v17  ;;  %v3176_v48 = vld [vmem:[%s11644_s12 + $0x60] sm:$0xff]  ;;  %v3178_v61 = vld [vmem:[%s11644_s12 + $0x70] sm:$0xff]  ;;  %v9871_v36 = vpack.c.bf16 %v2948_v37, %v2946_v39  ;;  %11944 = vst [vmem:[#allocation106_spill] sm:$0xff] %v9877_v14 }
 0x460   :  { %11942 = vst [vmem:[#allocation104_spill] sm:$0xff] %v9859_v1  ;;  %v2955_v37 = vld [vmem:[%s11643_s11 + $0xc8] sm:$0xff]  ;;  %v2957_v39 = vld [vmem:[%s11643_s11 + $0xd8] sm:$0xff]  ;;  %v9892_v2 = vpack.c.bf16 %v3178_v61, %v3176_v48 }
 0x461   :  { %6885 = vmatpush1.bf16.msra.mxu1 %v9820_v15  ;;  %v3181_v15 = vld [vmem:[%s11644_s12 + $0x88] sm:$0xff]  ;;  %11943 = vst [vmem:[#allocation105_spill] sm:$0xff] %v9871_v36  ;;  %v3187_v48 = vld [vmem:[%s11644_s12 + $0xb8] sm:$0xff] }
 0x462   :  { %6887 = vmatprep.subr.bf16.mxu1 %v9823_v11  ;;  %6805 = vmatpush1.bf16.msra.mxu0 %v9835_v63  ;;  %v2952_v63 = vld [vmem:[%s11643_s11 + $0xb0] sm:$0xff]  ;;  %11945 = vst [vmem:[#allocation107_spill] sm:$0xff] %v9892_v2  ;;  %v9895_v52 = vpack.c.bf16 %v3183_v35, %v3181_v15  ;;  %v9913_v15 = vpack.c.bf16 %v2957_v39, %v2955_v37  ;;  %v2954_v35 = vld [vmem:[%s11643_s11 + $0xc0] sm:$0xff] }
 0x463   :  { %6807 = vmatprep.subr.bf16.mxu0 %v9841_v62  ;;  %v3180_v62 = vld [vmem:[%s11644_s12 + $0x80] sm:$0xff]  ;;  %v3182_v11 = vld [vmem:[%s11644_s12 + $0x90] sm:$0xff]  ;;  %v9907_v61 = vpack.c.bf16 %v2952_v63, %v2950_v34  ;;  %v2959_v63 = vld [vmem:[%s11643_s11 + $0xe8] sm:$0xff] }
 0x464   :  { %11946 = vst [vmem:[#allocation108_spill] sm:$0xff] %v9895_v52  ;;  %11948 = vst [vmem:[#allocation110_spill] sm:$0xff] %v9913_v15  ;;  %v2961_v34 = vld [vmem:[%s11643_s11 + $0xf8] sm:$0xff]  ;;  %v9928_v37 = vpack.c.bf16 %v3182_v11, %v3180_v62 }
 0x465   :  { %6889 = vmatpush1.bf16.msra.mxu1 %v9856_v17  ;;  %v3185_v17 = vld [vmem:[%s11644_s12 + $0xa8] sm:$0xff]  ;;  %11947 = vst [vmem:[#allocation109_spill] sm:$0xff] %v9907_v61  ;;  %v3191_v62 = vld [vmem:[%s11644_s12 + $0xd8] sm:$0xff] }
 0x466   :  { %6891 = vmatprep.subr.bf16.mxu1 %v9859_v1  ;;  %6809 = vmatpush1.bf16.msra.mxu0 %v9871_v36  ;;  %v2956_v36 = vld [vmem:[%s11643_s11 + $0xd0] sm:$0xff]  ;;  %11949 = vst [vmem:[#allocation111_spill] sm:$0xff] %v9928_v37  ;;  %v9931_v39 = vpack.c.bf16 %v3187_v48, %v3185_v17  ;;  %v9949_v17 = vpack.c.bf16 %v2961_v34, %v2959_v63  ;;  %v2958_v48 = vld [vmem:[%s11643_s11 + $0xe0] sm:$0xff] }
 0x467   :  { %6811 = vmatprep.subr.bf16.mxu0 %v9877_v14  ;;  %v3184_v14 = vld [vmem:[%s11644_s12 + $0xa0] sm:$0xff]  ;;  %v3186_v1 = vld [vmem:[%s11644_s12 + $0xb0] sm:$0xff]  ;;  %v9943_v11 = vpack.c.bf16 %v2956_v36, %v2954_v35  ;;  %v2963_v36 = vld [vmem:[%s11643_s11 + $0x108] sm:$0xff] }
 0x468   :  { %11950 = vst [vmem:[#allocation112_spill] sm:$0xff] %v9931_v39  ;;  %11952 = vst [vmem:[#allocation114_spill] sm:$0xff] %v9949_v17  ;;  %v2965_v35 = vld [vmem:[%s11643_s11 + $0x118] sm:$0xff]  ;;  %v9964_v63 = vpack.c.bf16 %v3186_v1, %v3184_v14 }
 0x469   :  { %6893 = vmatpush1.bf16.msra.mxu1 %v9892_v2  ;;  %v3189_v2 = vld [vmem:[%s11644_s12 + $0xc8] sm:$0xff]  ;;  %11951 = vst [vmem:[#allocation113_spill] sm:$0xff] %v9943_v11  ;;  %v3195_v14 = vld [vmem:[%s11644_s12 + $0xf8] sm:$0xff] }
 0x46a   :  { %6895 = vmatprep.subr.bf16.mxu1 %v9895_v52  ;;  %6813 = vmatpush1.bf16.msra.mxu0 %v9907_v61  ;;  %v2960_v61 = vld [vmem:[%s11643_s11 + $0xf0] sm:$0xff]  ;;  %11953 = vst [vmem:[#allocation115_spill] sm:$0xff] %v9964_v63  ;;  %v9967_v34 = vpack.c.bf16 %v3191_v62, %v3189_v2  ;;  %v9985_v2 = vpack.c.bf16 %v2965_v35, %v2963_v36  ;;  %v2962_v62 = vld [vmem:[%s11643_s11 + $0x100] sm:$0xff] }
 0x46b   :  { %6815 = vmatprep.subr.bf16.mxu0 %v9913_v15  ;;  %v3188_v15 = vld [vmem:[%s11644_s12 + $0xc0] sm:$0xff]  ;;  %v3190_v52 = vld [vmem:[%s11644_s12 + $0xd0] sm:$0xff]  ;;  %v9979_v1 = vpack.c.bf16 %v2960_v61, %v2958_v48  ;;  %v2967_v61 = vld [vmem:[%s11643_s11 + $0x128] sm:$0xff] }
 0x46c   :  { %11954 = vst [vmem:[#allocation116_spill] sm:$0xff] %v9967_v34  ;;  %11956 = vst [vmem:[#allocation118_spill] sm:$0xff] %v9985_v2  ;;  %v2969_v48 = vld [vmem:[%s11643_s11 + $0x138] sm:$0xff]  ;;  %v10000_v36 = vpack.c.bf16 %v3190_v52, %v3188_v15 }
 0x46d   :  { %6897 = vmatpush1.bf16.msra.mxu1 %v9928_v37  ;;  %v3193_v37 = vld [vmem:[%s11644_s12 + $0xe8] sm:$0xff]  ;;  %11955 = vst [vmem:[#allocation117_spill] sm:$0xff] %v9979_v1  ;;  %v3199_v15 = vld [vmem:[%s11644_s12 + $0x118] sm:$0xff] }
 0x46e   :  { %6899 = vmatprep.subr.bf16.mxu1 %v9931_v39  ;;  %6817 = vmatpush1.bf16.msra.mxu0 %v9943_v11  ;;  %v2964_v11 = vld [vmem:[%s11643_s11 + $0x110] sm:$0xff]  ;;  %11957 = vst [vmem:[#allocation119_spill] sm:$0xff] %v10000_v36  ;;  %v10003_v35 = vpack.c.bf16 %v3195_v14, %v3193_v37  ;;  %v10021_v37 = vpack.c.bf16 %v2969_v48, %v2967_v61  ;;  %v2966_v14 = vld [vmem:[%s11643_s11 + $0x120] sm:$0xff] }
 0x46f   :  { %6819 = vmatprep.subr.bf16.mxu0 %v9949_v17  ;;  %v3192_v17 = vld [vmem:[%s11644_s12 + $0xe0] sm:$0xff]  ;;  %v3194_v39 = vld [vmem:[%s11644_s12 + $0xf0] sm:$0xff]  ;;  %v10015_v52 = vpack.c.bf16 %v2964_v11, %v2962_v62  ;;  %v2971_v11 = vld [vmem:[%s11643_s11 + $0x148] sm:$0xff] }
 0x470   :  { %11958 = vst [vmem:[#allocation120_spill] sm:$0xff] %v10003_v35  ;;  %11960 = vst [vmem:[#allocation122_spill] sm:$0xff] %v10021_v37  ;;  %v2973_v62 = vld [vmem:[%s11643_s11 + $0x158] sm:$0xff]  ;;  %v10036_v61 = vpack.c.bf16 %v3194_v39, %v3192_v17 }
 0x471   :  { %6901 = vmatpush1.bf16.msra.mxu1 %v9964_v63  ;;  %v3197_v63 = vld [vmem:[%s11644_s12 + $0x108] sm:$0xff]  ;;  %11959 = vst [vmem:[#allocation121_spill] sm:$0xff] %v10015_v52  ;;  %v3203_v17 = vld [vmem:[%s11644_s12 + $0x138] sm:$0xff] }
 0x472   :  { %6903 = vmatprep.subr.bf16.mxu1 %v9967_v34  ;;  %6821 = vmatpush1.bf16.msra.mxu0 %v9979_v1  ;;  %v2968_v1 = vld [vmem:[%s11643_s11 + $0x130] sm:$0xff]  ;;  %11961 = vst [vmem:[#allocation123_spill] sm:$0xff] %v10036_v61  ;;  %v10039_v48 = vpack.c.bf16 %v3199_v15, %v3197_v63  ;;  %v10057_v63 = vpack.c.bf16 %v2973_v62, %v2971_v11  ;;  %v2970_v15 = vld [vmem:[%s11643_s11 + $0x140] sm:$0xff] }
 0x473   :  { %6823 = vmatprep.subr.bf16.mxu0 %v9985_v2  ;;  %v3196_v2 = vld [vmem:[%s11644_s12 + $0x100] sm:$0xff]  ;;  %v3198_v34 = vld [vmem:[%s11644_s12 + $0x110] sm:$0xff]  ;;  %v10051_v39 = vpack.c.bf16 %v2968_v1, %v2966_v14  ;;  %v2975_v1 = vld [vmem:[%s11643_s11 + $0x168] sm:$0xff] }
 0x474   :  { %11962 = vst [vmem:[#allocation124_spill] sm:$0xff] %v10039_v48  ;;  %11964 = vst [vmem:[#allocation126_spill] sm:$0xff] %v10057_v63  ;;  %v2977_v14 = vld [vmem:[%s11643_s11 + $0x178] sm:$0xff]  ;;  %v10072_v11 = vpack.c.bf16 %v3198_v34, %v3196_v2 }
 0x475   :  { %6905 = vmatpush1.bf16.msra.mxu1 %v10000_v36  ;;  %v3201_v36 = vld [vmem:[%s11644_s12 + $0x128] sm:$0xff]  ;;  %11963 = vst [vmem:[#allocation125_spill] sm:$0xff] %v10051_v39  ;;  %v3207_v2 = vld [vmem:[%s11644_s12 + $0x158] sm:$0xff] }
 0x476   :  { %6907 = vmatprep.subr.bf16.mxu1 %v10003_v35  ;;  %6825 = vmatpush1.bf16.msra.mxu0 %v10015_v52  ;;  %v2972_v52 = vld [vmem:[%s11643_s11 + $0x150] sm:$0xff]  ;;  %11965 = vst [vmem:[#allocation127_spill] sm:$0xff] %v10072_v11  ;;  %v10075_v62 = vpack.c.bf16 %v3203_v17, %v3201_v36  ;;  %v10093_v36 = vpack.c.bf16 %v2977_v14, %v2975_v1  ;;  %v2974_v17 = vld [vmem:[%s11643_s11 + $0x160] sm:$0xff] }
 0x477   :  { %6827 = vmatprep.subr.bf16.mxu0 %v10021_v37  ;;  %v3200_v37 = vld [vmem:[%s11644_s12 + $0x120] sm:$0xff]  ;;  %v3202_v35 = vld [vmem:[%s11644_s12 + $0x130] sm:$0xff]  ;;  %v10087_v34 = vpack.c.bf16 %v2972_v52, %v2970_v15  ;;  %v2979_v52 = vld [vmem:[%s11643_s11 + $0x188] sm:$0xff] }
 0x478   :  { %11966 = vst [vmem:[#allocation128_spill] sm:$0xff] %v10075_v62  ;;  %11968 = vst [vmem:[#allocation130_spill] sm:$0xff] %v10093_v36  ;;  %v2981_v15 = vld [vmem:[%s11643_s11 + $0x198] sm:$0xff]  ;;  %v10108_v1 = vpack.c.bf16 %v3202_v35, %v3200_v37 }
 0x479   :  { %6909 = vmatpush1.bf16.msra.mxu1 %v10036_v61  ;;  %v3205_v61 = vld [vmem:[%s11644_s12 + $0x148] sm:$0xff]  ;;  %11967 = vst [vmem:[#allocation129_spill] sm:$0xff] %v10087_v34  ;;  %v3211_v37 = vld [vmem:[%s11644_s12 + $0x178] sm:$0xff] }
 0x47a   :  { %6911 = vmatprep.subr.bf16.mxu1 %v10039_v48  ;;  %6829 = vmatpush1.bf16.msra.mxu0 %v10051_v39  ;;  %v2976_v39 = vld [vmem:[%s11643_s11 + $0x170] sm:$0xff]  ;;  %11969 = vst [vmem:[#allocation131_spill] sm:$0xff] %v10108_v1  ;;  %v10111_v14 = vpack.c.bf16 %v3207_v2, %v3205_v61  ;;  %v10129_v61 = vpack.c.bf16 %v2981_v15, %v2979_v52  ;;  %v2978_v2 = vld [vmem:[%s11643_s11 + $0x180] sm:$0xff] }
 0x47b   :  { %6831 = vmatprep.subr.bf16.mxu0 %v10057_v63  ;;  %v3204_v63 = vld [vmem:[%s11644_s12 + $0x140] sm:$0xff]  ;;  %v3206_v48 = vld [vmem:[%s11644_s12 + $0x150] sm:$0xff]  ;;  %v10123_v35 = vpack.c.bf16 %v2976_v39, %v2974_v17  ;;  %v2983_v39 = vld [vmem:[%s11643_s11 + $0x1a8] sm:$0xff] }
 0x47c   :  { %11970 = vst [vmem:[#allocation132_spill] sm:$0xff] %v10111_v14  ;;  %11972 = vst [vmem:[#allocation134_spill] sm:$0xff] %v10129_v61  ;;  %v2985_v17 = vld [vmem:[%s11643_s11 + $0x1b8] sm:$0xff]  ;;  %v10144_v52 = vpack.c.bf16 %v3206_v48, %v3204_v63 }
 0x47d   :  { %6913 = vmatpush1.bf16.msra.mxu1 %v10072_v11  ;;  %v3209_v11 = vld [vmem:[%s11644_s12 + $0x168] sm:$0xff]  ;;  %11971 = vst [vmem:[#allocation133_spill] sm:$0xff] %v10123_v35  ;;  %v3215_v63 = vld [vmem:[%s11644_s12 + $0x198] sm:$0xff] }
 0x47e   :  { %6915 = vmatprep.subr.bf16.mxu1 %v10075_v62  ;;  %6833 = vmatpush1.bf16.msra.mxu0 %v10087_v34  ;;  %v2980_v34 = vld [vmem:[%s11643_s11 + $0x190] sm:$0xff]  ;;  %11973 = vst [vmem:[#allocation135_spill] sm:$0xff] %v10144_v52  ;;  %v10147_v15 = vpack.c.bf16 %v3211_v37, %v3209_v11  ;;  %v10165_v11 = vpack.c.bf16 %v2985_v17, %v2983_v39  ;;  %v2982_v37 = vld [vmem:[%s11643_s11 + $0x1a0] sm:$0xff] }
 0x47f   :  { %6835 = vmatprep.subr.bf16.mxu0 %v10093_v36  ;;  %v3208_v36 = vld [vmem:[%s11644_s12 + $0x160] sm:$0xff]  ;;  %v3210_v62 = vld [vmem:[%s11644_s12 + $0x170] sm:$0xff]  ;;  %v10159_v48 = vpack.c.bf16 %v2980_v34, %v2978_v2  ;;  %v2987_v34 = vld [vmem:[%s11643_s11 + $0x1c8] sm:$0xff] }
 0x480   :  { %11974 = vst [vmem:[#allocation136_spill] sm:$0xff] %v10147_v15  ;;  %11976 = vst [vmem:[#allocation138_spill] sm:$0xff] %v10165_v11  ;;  %v2989_v2 = vld [vmem:[%s11643_s11 + $0x1d8] sm:$0xff]  ;;  %v10180_v39 = vpack.c.bf16 %v3210_v62, %v3208_v36 }
 0x481   :  { %6917 = vmatpush1.bf16.msra.mxu1 %v10108_v1  ;;  %v3213_v1 = vld [vmem:[%s11644_s12 + $0x188] sm:$0xff]  ;;  %11975 = vst [vmem:[#allocation137_spill] sm:$0xff] %v10159_v48  ;;  %v3219_v36 = vld [vmem:[%s11644_s12 + $0x1b8] sm:$0xff] }
 0x482   :  { %6919 = vmatprep.subr.bf16.mxu1 %v10111_v14  ;;  %6837 = vmatpush1.bf16.msra.mxu0 %v10123_v35  ;;  %v2984_v35 = vld [vmem:[%s11643_s11 + $0x1b0] sm:$0xff]  ;;  %11977 = vst [vmem:[#allocation139_spill] sm:$0xff] %v10180_v39  ;;  %v10183_v17 = vpack.c.bf16 %v3215_v63, %v3213_v1  ;;  %v10201_v1 = vpack.c.bf16 %v2989_v2, %v2987_v34  ;;  %v2986_v63 = vld [vmem:[%s11643_s11 + $0x1c0] sm:$0xff] }
 0x483   :  { %6839 = vmatprep.subr.bf16.mxu0 %v10129_v61  ;;  %v3212_v61 = vld [vmem:[%s11644_s12 + $0x180] sm:$0xff]  ;;  %v3214_v14 = vld [vmem:[%s11644_s12 + $0x190] sm:$0xff]  ;;  %v10195_v62 = vpack.c.bf16 %v2984_v35, %v2982_v37 }
 0x484   :  { %11978 = vst [vmem:[#allocation140_spill] sm:$0xff] %v10183_v17  ;;  %11980 = vst [vmem:[#allocation142_spill] sm:$0xff] %v10201_v1  ;;  %v10210_v35 = vpack.c.bf16 %v3214_v14, %v3212_v61  ;;  %v3216_v34 = vld [vmem:[%s11644_s12 + $0x1a0] sm:$0xff]  ;;  %v3218_v2 = vld [vmem:[%s11644_s12 + $0x1b0] sm:$0xff] }
 0x485   :  { %6921 = vmatpush1.bf16.msra.mxu1 %v10144_v52  ;;  %v3217_v52 = vld [vmem:[%s11644_s12 + $0x1a8] sm:$0xff]  ;;  %11979 = vst [vmem:[#allocation141_spill] sm:$0xff] %v10195_v62  ;;  %v3223_v61 = vld [vmem:[%s11644_s12 + $0x1d8] sm:$0xff] }
 0x486   :  { %6923 = vmatprep.subr.bf16.mxu1 %v10147_v15  ;;  %6841 = vmatpush1.bf16.msra.mxu0 %v10159_v48  ;;  %v2988_v48 = vld [vmem:[%s11643_s11 + $0x1d0] sm:$0xff]  ;;  %11981 = vst [vmem:[#allocation143_spill] sm:$0xff] %v10210_v35  ;;  %v10213_v37 = vpack.c.bf16 %v3219_v36, %v3217_v52  ;;  %v3221_v14 = vld [vmem:[%s11644_s12 + $0x1c8] sm:$0xff]  ;;  %v10232_v52 = vpack.c.bf16 %v3218_v2, %v3216_v34  ;;  %v2993_v2 = vld [vmem:[%s11643_s11 + $0x1f8] sm:$0xff] }
 0x487   :  { %6843 = vmatprep.subr.bf16.mxu0 %v10165_v11  ;;  %v10222_v11 = vpack.c.bf16 %v2988_v48, %v2986_v63  ;;  %v10235_v36 = vpack.c.bf16 %v3223_v61, %v3221_v14  ;;  %v3220_v48 = vld [vmem:[%s11644_s12 + $0x1c0] sm:$0xff]  ;;  %v3222_v63 = vld [vmem:[%s11644_s12 + $0x1d0] sm:$0xff]  ;;  %v2991_v34 = vld [vmem:[%s11643_s11 + $0x1e8] sm:$0xff] }
 0x488   :  { %11982 = vst [vmem:[#allocation144_spill] sm:$0xff] %v10213_v37  ;;  %11984 = vst [vmem:[#allocation146_spill] sm:$0xff] %v10232_v52  ;;  %v3225_v14 = vld [vmem:[%s11644_s12 + $0x1e8] sm:$0xff]  ;;  %v10258_v61 = vpack.c.bf16 %v2993_v2, %v2991_v34  ;;  %v3224_v34 = vld [vmem:[%s11644_s12 + $0x1e0] sm:$0xff] }
 0x489   :  { %6925 = vmatpush1.bf16.msra.mxu1 %v10180_v39  ;;  %11983 = vst [vmem:[#allocation145_spill] sm:$0xff] %v10222_v11  ;;  %11985 = vst [vmem:[#allocation147_spill] sm:$0xff] %v10235_v36  ;;  %v3226_v2 = vld [vmem:[%s11644_s12 + $0x1f0] sm:$0xff] }
 0x48a   :  { %6927 = vmatprep.subr.bf16.mxu1 %v10183_v17  ;;  %6845 = vmatpush1.bf16.msra.mxu0 %v10195_v62  ;;  %11987 = vst [vmem:[#allocation149_spill] sm:$0xff] %v10258_v61 }
 0x48b   :  { %6847 = vmatprep.subr.bf16.mxu0 %v10201_v1  ;;  %v10245_v1 = vpack.c.bf16 %v3222_v63, %v3220_v48  ;;  %v3227_v48 = vld [vmem:[%s11644_s12 + $0x1f8] sm:$0xff]  ;;  %v2990_v63 = vld [vmem:[%s11643_s11 + $0x1e0] sm:$0xff] }
 0x48d   :  { %6929 = vmatpush1.bf16.msra.mxu1 %v10210_v35  ;;  %11986 = vst [vmem:[#allocation148_spill] sm:$0xff] %v10245_v1 }
 0x48e   :  { %6931 = vmatprep.subr.bf16.mxu1 %v10213_v37  ;;  %6849 = vmatpush1.bf16.msra.mxu0 %v10222_v11  ;;  %v10269_v11 = vpack.c.bf16 %v3227_v48, %v3225_v14  ;;  %v2997_v14 = vld [vmem:[%s11643_s11 + $0x218] sm:$0xff]  ;;  %v3229_v48 = vld [vmem:[%s11644_s12 + $0x208] sm:$0xff] }
 0x48f   :  { %6851 = vmatprep.subr.bf16.mxu0 %v10258_v61  ;;  %v3235_v61 = vld [vmem:[%s11644_s12 + $0x238] sm:$0xff] }
 0x490   :  { %11988 = vst [vmem:[#allocation150_spill] sm:$0xff] %v10269_v11 }
 0x491   :  { %6933 = vmatpush1.bf16.msra.mxu1 %v10232_v52  ;;  %v10280_v52 = vpack.c.bf16 %v3226_v2, %v3224_v34  ;;  %v3231_v34 = vld [vmem:[%s11644_s12 + $0x218] sm:$0xff] }
 0x492   :  { %6935 = vmatprep.subr.bf16.mxu1 %v10235_v36  ;;  %v10299_v2 = vpack.c.bf16 %v3231_v34, %v3229_v48  ;;  %v2999_v48 = vld [vmem:[%s11643_s11 + $0x228] sm:$0xff] }
 0x493   :  { %11990 = vst [vmem:[#allocation152_spill] sm:$0xff] %v10280_v52 }
 0x494   :  { %11992 = vst [vmem:[#allocation154_spill] sm:$0xff] %v10299_v2 }
 0x495   :  { %6937 = vmatpush1.bf16.msra.mxu1 %v10245_v1  ;;  %v2992_v1 = vld [vmem:[%s11643_s11 + $0x1f0] sm:$0xff] }
 0x496   :  { %v10271_v36 = vpack.c.bf16 %v2992_v1, %v2990_v63  ;;  %6939 = vmatprep.subr.bf16.mxu1 %v10269_v11  ;;  %v2995_v1 = vld [vmem:[%s11643_s11 + $0x208] sm:$0xff] }
 0x497   :  { %v10294_v63 = vpack.c.bf16 %v2997_v14, %v2995_v1  ;;  %v3228_v1 = vld [vmem:[%s11644_s12 + $0x200] sm:$0xff]  ;;  %v3230_v14 = vld [vmem:[%s11644_s12 + $0x210] sm:$0xff]  ;;  %v3233_v11 = vld [vmem:[%s11644_s12 + $0x228] sm:$0xff] }
 0x498   :  { %11989 = vst [vmem:[#allocation151_spill] sm:$0xff] %v10271_v36  ;;  %6853 = vmatpush1.bf16.msra.mxu0 %v10271_v36  ;;  %v2994_v36 = vld [vmem:[%s11643_s11 + $0x200] sm:$0xff]  ;;  %v10329_v15 = vpack.c.bf16 %v3230_v14, %v3228_v1  ;;  %v10339_v16 = vpack.c.bf16 %v3235_v61, %v3233_v11  ;;  %v3237_v11 = vld [vmem:[%s11644_s12 + $0x248] sm:$0xff]  ;;  %v3239_v61 = vld [vmem:[%s11644_s12 + $0x258] sm:$0xff] }
 0x499   :  { %6941 = vmatpush1.bf16.msra.mxu1 %v10280_v52  ;;  %11991 = vst [vmem:[#allocation153_spill] sm:$0xff] %v10294_v63  ;;  %6855 = vmatprep.subr.bf16.mxu0 %v10294_v63  ;;  %v2996_v52 = vld [vmem:[%s11643_s11 + $0x210] sm:$0xff]  ;;  %v3001_v63 = vld [vmem:[%s11643_s11 + $0x238] sm:$0xff]  ;;  %v3002_v14 = vld [vmem:[%s11643_s11 + $0x240] sm:$0xff] }
 0x49a   :  { %6943 = vmatprep.subr.bf16.mxu1 %v10299_v2  ;;  %v10327_v39 = vpack.c.bf16 %v2996_v52, %v2994_v36  ;;  %11994 = vst [vmem:[#allocation156_spill] sm:$0xff] %v10329_v15  ;;  %v10337_v60 = vpack.c.bf16 %v3001_v63, %v2999_v48  ;;  %11996 = vst [vmem:[#allocation158_spill] sm:$0xff] %v10339_v16  ;;  %v3003_v52 = vld [vmem:[%s11643_s11 + $0x248] sm:$0xff]  ;;  %v3005_v36 = vld [vmem:[%s11643_s11 + $0x258] sm:$0xff] }
 0x49b   :  { %v3004_v48 = vld [vmem:[%s11643_s11 + $0x250] sm:$0xff] }
 0x49c   :  { %11993 = vst [vmem:[#allocation155_spill] sm:$0xff] %v10327_v39  ;;  %11995 = vst [vmem:[#allocation157_spill] sm:$0xff] %v10337_v60 }
 0x527   :  { %v2707_v34 = vpop.f32.mrb[32].mxu1  ;;  %v2852_v2 = vpop.f32.mrb[24].mxu0 }
 0x528   :  { %v2927_v62 = vmax.f32 %v2707_v34, %v2852_v2  ;;  %v2709_v37 = vpop.f32.mrb[33].mxu1  ;;  %v2854_v35 = vpop.f32.mrb[25].mxu0  ;;  %v10375_v34 = vpack.c.bf16 %v3239_v61, %v3237_v11 }
 0x529   :  { %v2928_v17 = vmax.f32 %v2709_v37, %v2854_v35  ;;  %v3232_v35 = vld [vmem:[%s11644_s12 + $0x220] sm:$0xff]  ;;  %v3234_v37 = vld [vmem:[%s11644_s12 + $0x230] sm:$0xff] }
 0x52a   :  { %v10363_v1 = vpack.c.bf16 %v3234_v37, %v3232_v35  ;;  %12000 = vst [vmem:[#allocation162_spill] sm:$0xff] %v10375_v34  ;;  %v3007_v35 = vld [vmem:[%s11643_s11 + $0x268] sm:$0xff]  ;;  %v3009_v37 = vld [vmem:[%s11643_s11 + $0x278] sm:$0xff] }
 0x52b   :  { %3086 = vmatprep.mubr.f32.mxu0 %v2928_v17  ;;  %3316 = vmatprep.mubr.f32.mxu1 %v2928_v17  ;;  %v2778_v63 = vpop.f32.mrb[34].mxu1  ;;  %v10361_v17 = vpack.c.bf16 %v3000_v38, %v2998_v26  ;;  %v3236_v38 = vld [vmem:[%s11644_s12 + $0x240] sm:$0xff]  ;;  %v3238_v26 = vld [vmem:[%s11644_s12 + $0x250] sm:$0xff] }
 0x52c   :  { %3087 = vmatmul.mubr.f32.vlgmr.msra.gmra.mrb[26].mxu0 %v2927_v62  ;;  %3317 = vmatmul.mubr.f32.vlgmr.msra.gmra.mrb[38].mxu1 %v2927_v62  ;;  %v6480_v2 = vpop.f32.mrb[35].mxu1  ;;  %11998 = vst [vmem:[#allocation160_spill] sm:$0xff] %v10363_v1  ;;  %v10373_v62 = vpack.c.bf16 %v3005_v36, %v3003_v52  ;;  %v3241_v52 = vld [vmem:[%s11644_s12 + $0x268] sm:$0xff]  ;;  %v3243_v36 = vld [vmem:[%s11644_s12 + $0x278] sm:$0xff] }
 0x52d   :  { %6857 = vmatpush1.bf16.msra.mxu0 %v10327_v39  ;;  %6945 = vmatpush1.bf16.msra.mxu1 %v10329_v15  ;;  %11997 = vst [vmem:[#allocation159_spill] sm:$0xff] %v10361_v17  ;;  %v3006_v15 = vld [vmem:[%s11643_s11 + $0x260] sm:$0xff]  ;;  %v3008_v39 = vld [vmem:[%s11643_s11 + $0x270] sm:$0xff] }
 0x52e   :  { %6859 = vmatprep.subr.bf16.mxu0 %v10337_v60  ;;  %6947 = vmatprep.subr.bf16.mxu1 %v10339_v16  ;;  %11999 = vst [vmem:[#allocation161_spill] sm:$0xff] %v10373_v62  ;;  %v10401_v16 = vpack.c.bf16 %v3004_v48, %v3002_v14  ;;  %v10403_v60 = vpack.c.bf16 %v3238_v26, %v3236_v38  ;;  %v3240_v14 = vld [vmem:[%s11644_s12 + $0x260] sm:$0xff]  ;;  %v3242_v48 = vld [vmem:[%s11644_s12 + $0x270] sm:$0xff]  ;;  %v3011_v38 = vld [vmem:[%s11643_s11 + $0x288] sm:$0xff] }
 0x52f   :  { %v2923_v11 = vpop.f32.mrb[36].mxu1  ;;  %3157 = vmatprep.mubr.f32.mxu0 %v11917_v44  ;;  %3387 = vmatprep.mubr.f32.mxu1 %v11917_v44  ;;  %v3013_v26 = vld [vmem:[%s11643_s11 + $0x298] sm:$0xff] }
 0x530   :  { %v10397_v61 = vmax.f32 %v2778_v63, %v2923_v11  ;;  %v6487_v2 = vpop.f32.mrb[37].mxu1  ;;  %12001 = vst [vmem:[#allocation163_spill] sm:$0xff] %v10401_v16  ;;  %12002 = vst [vmem:[#allocation164_spill] sm:$0xff] %v10403_v60  ;;  %v10413_v63 = vpack.c.bf16 %v3009_v37, %v3007_v35  ;;  %v10415_v11 = vpack.c.bf16 %v3243_v36, %v3241_v52  ;;  %v3245_v35 = vld [vmem:[%s11644_s12 + $0x288] sm:$0xff]  ;;  %v3247_v37 = vld [vmem:[%s11644_s12 + $0x298] sm:$0xff] }
 0x531   :  { %6861 = vmatpush1.bf16.msra.mxu0 %v10361_v17  ;;  %6949 = vmatpush1.bf16.msra.mxu1 %v10363_v1  ;;  %v3010_v52 = vld [vmem:[%s11643_s11 + $0x280] sm:$0xff]  ;;  %v10440_v36 = vpack.c.bf16 %v3008_v39, %v3006_v15  ;;  %v10442_v2 = vpack.c.bf16 %v3242_v48, %v3240_v14  ;;  %v3246_v1 = vld [vmem:[%s11644_s12 + $0x290] sm:$0xff]  ;;  %v10455_v15 = vpack.c.bf16 %v3013_v26, %v3011_v38  ;;  %v3015_v14 = vld [vmem:[%s11643_s11 + $0x2a8] sm:$0xff] }
 0x532   :  { %6863 = vmatprep.subr.bf16.mxu0 %v10373_v62  ;;  %6951 = vmatprep.subr.bf16.mxu1 %v10375_v34  ;;  %12003 = vst [vmem:[#allocation165_spill] sm:$0xff] %v10413_v63  ;;  %12004 = vst [vmem:[#allocation166_spill] sm:$0xff] %v10415_v11  ;;  %v3012_v34 = vld [vmem:[%s11643_s11 + $0x290] sm:$0xff]  ;;  %v3244_v62 = vld [vmem:[%s11644_s12 + $0x280] sm:$0xff]  ;;  %v10457_v39 = vpack.c.bf16 %v3247_v37, %v3245_v35 }
 0x533   :  { %v6328_v48 = vld [vmem:[%s11833_s22 + $0x20] sm:$0xff]  ;;  %v3249_v38 = vld [vmem:[%s11644_s12 + $0x2a8] sm:$0xff]  ;;  %v3251_v26 = vld [vmem:[%s11644_s12 + $0x2b8] sm:$0xff]  ;;  %v10479_v35 = vpack.c.bf16 %v3012_v34, %v3010_v52  ;;  %v10481_v37 = vpack.c.bf16 %v3246_v1, %v3244_v62 }
 0x534   :  { %v3248_v17 = vld [vmem:[%s11644_s12 + $0x2a0] sm:$0xff]  ;;  %v10498_v62 = vpack.c.bf16 %v3251_v26, %v3249_v38  ;;  %v3250_v34 = vld [vmem:[%s11644_s12 + $0x2b0] sm:$0xff] }
 0x535   :  { %6865 = vmatpush1.bf16.msra.mxu0 %v10401_v16  ;;  %6953 = vmatpush1.bf16.msra.mxu1 %v10403_v60  ;;  %v6329_v60 = vld [vmem:[%s11833_s22 + $0x28] sm:$0xff]  ;;  %12005 = vst [vmem:[#allocation167_spill] sm:$0xff] %v10481_v37  ;;  %v3016_v16 = vld [vmem:[%s11643_s11 + $0x2b0] sm:$0xff] }
 0x536   :  { %6867 = vmatprep.subr.bf16.mxu0 %v10413_v63  ;;  %6955 = vmatprep.subr.bf16.mxu1 %v10415_v11  ;;  %v3017_v11 = vld [vmem:[%s11643_s11 + $0x2b8] sm:$0xff]  ;;  %v3014_v63 = vld [vmem:[%s11643_s11 + $0x2a0] sm:$0xff]  ;;  %v10492_v0 = vpack.c.bf16 %v6329_v60, %v6328_v48  ;;  %v6330_v52 = vld [vmem:[%s11833_s22 + $0x30] sm:$0xff] }
 0x537   :  { %v10496_v1 = vpack.c.bf16 %v3017_v11, %v3015_v14  ;;  %v6331_v60 = vld [vmem:[%s11833_s22 + $0x38] sm:$0xf]  ;;  %v10511_v11 = vpack.c.bf16 %v3016_v16, %v3014_v63  ;;  %v10513_v14 = vpack.c.bf16 %v3250_v34, %v3248_v17  ;;  %v7777_v34 = vld [vmem:[%s11832_s26 + $0x7c] ss:$16 sps:$4 sm:$0xff]  }
 0x538   :  { %v10515_v48 = vpack.c.bf16 %v6331_v60, %v6330_v52  ;;  %v3408_v38 = vshll.u32 %v10492_v0, 16  ;;  %v3406_v26 = vshrl.u32 %v10492_v0, 16  ;;  %v7780_v52 = vld [vmem:[%s11832_s26 + $0x94] ss:$16 sps:$4 sm:$0x3f]  }
 0x539   :  { %6869 = vmatpush1.bf16.msra.mxu0 %v10440_v36  ;;  %6957 = vmatpush1.bf16.msra.mxu1 %v10442_v2  ;;  %v7781_v60 = vld [vmem:[%s11832_s26 + $0x9c] ss:$16 sps:$4 sm:$0x3f]  }
 0x53a   :  { %6871 = vmatprep.subr.bf16.mxu0 %v10455_v15  ;;  %6959 = vmatprep.subr.bf16.mxu1 %v10457_v39  ;;  %v3413_v16 = vshll.u32 %v10515_v48, 16 }
 0x53c   :  { %v3415_v63 = vrot.slane %v3413_v16, 1 }
 0x53d   :  { %6873 = vmatpush1.bf16.msra.mxu0 %v10479_v35  ;;  %6961 = vmatpush1.bf16.msra.mxu1 %v10481_v37  ;;  %v3410_v37 = vrot.slane %v3408_v38, 1  ;;  %v3644_v38 = vrot.slane %v10492_v0, 1 }
 0x53e   :  { %6875 = vmatprep.subr.bf16.mxu0 %v10496_v1  ;;  %6963 = vmatprep.subr.bf16.mxu1 %v10498_v62 }
 0x53f   :  { %v3411_v17 = vor.u32 %v3410_v37, %v3406_v26  ;;  %v7776_v37 = vld [vmem:[%s11832_s26 + $0x74] ss:$16 sps:$4 sm:$0xff]   ;;  %v3645_v26 = vrot.slane %v10515_v48, 1 }
 0x541   :  { %6877 = vmatpush1.bf16.msra.mxu0 %v10511_v11  ;;  %6965 = vmatpush1.bf16.msra.mxu1 %v10513_v14  ;;  %v3646_v16 = vsel %vm439_vm3, %v3644_v38, %v3645_v26 }
 0x542   :  { %3426 = vmatprep.subr.bf16.mxu0 %v8049_v9  ;;  %3479 = vmatprep.subr.bf16.mxu1 %v8076_v22  ;;  %v3416_v9 = vsel %vm80_vm1, %v3411_v17, %v3415_v63  ;;  %v7770_v22 = vld [vmem:[%s11832_s26 + $0x4] ss:$16 sps:$4 sm:$0xff]  }
 0x544   :  { %6326 = vmatmul.mubr.msk.f32.vlgmr.msra.gmra.mrb[26].mxu0 %vm3018_vm14, %v10397_v61  ;;  %6327 = vmatmul.mubr.msk.f32.vlgmr.msra.gmra.mrb[38].mxu1 %vm3018_vm14, %v10397_v61 }
 0x545   :  { %3427 = vmatpush1.bf16.msra.mxu0 %v8082_v25  ;;  %3480 = vmatpush1.bf16.msra.mxu1 %v8088_v28  ;;  %v7772_v25 = vld [vmem:[%s11832_s26] ss:$16 sps:$4 sm:$0xff]   ;;  %v7773_v28 = vld [vmem:[%s11832_s26 + $0x8] ss:$16 sps:$4 sm:$0xff]  }
 0x546   :  { %6332 = vmatprep.subr.msk.bf16.mxu0 %vm128_vm0, %v8033_v4  ;;  %6335 = vmatprep.subr.msk.bf16.mxu1 %vm128_vm0, %v8058_v13  ;;  %v7771_v4 = vld [vmem:[%s11832_s26 + $0xc] ss:$16 sps:$4 sm:$0xff]   ;;  %v3417_v13 = vshrl.u32 %v10515_v48, 16 }
 0x547   :  { %3458 = vmatprep.mubr.bf16.mxu0 %v11916_v6  ;;  %3511 = vmatprep.mubr.bf16.mxu1 %v11916_v6 }
 0x548   :  { %v3419_v61 = vor.u32 %v3417_v13, %v3415_v63 }
 0x549   :  { %3429 = vmatpush1.bf16.msra.mxu0 %v8098_v31  ;;  %3482 = vmatpush1.bf16.msra.mxu1 %v8103_v33  ;;  %v7774_v31 = vld [vmem:[%s11832_s26 + $0x24] ss:$16 sps:$4 sm:$0x3f]   ;;  %v7775_v33 = vld [vmem:[%s11832_s26 + $0x2c] ss:$16 sps:$4 sm:$0x3f]  }
 0x54a   :  { %3536 = vmatprep.subr.bf16.mxu0 %v7770_v22  ;;  %3589 = vmatprep.subr.bf16.mxu1 %v7771_v4 }
 0x54c   :  { %6333 = vmatmul.mubr.msk.bf16.vlgmr.msra.gmra.mrb[28].mxu0 %vm145_vm2, %v3416_v9  ;;  %6336 = vmatmul.mubr.msk.bf16.vlgmr.msra.gmra.mrb[40].mxu1 %vm145_vm2, %v3416_v9 }
 0x54d   :  { %3537 = vmatpush1.bf16.msra.mxu0 %v7772_v25  ;;  %3468 = vmatprep.mubr.bf16.mxu0 %v11916_v6 }
 0x54e   :  { %3521 = vmatprep.mubr.bf16.mxu1 %v11916_v6  ;;  %3590 = vmatpush1.bf16.msra.mxu1 %v7773_v28 }
 0x54f   :  { %6338 = vmatprep.subr.msk.bf16.mxu0 %vm128_vm0, %v7774_v31  ;;  %6341 = vmatprep.subr.msk.bf16.mxu1 %vm128_vm0, %v7775_v33 }
 0x551   :  { %3539 = vmatpush1.bf16.msra.mxu0 %v8135_v45  ;;  %v7778_v45 = vld [vmem:[%s11832_s26 + $0x70] ss:$16 sps:$4 sm:$0xff]  }
 0x552   :  { %3592 = vmatpush1.bf16.msra.mxu1 %v8146_v49  ;;  %3653 = vmatprep.subr.bf16.mxu0 %v7776_v37  ;;  %v7779_v49 = vld [vmem:[%s11832_s26 + $0x78] ss:$16 sps:$4 sm:$0xff]  }
 0x553   :  { %3706 = vmatprep.subr.bf16.mxu1 %v7777_v34 }
 0x554   :  { %6334 = vmatmul.mubr.msk.bf16.gmra.mrb[32].mxu0 %vm145_vm2, %v3419_v61  ;;  %6337 = vmatmul.mubr.msk.bf16.gmra.mrb[44].mxu1 %vm145_vm2, %v3419_v61 }
 0x555   :  { %3568 = vmatprep.mubr.bf16.mxu0 %v11916_v6  ;;  %3621 = vmatprep.mubr.bf16.mxu1 %v11916_v6 }
 0x55c   :  { %6339 = vmatmul.mubr.msk.bf16.vlgmr.msra.gmra.mrb[28].mxu0 %vm145_vm2, %v10492_v0  ;;  %6342 = vmatmul.mubr.msk.bf16.vlgmr.msra.gmra.mrb[40].mxu1 %vm145_vm2, %v10492_v0 }
 0x55d   :  { %3654 = vmatpush1.bf16.msra.mxu0 %v7778_v45  ;;  %3578 = vmatprep.mubr.bf16.mxu0 %v11916_v6 }
 0x55e   :  { %3631 = vmatprep.mubr.bf16.mxu1 %v11916_v6  ;;  %3707 = vmatpush1.bf16.msra.mxu1 %v7779_v49 }
 0x55f   :  { %6344 = vmatprep.subr.msk.bf16.mxu0 %vm128_vm0, %v7780_v52  ;;  %6347 = vmatprep.subr.msk.bf16.mxu1 %vm128_vm0, %v7781_v60 }
 0x561   :  { %3656 = vmatpush1.bf16.msra.mxu0 %v8179_v56 }
 0x562   :  { %3709 = vmatpush1.bf16.msra.mxu1 %v8184_v57 }
 0x564   :  { %6340 = vmatmul.mubr.msk.bf16.gmra.mrb[32].mxu0 %vm145_vm2, %v10515_v48  ;;  %6343 = vmatmul.mubr.msk.bf16.gmra.mrb[44].mxu1 %vm145_vm2, %v10515_v48 }
 0x565   :  { %3685 = vmatprep.mubr.bf16.mxu0 %v11916_v6  ;;  %3738 = vmatprep.mubr.bf16.mxu1 %v11916_v6 }
 0x56c   :  { %6345 = vmatmul.mubr.msk.bf16.vlgmr.msra.gmra.mrb[28].mxu0 %vm145_vm2, %v3646_v16  ;;  %6348 = vmatmul.mubr.msk.bf16.vlgmr.msra.gmra.mrb[40].mxu1 %vm145_vm2, %v3646_v16 }
 0x56d   :  { %3695 = vmatprep.mubr.bf16.mxu0 %v11916_v6  ;;  %3748 = vmatprep.mubr.bf16.mxu1 %v11916_v6 }
 0x574   :  { %6346 = vmatmul.mubr.msk.bf16.gmra.mrb[32].mxu0 %vm145_vm2, %v3645_v26  ;;  %6349 = vmatmul.mubr.msk.bf16.gmra.mrb[44].mxu1 %vm145_vm2, %v3645_v26 }
 0x575   :  { %3867 = vmatprep.mubr.f32.mxu0 %v11917_v44  ;;  %3944 = vmatprep.mubr.f32.mxu1 %v11917_v44 }
 0x617   :  { %v10617_v56 = vpop.f32.mrb[26].mxu0  ;;  %v10619_v57 = vpop.f32.mrb[38].mxu1 }
 0x618   :  { %v10623_v48 = vpop.f32.mrb[27].mxu0  ;;  %v10625_v17 = vpop.f32.mrb[39].mxu1 }
 0x619   :  { %12006 = vst [vmem:[#allocation168_spill] sm:$0xff] %v10623_v48  ;;  %12007 = vst [vmem:[#allocation169_spill] sm:$0xff] %v10625_v17 }
 0x63f   :  { %v3687_v9 = vpop.f32.mrb[28].mxu0  ;;  %v3740_v22 = vpop.f32.mrb[40].mxu1 }
 0x640   :  { %v3689_v4 = vpop.f32.mrb[29].mxu0  ;;  %v3777_v13 = vadd.f32 %v3740_v22, %v8216_v7  ;;  %v3742_v25 = vpop.f32.mrb[41].mxu1  ;;  %v3775_v61 = vadd.f32 %v3687_v9, %v8220_v8 }
 0x641   :  { %v3691_v28 = vpop.f32.mrb[30].mxu0  ;;  %v3778_v31 = vadd.f32 %v3742_v25, %v8222_v10  ;;  %v3744_v33 = vpop.f32.mrb[42].mxu1  ;;  %v3776_v52 = vadd.f32 %v3689_v4, %v8226_v12 }
 0x642   :  { %v3779_v37 = vadd.f32 %v3691_v28, %v8220_v8  ;;  %v3693_v34 = vpop.f32.mrb[31].mxu0  ;;  %v3781_v45 = vadd.f32 %v3744_v33, %v8216_v7  ;;  %v3746_v49 = vpop.f32.mrb[43].mxu1 }
 0x643   :  { %v3780_v60 = vadd.f32 %v3693_v34, %v8226_v12  ;;  %v3782_v38 = vadd.f32 %v3746_v49, %v8222_v10 }
 0x644   :  { %v6968_v26 = vpack.c.bf16 %v3779_v37, %v3775_v61  ;;  %v6978_v16 = vpack.c.bf16 %v3781_v45, %v3777_v13 }
 0x645   :  { %v6966_v22 = vpack.c.bf16 %v3780_v60, %v3776_v52  ;;  %v6976_v63 = vpack.c.bf16 %v3782_v38, %v3778_v31 }
 0x647   :  { %v3697_v25 = vpop.f32.mrb[32].mxu0  ;;  %v3750_v0 = vpop.f32.mrb[44].mxu1  ;;  %6967 = vmatprep.subr.bf16.mxu0 %v6966_v22  ;;  %6977 = vmatprep.subr.bf16.mxu1 %v6976_v63 }
 0x648   :  { %v3785_v9 = vadd.f32 %v3750_v0, %v8216_v7  ;;  %v3699_v28 = vpop.f32.mrb[33].mxu0  ;;  %v3752_v17 = vpop.f32.mrb[45].mxu1  ;;  %6969 = vmatpush1.bf16.msra.mxu0 %v6968_v26  ;;  %6979 = vmatpush1.bf16.msra.mxu1 %v6978_v16  ;;  %v3783_v49 = vadd.f32 %v3697_v25, %v8220_v8  ;;  %v12031_v25 = vld [vmem:[#allocation27_spill] sm:$0xff] }
 0x649   :  { %v3786_v4 = vadd.f32 %v3752_v17, %v8222_v10  ;;  %v3701_v33 = vpop.f32.mrb[34].mxu0  ;;  %v3754_v34 = vpop.f32.mrb[46].mxu1  ;;  %v3784_v45 = vadd.f32 %v3699_v28, %v8226_v12  ;;  %v12033_v28 = vld [vmem:[#allocation29_spill] sm:$0xff] }
 0x64a   :  { %v3787_v13 = vadd.f32 %v3701_v33, %v8220_v8  ;;  %v3789_v31 = vadd.f32 %v3754_v34, %v8216_v7  ;;  %v3703_v61 = vpop.f32.mrb[35].mxu0  ;;  %v3756_v37 = vpop.f32.mrb[47].mxu1  ;;  %v7782_v7 = vld [vmem:[%s11635_s3] sm:$0xff]  ;;  %v7783_v8 = vld [vmem:[%s11635_s3 + $0x8] sm:$0x1f]  ;;  %v12035_v33 = vld [vmem:[#allocation31_spill] sm:$0xff] }
 0x64b   :  { %v3788_v0 = vadd.f32 %v3703_v61, %v8226_v12  ;;  %v3790_v52 = vadd.f32 %v3756_v37, %v8222_v10  ;;  %v7784_v10 = vld [vmem:[%s11636_s4] sm:$0xff]  ;;  %v7785_v12 = vld [vmem:[%s11636_s4 + $0x8] sm:$0x1f]  ;;  %s6123_s3 = sshll.u32 %s7934_s24, 4  ;;  %s6124_s3 = int_to_ptr.vmem [resolvable:$true] %s6123_s3 }
 0x64c   :  { %v6973_v60 = vpack.c.bf16 %v3787_v13, %v3783_v49  ;;  %v6983_v38 = vpack.c.bf16 %v3789_v31, %v3785_v9  ;;  %v12032_v9 = vld [vmem:[#allocation30_spill] sm:$0xff]  ;;  %v12037_v49 = vld [vmem:[#allocation33_spill] sm:$0xff]  ;;  %v12038_v13 = vld [vmem:[#allocation36_spill] sm:$0xff]  ;;  %p7910_p1 = scmp.lt.s32.totalorder %s6124_s3, %s6124_s3 }
 0x64d   :  { %v6970_v48 = vpack.c.bf16 %v3788_v0, %v3784_v45  ;;  %v6980_v17 = vpack.c.bf16 %v3790_v52, %v3786_v4  ;;  %v12034_v4 = vld [vmem:[#allocation32_spill] sm:$0xff]  ;;  %v12036_v34 = vld [vmem:[#allocation34_spill] sm:$0xff]  ;;  %v12039_v31 = vld [vmem:[#allocation35_spill] sm:$0xff] }
 0x64e   :  { %v12040_v61 = vld [vmem:[#allocation38_spill] sm:$0xff]  ;;  %v12041_v37 = vld [vmem:[#allocation37_spill] sm:$0xff]  ;;  %v12042_v45 = vld [vmem:[#allocation39_spill] sm:$0xff] }
 0x64f   :  { %6972 = vmatprep.subr.msk.bf16.mxu0 %vm8245_vm6, %v6970_v48  ;;  %6982 = vmatprep.subr.msk.bf16.mxu1 %vm8245_vm6, %v6980_v17  ;;  %v12043_v0 = vld [vmem:[#allocation40_spill] sm:$0xff]  ;;  %v12044_v52 = vld [vmem:[#allocation41_spill] sm:$0xff] }
 0x650   :  { %6975 = vmatpush1.bf16.msk.msra.mxu0 %vm8245_vm6, %v6973_v60  ;;  %6985 = vmatpush1.bf16.msk.msra.mxu1 %vm8245_vm6, %v6983_v38 }
 0x651   :  { %6987 = vmatprep.subr.bf16.mxu0 %v6966_v22  ;;  %6997 = vmatprep.subr.bf16.mxu1 %v6976_v63  ;;  %v12027_v63 = vld [vmem:[#allocation23_spill] sm:$0xff]  ;;  %v12030_v22 = vld [vmem:[#allocation28_spill] sm:$0xff] }
 0x653   :  { %6352 = vmatmul.mubr.msk.f32.vlgmr.msra.gmra.mrb[36].mxu0 %vm659_vm7, %v7782_v7  ;;  %6356 = vmatmul.mubr.msk.f32.vlgmr.msra.gmra.mrb[48].mxu1 %vm659_vm7, %v7782_v7  ;;  %v12048_v7 = vld [vmem:[#allocation45_spill] sm:$0xff] }
 0x654   :  { %6989 = vmatpush1.bf16.msra.mxu0 %v6968_v26  ;;  %6999 = vmatpush1.bf16.msra.mxu1 %v6978_v16  ;;  %v12028_v26 = vld [vmem:[#allocation26_spill] sm:$0xff]  ;;  %v12029_v16 = vld [vmem:[#allocation25_spill] sm:$0xff] }
 0x655   :  { %6992 = vmatprep.subr.msk.bf16.mxu0 %vm8245_vm6, %v6970_v48  ;;  %7002 = vmatprep.subr.msk.bf16.mxu1 %vm8245_vm6, %v6980_v17  ;;  %v12026_v48 = vld [vmem:[#allocation24_spill] sm:$0xff] }
 0x656   :  { %3873 = vmatprep.mubr.f32.mxu0 %v11917_v44  ;;  %3950 = vmatprep.mubr.f32.mxu1 %v11917_v44  ;;  %v12047_v17 = vld [vmem:[#allocation44_spill] sm:$0xff] }
 0x657   :  { %6353 = vmatmul.mubr.msk.f32.gmra.mrb[38].mxu0 %vm659_vm7, %v7783_v8  ;;  %6357 = vmatmul.mubr.msk.f32.gmra.mrb[50].mxu1 %vm659_vm7, %v7783_v8  ;;  %v12049_v8 = vld [vmem:[#allocation46_spill] sm:$0xff] }
 0x658   :  { %6995 = vmatpush1.bf16.msk.msra.mxu0 %vm8245_vm6, %v6973_v60  ;;  %7005 = vmatpush1.bf16.msk.msra.mxu1 %vm8245_vm6, %v6983_v38  ;;  %v12045_v60 = vld [vmem:[#allocation42_spill] sm:$0xff]  ;;  %v12046_v38 = vld [vmem:[#allocation43_spill] sm:$0xff] }
 0x659   :  { %4021 = vmatprep.mubr.f32.mxu0 %v11917_v44  ;;  %4098 = vmatprep.mubr.f32.mxu1 %v11917_v44 }
 0x65a   :  { %7007 = vmatprep.subr.bf16.mxu0 %v8279_v18  ;;  %7111 = vmatprep.subr.bf16.mxu1 %v8290_v21  ;;  %v12009_v18 = vld [vmem:[#allocation5_spill] sm:$0xff]  ;;  %v12010_v21 = vld [vmem:[#allocation8_spill] sm:$0xff] }
 0x65b   :  { %6360 = vmatmul.mubr.msk.f32.vlgmr.msra.gmra.mrb[40].mxu0 %vm659_vm7, %v7784_v10  ;;  %6364 = vmatmul.mubr.msk.f32.vlgmr.msra.gmra.mrb[52].mxu1 %vm659_vm7, %v7784_v10  ;;  %v12050_v10 = vld [vmem:[#allocation47_spill] sm:$0xff] }
 0x65c   :  { %4027 = vmatprep.mubr.f32.mxu0 %v11917_v44  ;;  %4104 = vmatprep.mubr.f32.mxu1 %v11917_v44 }
 0x65d   :  { %7009 = vmatpush1.bf16.msra.mxu0 %v8306_v27  ;;  %7113 = vmatpush1.bf16.msra.mxu1 %v8346_v41  ;;  %v12011_v27 = vld [vmem:[#allocation7_spill] sm:$0xff]  ;;  %v12013_v41 = vld [vmem:[#allocation9_spill] sm:$0xff] }
 0x65e   :  { %7011 = vmatprep.subr.bf16.mxu0 %v8317_v32  ;;  %7115 = vmatprep.subr.bf16.mxu1 %v8357_v46  ;;  %v12012_v32 = vld [vmem:[#allocation10_spill] sm:$0xff]  ;;  %v12015_v46 = vld [vmem:[#allocation11_spill] sm:$0xff] }
 0x65f   :  { %6361 = vmatmul.mubr.msk.f32.gmra.mrb[42].mxu0 %vm659_vm7, %v7785_v12  ;;  %6365 = vmatmul.mubr.msk.f32.gmra.mrb[54].mxu1 %vm659_vm7, %v7785_v12  ;;  %v12051_v12 = vld [vmem:[#allocation48_spill] sm:$0xff] }
 0x661   :  { %7013 = vmatpush1.bf16.msra.mxu0 %v8348_v42  ;;  %7117 = vmatpush1.bf16.msra.mxu1 %v8384_v55  ;;  %v12014_v42 = vld [vmem:[#allocation12_spill] sm:$0xff]  ;;  %v12017_v55 = vld [vmem:[#allocation13_spill] sm:$0xff] }
 0x662   :  { %7015 = vmatprep.subr.bf16.mxu0 %v8359_v47  ;;  %7119 = vmatprep.subr.bf16.mxu1 %v8396_v3  ;;  %v12016_v47 = vld [vmem:[#allocation14_spill] sm:$0xff]  ;;  %v12019_v3 = vld [vmem:[#allocation15_spill] sm:$0xff] }
 0x665   :  { %7017 = vmatpush1.bf16.msra.mxu0 %v8386_v58  ;;  %7121 = vmatpush1.bf16.msra.mxu1 %v8421_v20  ;;  %v12018_v58 = vld [vmem:[#allocation16_spill] sm:$0xff]  ;;  %v12021_v20 = vld [vmem:[#allocation17_spill] sm:$0xff] }
 0x666   :  { %7019 = vmatprep.subr.bf16.mxu0 %v8398_v5  ;;  %7123 = vmatprep.subr.bf16.mxu1 %v8433_v29  ;;  %v12020_v5 = vld [vmem:[#allocation18_spill] sm:$0xff]  ;;  %v12023_v29 = vld [vmem:[#allocation19_spill] sm:$0xff] }
 0x669   :  { %7021 = vmatpush1.bf16.msra.mxu0 %v8423_v23  ;;  %7125 = vmatpush1.bf16.msra.mxu1 %v8457_v40  ;;  %v12022_v23 = vld [vmem:[#allocation20_spill] sm:$0xff]  ;;  %v12025_v40 = vld [vmem:[#allocation21_spill] sm:$0xff] }
 0x66a   :  { %7023 = vmatprep.subr.bf16.mxu0 %v8435_v30  ;;  %7127 = vmatprep.subr.bf16.mxu1 %v12008_v59  ;;  %v12024_v30 = vld [vmem:[#allocation22_spill] sm:$0xff]  ;;  %v12052_v59 = vld [vmem:[#allocation49_spill] sm:$0xff] }
 0x66d   :  { %7025 = vmatpush1.bf16.msra.mxu0 %v12009_v18  ;;  %7129 = vmatpush1.bf16.msra.mxu1 %v12010_v21  ;;  %v12053_v18 = vld [vmem:[#allocation50_spill] sm:$0xff]  ;;  %v12054_v21 = vld [vmem:[#allocation51_spill] sm:$0xff] }
 0x66e   :  { %7027 = vmatprep.subr.bf16.mxu0 %v12011_v27  ;;  %7131 = vmatprep.subr.bf16.mxu1 %v12012_v32  ;;  %v12055_v27 = vld [vmem:[#allocation52_spill] sm:$0xff]  ;;  %v12056_v32 = vld [vmem:[#allocation53_spill] sm:$0xff] }
 0x671   :  { %7029 = vmatpush1.bf16.msra.mxu0 %v12013_v41  ;;  %7133 = vmatpush1.bf16.msra.mxu1 %v12014_v42 }
 0x672   :  { %7031 = vmatprep.subr.bf16.mxu0 %v12015_v46  ;;  %7135 = vmatprep.subr.bf16.mxu1 %v12016_v47 }
 0x675   :  { %7033 = vmatpush1.bf16.msra.mxu0 %v12017_v55  ;;  %7137 = vmatpush1.bf16.msra.mxu1 %v12018_v58 }
 0x676   :  { %7035 = vmatprep.subr.bf16.mxu0 %v12019_v3  ;;  %7139 = vmatprep.subr.bf16.mxu1 %v12020_v5 }
 0x679   :  { %7037 = vmatpush1.bf16.msra.mxu0 %v12021_v20  ;;  %7141 = vmatpush1.bf16.msra.mxu1 %v12022_v23 }
 0x67a   :  { %7039 = vmatprep.subr.bf16.mxu0 %v12023_v29  ;;  %7143 = vmatprep.subr.bf16.mxu1 %v12024_v30 }
 0x67d   :  { %7041 = vmatpush1.bf16.msra.mxu0 %v12025_v40  ;;  %7145 = vmatpush1.bf16.msra.mxu1 %v12026_v48 }
 0x67e   :  { %7043 = vmatprep.subr.bf16.mxu0 %v12027_v63  ;;  %7147 = vmatprep.subr.bf16.mxu1 %v12028_v26 }
 0x681   :  { %7045 = vmatpush1.bf16.msra.mxu0 %v12029_v16  ;;  %7149 = vmatpush1.bf16.msra.mxu1 %v12030_v22 }
 0x682   :  { %7047 = vmatprep.subr.bf16.mxu0 %v12031_v25  ;;  %7151 = vmatprep.subr.bf16.mxu1 %v12032_v9 }
 0x685   :  { %7049 = vmatpush1.bf16.msra.mxu0 %v12033_v28  ;;  %7153 = vmatpush1.bf16.msra.mxu1 %v12034_v4 }
 0x686   :  { %7051 = vmatprep.subr.bf16.mxu0 %v12035_v33  ;;  %7155 = vmatprep.subr.bf16.mxu1 %v12036_v34 }
 0x689   :  { %7053 = vmatpush1.bf16.msra.mxu0 %v12037_v49  ;;  %7157 = vmatpush1.bf16.msra.mxu1 %v12038_v13  ;;  %v12057_v49 = vld [vmem:[#allocation54_spill] sm:$0xff]  ;;  %v12062_v13 = vld [vmem:[#allocation59_spill] sm:$0xff] }
 0x68a   :  { %7055 = vmatprep.subr.bf16.mxu0 %v12039_v31  ;;  %7159 = vmatprep.subr.bf16.mxu1 %v12040_v61  ;;  %v12066_v31 = vld [vmem:[#allocation63_spill] sm:$0xff]  ;;  %v12067_v61 = vld [vmem:[#allocation64_spill] sm:$0xff] }
 0x68d   :  { %7057 = vmatpush1.bf16.msra.mxu0 %v12041_v37  ;;  %7161 = vmatpush1.bf16.msra.mxu1 %v12042_v45  ;;  %v12068_v37 = vld [vmem:[#allocation65_spill] sm:$0xff]  ;;  %v12069_v45 = vld [vmem:[#allocation66_spill] sm:$0xff] }
 0x68e   :  { %7059 = vmatprep.subr.bf16.mxu0 %v12043_v0  ;;  %7163 = vmatprep.subr.bf16.mxu1 %v12044_v52  ;;  %v12070_v0 = vld [vmem:[#allocation67_spill] sm:$0xff]  ;;  %v12071_v52 = vld [vmem:[#allocation68_spill] sm:$0xff] }
 0x691   :  { %7061 = vmatpush1.bf16.msra.mxu0 %v12045_v60  ;;  %7165 = vmatpush1.bf16.msra.mxu1 %v12046_v38  ;;  %v12072_v60 = vld [vmem:[#allocation69_spill] sm:$0xff]  ;;  %v12073_v38 = vld [vmem:[#allocation70_spill] sm:$0xff] }
 0x692   :  { %7063 = vmatprep.subr.bf16.mxu0 %v12047_v17  ;;  %7167 = vmatprep.subr.bf16.mxu1 %v12048_v7  ;;  %v12074_v17 = vld [vmem:[#allocation71_spill] sm:$0xff]  ;;  %v12075_v7 = vld [vmem:[#allocation72_spill] sm:$0xff] }
 0x695   :  { %7065 = vmatpush1.bf16.msra.mxu0 %v12049_v8  ;;  %7169 = vmatpush1.bf16.msra.mxu1 %v12050_v10  ;;  %v12076_v8 = vld [vmem:[#allocation73_spill] sm:$0xff]  ;;  %v12077_v10 = vld [vmem:[#allocation74_spill] sm:$0xff] }
 0x696   :  { %7067 = vmatprep.subr.bf16.mxu0 %v12051_v12  ;;  %7171 = vmatprep.subr.bf16.mxu1 %v12052_v59  ;;  %v12078_v12 = vld [vmem:[#allocation75_spill] sm:$0xff]  ;;  %v12079_v59 = vld [vmem:[#allocation76_spill] sm:$0xff] }
 0x699   :  { %7069 = vmatpush1.bf16.msra.mxu0 %v12053_v18  ;;  %7173 = vmatpush1.bf16.msra.mxu1 %v12054_v21  ;;  %v12080_v18 = vld [vmem:[#allocation77_spill] sm:$0xff]  ;;  %v12081_v21 = vld [vmem:[#allocation78_spill] sm:$0xff] }
 0x69a   :  { %7071 = vmatprep.subr.bf16.mxu0 %v12055_v27  ;;  %7175 = vmatprep.subr.bf16.mxu1 %v12056_v32  ;;  %v12082_v27 = vld [vmem:[#allocation79_spill] sm:$0xff]  ;;  %v12083_v32 = vld [vmem:[#allocation80_spill] sm:$0xff] }
 0x726   :  { %v3869_v41 = vpop.f32.mrb[36].mxu0  ;;  %v3946_v42 = vpop.f32.mrb[48].mxu1 }
 0x727   :  { %v3871_v46 = vpop.f32.mrb[37].mxu0  ;;  %v3948_v47 = vpop.f32.mrb[49].mxu1 }
 0x72a   :  { %v3875_v55 = vpop.f32.mrb[38].mxu0  ;;  %v3952_v58 = vpop.f32.mrb[50].mxu1 }
 0x72b   :  { %v3877_v3 = vpop.f32.mrb[39].mxu0  ;;  %v3954_v5 = vpop.f32.mrb[51].mxu1 }
 0x72e   :  { %v4023_v20 = vpop.f32.mrb[40].mxu0  ;;  %v4100_v23 = vpop.f32.mrb[52].mxu1 }
 0x72f   :  { %v4111_v29 = vmax.f32 %v3869_v41, %v4023_v20  ;;  %v4025_v30 = vpop.f32.mrb[41].mxu0  ;;  %v10753_v40 = vmax.f32 %v3946_v42, %v4100_v23  ;;  %v4102_v48 = vpop.f32.mrb[53].mxu1  ;;  %v12084_v41 = vld [vmem:[#allocation81_spill] sm:$0xff]  ;;  %v12085_v42 = vld [vmem:[#allocation82_spill] sm:$0xff] }
 0x730   :  { %v4112_v63 = vmax.f32 %v3871_v46, %v4025_v30  ;;  %v4114_v26 = vmax.f32 %v3948_v47, %v4102_v48  ;;  %v12086_v46 = vld [vmem:[#allocation83_spill] sm:$0xff]  ;;  %v12087_v47 = vld [vmem:[#allocation84_spill] sm:$0xff] }
 0x731   :  { %v7790_v20 = vld [vmem:[%s11639_s7 + $0x150] ss:$12 sps:$4 sm:$0xff]   ;;  %v7791_v23 = vld [vmem:[%s11639_s7 + $0x158] ss:$12 sps:$4 sm:$0xff]   ;;  %v7793_v30 = vld [vmem:[%s11639_s7 + $0x168] ss:$12 sps:$4 sm:$0xff]  }
 0x732   :  { %v4029_v16 = vpop.f32.mrb[42].mxu0  ;;  %4189 = vmatprep.mubr.f32.mxu0 %v4112_v63  ;;  %4343 = vmatprep.mubr.f32.mxu1 %v4112_v63  ;;  %v4106_v22 = vpop.f32.mrb[54].mxu1  ;;  %v7795_v48 = vld [vmem:[%s11639_s7 + $0x184] ss:$12 sps:$4 sm:$0xff]   ;;  %v7796_v63 = vld [vmem:[%s11639_s7 + $0x180] ss:$12 sps:$4 sm:$0xff]  }
 0x733   :  { %v4115_v25 = vmax.f32 %v3875_v55, %v4029_v16  ;;  %v4031_v9 = vpop.f32.mrb[43].mxu0  ;;  %4190 = vmatmul.mubr.f32.vlgmr.msra.gmra.mrb[44].mxu0 %v4111_v29  ;;  %4344 = vmatmul.mubr.f32.vlgmr.msra.gmra.mrb[56].mxu1 %v4111_v29  ;;  %v4117_v28 = vmax.f32 %v3952_v58, %v4106_v22  ;;  %v4108_v4 = vpop.f32.mrb[55].mxu1  ;;  %v7786_v55 = vld [vmem:[%s11639_s7 + $0x13c] ss:$12 sps:$4 sm:$0xff]   ;;  %v7787_v58 = vld [vmem:[%s11639_s7 + $0x138] ss:$12 sps:$4 sm:$0xff]  }
 0x734   :  { %v4116_v33 = vmax.f32 %v3877_v3, %v4031_v9  ;;  %7073 = vmatpush1.bf16.msra.mxu0 %v8909_v53  ;;  %7177 = vmatpush1.bf16.msra.mxu1 %v8911_v24  ;;  %v4118_v34 = vmax.f32 %v3954_v5, %v4108_v4  ;;  %v12058_v24 = vld [vmem:[#allocation55_spill] sm:$0xff]  ;;  %v12061_v53 = vld [vmem:[#allocation58_spill] sm:$0xff] }
 0x735   :  { %7075 = vmatprep.subr.bf16.mxu0 %v8919_v19  ;;  %7179 = vmatprep.subr.bf16.mxu1 %v8921_v51  ;;  %v12059_v19 = vld [vmem:[#allocation56_spill] sm:$0xff]  ;;  %v12060_v51 = vld [vmem:[#allocation57_spill] sm:$0xff] }
 0x736   :  { %4195 = vmatprep.mubr.f32.mxu0 %v4116_v33  ;;  %4349 = vmatprep.mubr.f32.mxu1 %v4116_v33  ;;  %v7788_v3 = vld [vmem:[%s11639_s7 + $0x140] ss:$12 sps:$4 sm:$0xff]   ;;  %v7798_v16 = vld [vmem:[%s11639_s7 + $0x19c] ss:$12 sps:$4 sm:$0xff]   ;;  %v7799_v22 = vld [vmem:[%s11639_s7 + $0x198] ss:$12 sps:$4 sm:$0xff]  }
 0x737   :  { %4196 = vmatmul.mubr.f32.gmra.mrb[46].mxu0 %v4115_v25  ;;  %4350 = vmatmul.mubr.f32.gmra.mrb[58].mxu1 %v4115_v25  ;;  %v7789_v5 = vld [vmem:[%s11639_s7 + $0x154] ss:$12 sps:$4 sm:$0xff]   ;;  %v7792_v29 = vld [vmem:[%s11639_s7 + $0x16c] ss:$12 sps:$4 sm:$0xff]  }
 0x738   :  { %7077 = vmatpush1.bf16.msra.mxu0 %v8945_v43  ;;  %7181 = vmatpush1.bf16.msra.mxu1 %v8947_v50  ;;  %v12063_v43 = vld [vmem:[#allocation60_spill] sm:$0xff]  ;;  %v12064_v50 = vld [vmem:[#allocation61_spill] sm:$0xff] }
 0x739   :  { %7079 = vmatprep.subr.bf16.mxu0 %v8957_v54  ;;  %7183 = vmatprep.subr.bf16.mxu1 %v12057_v49  ;;  %v12065_v54 = vld [vmem:[#allocation62_spill] sm:$0xff]  ;;  %v7801_v9 = vld [vmem:[%s11639_s7 + $0x1b4] ss:$12 sps:$4 sm:$0xff]   ;;  %v7803_v4 = vld [vmem:[%s11639_s7 + $0x1b8] ss:$12 sps:$4 sm:$0xff]  }
 0x73a   :  { %6366 = vmatprep.mubr.msk.f32.mxu0 %vm1107_vm8, %v4114_v26  ;;  %6368 = vmatprep.mubr.msk.f32.mxu1 %vm1107_vm8, %v4114_v26  ;;  %v7797_v26 = vld [vmem:[%s11639_s7 + $0x188] ss:$12 sps:$4 sm:$0xff]   ;;  %v7800_v25 = vld [vmem:[%s11639_s7 + $0x1a0] ss:$12 sps:$4 sm:$0xff]   ;;  %v7806_v49 = vld [vmem:[%s11639_s7 + $0x1d0] ss:$12 sps:$4 sm:$0xff]  }
 0x73b   :  { %v7804_v33 = vld [vmem:[%s11639_s7 + $0x1cc] ss:$12 sps:$4 sm:$0xff]  }
 0x73c   :  { %7081 = vmatpush1.bf16.msra.mxu0 %v12058_v24  ;;  %7185 = vmatpush1.bf16.msra.mxu1 %v12059_v19  ;;  %v7807_v24 = vld [vmem:[%s11639_s7 + $0x1e4] ss:$12 sps:$4 sm:$0xff]   ;;  %v7808_v19 = vld [vmem:[%s11639_s7 + $0x1e0] ss:$12 sps:$4 sm:$0xff]  }
 0x73d   :  { %7083 = vmatprep.subr.bf16.mxu0 %v12060_v51  ;;  %7187 = vmatprep.subr.bf16.mxu1 %v12061_v53  ;;  %v7809_v51 = vld [vmem:[%s11639_s7 + $0x1e8] ss:$12 sps:$4 sm:$0xff]  }
 0x73e   :  { %v7810_v53 = vld [vmem:[%s11639_s7 + $0x1fc] ss:$12 sps:$4 sm:$0xff]  }
 0x740   :  { %7085 = vmatpush1.bf16.msra.mxu0 %v12062_v13  ;;  %7189 = vmatpush1.bf16.msra.mxu1 %v12063_v43  ;;  %v7811_v13 = vld [vmem:[%s11639_s7 + $0x1f8] ss:$12 sps:$4 sm:$0xff]   ;;  %v7812_v43 = vld [vmem:[%s11639_s7 + $0x200] ss:$12 sps:$4 sm:$0xff]  }
 0x741   :  { %7087 = vmatprep.subr.bf16.mxu0 %v12064_v50  ;;  %7191 = vmatprep.subr.bf16.mxu1 %v12065_v54  ;;  %v7813_v50 = vld [vmem:[%s11639_s7 + $0x214] ss:$12 sps:$4 sm:$0xff]   ;;  %v7814_v54 = vld [vmem:[%s11639_s7 + $0x210] ss:$12 sps:$4 sm:$0xff]  }
 0x744   :  { %7089 = vmatpush1.bf16.msra.mxu0 %v12066_v31  ;;  %7193 = vmatpush1.bf16.msra.mxu1 %v12067_v61  ;;  %v7815_v31 = vld [vmem:[%s11639_s7 + $0x218] ss:$12 sps:$4 sm:$0xff]  }
 0x745   :  { %7091 = vmatprep.subr.bf16.mxu0 %v12068_v37  ;;  %7195 = vmatprep.subr.bf16.mxu1 %v12069_v45  ;;  %v7816_v61 = vld [vmem:[%s11639_s7 + $0x22c] ss:$12 sps:$4 sm:$0xff]   ;;  %v7817_v37 = vld [vmem:[%s11639_s7 + $0x228] ss:$12 sps:$4 sm:$0xff]   ;;  %v7818_v45 = vld [vmem:[%s11639_s7 + $0x230] ss:$12 sps:$4 sm:$0xff]  }
 0x748   :  { %7093 = vmatpush1.bf16.msra.mxu0 %v12070_v0  ;;  %7197 = vmatpush1.bf16.msra.mxu1 %v12071_v52  ;;  %v7819_v0 = vld [vmem:[%s11639_s7 + $0x244] ss:$12 sps:$4 sm:$0xff]   ;;  %v7820_v52 = vld [vmem:[%s11639_s7 + $0x240] ss:$12 sps:$4 sm:$0xff]  }
 0x749   :  { %7095 = vmatprep.subr.bf16.mxu0 %v12072_v60  ;;  %7199 = vmatprep.subr.bf16.mxu1 %v12073_v38  ;;  %v7821_v60 = vld [vmem:[%s11639_s7 + $0x248] ss:$12 sps:$4 sm:$0xff]  }
 0x74a   :  { %v7822_v38 = vld [vmem:[%s11639_s7 + $0x25c] ss:$12 sps:$4 sm:$0xff]  }
 0x74c   :  { %7097 = vmatpush1.bf16.msra.mxu0 %v12074_v17  ;;  %7201 = vmatpush1.bf16.msra.mxu1 %v12075_v7  ;;  %v7823_v17 = vld [vmem:[%s11639_s7 + $0x258] ss:$12 sps:$4 sm:$0xff]   ;;  %v7824_v7 = vld [vmem:[%s11639_s7 + $0x260] ss:$12 sps:$4 sm:$0xff]  }
 0x74d   :  { %7099 = vmatprep.subr.bf16.mxu0 %v12076_v8  ;;  %7203 = vmatprep.subr.bf16.mxu1 %v12077_v10  ;;  %v7825_v8 = vld [vmem:[%s11639_s7 + $0x4] ss:$12 sps:$4 sm:$0xff]  }
 0x750   :  { %7101 = vmatpush1.bf16.msra.mxu0 %v12078_v12  ;;  %7205 = vmatpush1.bf16.msra.mxu1 %v12079_v59 }
 0x751   :  { %7103 = vmatprep.subr.bf16.mxu0 %v12080_v18  ;;  %7207 = vmatprep.subr.bf16.mxu1 %v12081_v21 }
 0x754   :  { %7105 = vmatpush1.bf16.msra.mxu0 %v12082_v27  ;;  %7209 = vmatpush1.bf16.msra.mxu1 %v12083_v32 }
 0x755   :  { %7107 = vmatprep.subr.bf16.mxu0 %v12084_v41  ;;  %7211 = vmatprep.subr.bf16.mxu1 %v12085_v42 }
 0x758   :  { %7109 = vmatpush1.bf16.msra.mxu0 %v12086_v46  ;;  %7213 = vmatpush1.bf16.msra.mxu1 %v12087_v47 }
 0x759   :  { %4461 = vmatprep.subr.bf16.mxu0 %v7786_v55  ;;  %4504 = vmatprep.subr.bf16.mxu1 %v11916_v6 }
 0x75b   :  { %4267 = vmatmul.mubr.f32.vlgmr.msra.gmra.mrb[44].mxu0 %v10753_v40  ;;  %4421 = vmatmul.mubr.f32.vlgmr.msra.gmra.mrb[56].mxu1 %v10753_v40  ;;  %v7794_v40 = vld [vmem:[%s11639_s7 + $0x170] ss:$12 sps:$4 sm:$0xff]  }
 0x75c   :  { %6367 = vmatprep.mubr.msk.f32.mxu0 %vm1107_vm8, %v4118_v34  ;;  %6369 = vmatprep.mubr.msk.f32.mxu1 %vm1107_vm8, %v4118_v34  ;;  %v7805_v34 = vld [vmem:[%s11639_s7 + $0x1c8] ss:$12 sps:$4 sm:$0xff]  }
 0x75d   :  { %4462 = vmatpush1.bf16.msra.mxu0 %v7787_v58  ;;  %4505 = vmatpush1.bf16.msra.mxu1 %v7788_v3 }
 0x75e   :  { %4463 = vmatprep.subr.bf16.mxu0 %v7789_v5  ;;  %4506 = vmatprep.subr.bf16.mxu1 %v11916_v6 }
 0x75f   :  { %4273 = vmatmul.mubr.f32.gmra.mrb[46].mxu0 %v4117_v28  ;;  %4427 = vmatmul.mubr.f32.gmra.mrb[58].mxu1 %v4117_v28  ;;  %v7802_v28 = vld [vmem:[%s11639_s7 + $0x1b0] ss:$12 sps:$4 sm:$0xff]  }
 0x761   :  { %4464 = vmatpush1.bf16.msra.mxu0 %v7790_v20  ;;  %4507 = vmatpush1.bf16.msra.mxu1 %v7791_v23 }
 0x762   :  { %4465 = vmatprep.subr.bf16.mxu0 %v7792_v29  ;;  %4508 = vmatprep.subr.bf16.mxu1 %v11916_v6 }
 0x765   :  { %4466 = vmatpush1.bf16.msra.mxu0 %v7793_v30  ;;  %4509 = vmatpush1.bf16.msra.mxu1 %v7794_v40 }
 0x766   :  { %4467 = vmatprep.subr.bf16.mxu0 %v7795_v48  ;;  %4510 = vmatprep.subr.bf16.mxu1 %v11916_v6 }
 0x769   :  { %4468 = vmatpush1.bf16.msra.mxu0 %v7796_v63  ;;  %4511 = vmatpush1.bf16.msra.mxu1 %v7797_v26 }
 0x76a   :  { %4469 = vmatprep.subr.bf16.mxu0 %v7798_v16  ;;  %4512 = vmatprep.subr.bf16.mxu1 %v11916_v6 }
 0x76d   :  { %4470 = vmatpush1.bf16.msra.mxu0 %v7799_v22  ;;  %4513 = vmatpush1.bf16.msra.mxu1 %v7800_v25 }
 0x76e   :  { %4471 = vmatprep.subr.bf16.mxu0 %v7801_v9  ;;  %4514 = vmatprep.subr.bf16.mxu1 %v11916_v6  ;;  %v7826_v9 = vld [vmem:[%s11639_s7] ss:$12 sps:$4 sm:$0xff]  }
 0x771   :  { %4472 = vmatpush1.bf16.msra.mxu0 %v7802_v28  ;;  %4515 = vmatpush1.bf16.msra.mxu1 %v7803_v4  ;;  %v7827_v28 = vld [vmem:[%s11639_s7 + $0x8] ss:$12 sps:$4 sm:$0xff]  }
 0x772   :  { %4473 = vmatprep.subr.bf16.mxu0 %v7804_v33  ;;  %4516 = vmatprep.subr.bf16.mxu1 %v11916_v6  ;;  %v7828_v4 = vld [vmem:[%s11639_s7 + $0x1c] ss:$12 sps:$4 sm:$0xff]   ;;  %v7829_v33 = vld [vmem:[%s11639_s7 + $0x18] ss:$12 sps:$4 sm:$0xff]  }
 0x775   :  { %4474 = vmatpush1.bf16.msra.mxu0 %v7805_v34  ;;  %4517 = vmatpush1.bf16.msra.mxu1 %v7806_v49  ;;  %v7830_v34 = vld [vmem:[%s11639_s7 + $0x20] ss:$12 sps:$4 sm:$0xff]  }
 0x776   :  { %4475 = vmatprep.subr.bf16.mxu0 %v7807_v24  ;;  %4518 = vmatprep.subr.bf16.mxu1 %v11916_v6  ;;  %v7831_v49 = vld [vmem:[%s11639_s7 + $0x34] ss:$12 sps:$4 sm:$0xff]   ;;  %v7832_v24 = vld [vmem:[%s11639_s7 + $0x30] ss:$12 sps:$4 sm:$0xff]  }
 0x779   :  { %4476 = vmatpush1.bf16.msra.mxu0 %v7808_v19  ;;  %4519 = vmatpush1.bf16.msra.mxu1 %v7809_v51  ;;  %v7833_v19 = vld [vmem:[%s11639_s7 + $0x38] ss:$12 sps:$4 sm:$0xff]  }
 0x77a   :  { %4477 = vmatprep.subr.bf16.mxu0 %v7810_v53  ;;  %4520 = vmatprep.subr.bf16.mxu1 %v11916_v6  ;;  %v7834_v51 = vld [vmem:[%s11639_s7 + $0x4c] ss:$12 sps:$4 sm:$0xff]   ;;  %v7835_v53 = vld [vmem:[%s11639_s7 + $0x48] ss:$12 sps:$4 sm:$0xff]  }
 0x77d   :  { %4478 = vmatpush1.bf16.msra.mxu0 %v7811_v13  ;;  %4521 = vmatpush1.bf16.msra.mxu1 %v7812_v43  ;;  %v7836_v13 = vld [vmem:[%s11639_s7 + $0x50] ss:$12 sps:$4 sm:$0xff]  }
 0x77e   :  { %4479 = vmatprep.subr.bf16.mxu0 %v7813_v50  ;;  %4522 = vmatprep.subr.bf16.mxu1 %v11916_v6  ;;  %v7837_v43 = vld [vmem:[%s11639_s7 + $0x64] ss:$12 sps:$4 sm:$0xff]   ;;  %v7838_v50 = vld [vmem:[%s11639_s7 + $0x60] ss:$12 sps:$4 sm:$0xff]  }
 0x781   :  { %4480 = vmatpush1.bf16.msra.mxu0 %v7814_v54  ;;  %4523 = vmatpush1.bf16.msra.mxu1 %v7815_v31  ;;  %v7839_v54 = vld [vmem:[%s11639_s7 + $0x68] ss:$12 sps:$4 sm:$0xff]  }
 0x782   :  { %4481 = vmatprep.subr.bf16.mxu0 %v7816_v61  ;;  %4524 = vmatprep.subr.bf16.mxu1 %v11916_v6  ;;  %v7840_v31 = vld [vmem:[%s11639_s7 + $0x7c] ss:$12 sps:$4 sm:$0xff]   ;;  %v7841_v61 = vld [vmem:[%s11639_s7 + $0x78] ss:$12 sps:$4 sm:$0xff]  }
 0x785   :  { %4482 = vmatpush1.bf16.msra.mxu0 %v7817_v37  ;;  %4525 = vmatpush1.bf16.msra.mxu1 %v7818_v45  ;;  %v7842_v37 = vld [vmem:[%s11639_s7 + $0x80] ss:$12 sps:$4 sm:$0xff]  }
 0x786   :  { %4483 = vmatprep.subr.bf16.mxu0 %v7819_v0  ;;  %4526 = vmatprep.subr.bf16.mxu1 %v11916_v6  ;;  %v7843_v45 = vld [vmem:[%s11639_s7 + $0x94] ss:$12 sps:$4 sm:$0xff]   ;;  %v7844_v0 = vld [vmem:[%s11639_s7 + $0x90] ss:$12 sps:$4 sm:$0xff]  }
 0x789   :  { %4484 = vmatpush1.bf16.msra.mxu0 %v7820_v52  ;;  %4527 = vmatpush1.bf16.msra.mxu1 %v7821_v60  ;;  %v7845_v52 = vld [vmem:[%s11639_s7 + $0x98] ss:$12 sps:$4 sm:$0xff]  }
 0x78a   :  { %4485 = vmatprep.subr.bf16.mxu0 %v7822_v38  ;;  %4528 = vmatprep.subr.bf16.mxu1 %v11916_v6  ;;  %v7846_v60 = vld [vmem:[%s11639_s7 + $0xac] ss:$12 sps:$4 sm:$0xff]   ;;  %v7847_v38 = vld [vmem:[%s11639_s7 + $0xa8] ss:$12 sps:$4 sm:$0xff]  }
 0x78d   :  { %4486 = vmatpush1.bf16.msra.mxu0 %v7823_v17  ;;  %4529 = vmatpush1.bf16.msra.mxu1 %v7824_v7  ;;  %v7848_v17 = vld [vmem:[%s11639_s7 + $0xb0] ss:$12 sps:$4 sm:$0xff]  }
 0x78e   :  { %4547 = vmatprep.subr.bf16.mxu0 %v7825_v8  ;;  %4590 = vmatprep.subr.bf16.mxu1 %v11916_v6  ;;  %v7849_v7 = vld [vmem:[%s11639_s7 + $0xc4] ss:$12 sps:$4 sm:$0xff]   ;;  %v7850_v8 = vld [vmem:[%s11639_s7 + $0xc0] ss:$12 sps:$4 sm:$0xff]  }
 0x82e   :  { %v4268_v10 = vpop.f32.mrb[44].mxu0  ;;  %v4422_v12 = vpop.f32.mrb[56].mxu1 }
 0x82f   :  { %v4433_v59 = vmax.f32 %v4268_v10, %v4422_v12  ;;  %v4270_v18 = vpop.f32.mrb[45].mxu0  ;;  %v4424_v21 = vpop.f32.mrb[57].mxu1  ;;  %v7851_v10 = vld [vmem:[%s11639_s7 + $0xc8] ss:$12 sps:$4 sm:$0xff]  }
 0x830   :  { %v4434_v27 = vmax.f32 %v4270_v18, %v4424_v21  ;;  %v7852_v12 = vld [vmem:[%s11639_s7 + $0xdc] ss:$12 sps:$4 sm:$0xff]   ;;  %v7854_v18 = vld [vmem:[%s11639_s7 + $0xe0] ss:$12 sps:$4 sm:$0xff]  }
 0x831   :  { %v4437_v58 = vmax.f32 %v4433_v59, 0.0  ;;  %v7853_v59 = vld [vmem:[%s11639_s7 + $0xd8] ss:$12 sps:$4 sm:$0xff]   ;;  %v7855_v21 = vld [vmem:[%s11639_s7 + $0xf4] ss:$12 sps:$4 sm:$0xff]  }
 0x832   :  { %v4274_v32 = vpop.f32.mrb[46].mxu0  ;;  %v4428_v41 = vpop.f32.mrb[58].mxu1  ;;  %v4438_v5 = vmax.f32 %v4434_v27, 0.0  ;;  %v7856_v27 = vld [vmem:[%s11639_s7 + $0xf0] ss:$12 sps:$4 sm:$0xff]  }
 0x833   :  { %v4435_v42 = vmax.f32 %v4274_v32, %v4428_v41  ;;  %v4276_v46 = vpop.f32.mrb[47].mxu0  ;;  %v4430_v47 = vpop.f32.mrb[59].mxu1  ;;  %v7857_v32 = vld [vmem:[%s11639_s7 + $0xf8] ss:$12 sps:$4 sm:$0xff]  }
 0x834   :  { %v4436_v55 = vmax.f32 %v4276_v46, %v4430_v47  ;;  %v7858_v41 = vld [vmem:[%s11639_s7 + $0x10c] ss:$12 sps:$4 sm:$0xff]   ;;  %v7860_v46 = vld [vmem:[%s11639_s7 + $0x110] ss:$12 sps:$4 sm:$0xff]  }
 0x835   :  { %v4439_v3 = vmax.f32 %v4435_v42, 0.0  ;;  %v7859_v42 = vld [vmem:[%s11639_s7 + $0x108] ss:$12 sps:$4 sm:$0xff]   ;;  %v7861_v47 = vld [vmem:[%s11639_s7 + $0x124] ss:$12 sps:$4 sm:$0xff]  }
 0x836   :  { %v4440_v20 = vmax.f32 %v4436_v55, 0.0  ;;  %v7862_v55 = vld [vmem:[%s11639_s7 + $0x120] ss:$12 sps:$4 sm:$0xff]  }
 0x837   :  { %v10933_v23 = vpack.c.bf16 %v4439_v3, %v4437_v58  ;;  %v7863_v58 = vld [vmem:[%s11639_s7 + $0x128] ss:$12 sps:$4 sm:$0xff]  }
 0x838   :  { %v10935_v29 = vpack.c.bf16 %v4440_v20, %v4438_v5  ;;  %v7864_v3 = vld [vmem:[%s11639_s7 + $0x274] ss:$12 sps:$4 sm:$0xff]   ;;  %v7865_v20 = vld [vmem:[%s11639_s7 + $0x270] ss:$12 sps:$4 sm:$0xff]  }
 0x839   :  { %v4446_v30 = vshll.u32 %v10933_v23, 16  ;;  %v4444_v16 = vshrl.u32 %v10933_v23, 16 }
 0x83a   :  { %v4453_v40 = vshll.u32 %v10935_v29, 16  ;;  %v4451_v63 = vshrl.u32 %v10935_v29, 16  ;;  %v4634_v5 = vrot.slane %v10935_v29, 1 }
 0x83b   :  { %v4448_v48 = vrot.slane %v4446_v30, 1  ;;  %v7866_v30 = vld [vmem:[%s11639_s7 + $0x278] ss:$12 sps:$4 sm:$0xff]  }
 0x83c   :  { %v4455_v26 = vrot.slane %v4453_v40, 1  ;;  %v7868_v40 = vld [vmem:[%s11639_s7 + $0x288] ss:$12 sps:$4 sm:$0xff]  }
 0x83d   :  { %v4449_v25 = vor.u32 %v4448_v48, %v4444_v16  ;;  %v7869_v48 = vld [vmem:[%s11639_s7 + $0x290] ss:$12 sps:$4 sm:$0xff]   ;;  %v7872_v16 = vld [vmem:[%s11639_s7 + $0x2a8] ss:$12 sps:$4 sm:$0xff]  }
 0x83e   :  { %v4456_v22 = vor.u32 %v4455_v26, %v4451_v63  ;;  %v7870_v63 = vld [vmem:[%s11639_s7 + $0x2a4] ss:$12 sps:$4 sm:$0xff]   ;;  %v7871_v26 = vld [vmem:[%s11639_s7 + $0x2a0] ss:$12 sps:$4 sm:$0xff]  }
 0x840   :  { %6370 = vmatprep.mubr.msk.bf16.mxu0 %vm1863_vm9, %v4456_v22  ;;  %6371 = vmatprep.mubr.msk.bf16.mxu1 %vm1863_vm9, %v4456_v22  ;;  %v7873_v22 = vld [vmem:[%s11639_s7 + $0x2bc] ss:$12 sps:$4 sm:$0xff]  }
 0x841   :  { %4494 = vmatmul.mubr.bf16.vlgmr.msra.gmra.mrb[48].mxu0 %v4449_v25  ;;  %4537 = vmatmul.mubr.bf16.vlgmr.msra.gmra.mrb[60].mxu1 %v4449_v25  ;;  %v7874_v25 = vld [vmem:[%s11639_s7 + $0x2b8] ss:$12 sps:$4 sm:$0xff]  }
 0x842   :  { %4548 = vmatpush1.bf16.msra.mxu0 %v7826_v9  ;;  %4591 = vmatpush1.bf16.msra.mxu1 %v7827_v28  ;;  %v7875_v9 = vld [vmem:[%s11639_s7 + $0x2c0] ss:$12 sps:$4 sm:$0xff]  }
 0x843   :  { %6372 = vmatprep.mubr.msk.bf16.mxu0 %vm1863_vm9, %v10935_v29  ;;  %6373 = vmatprep.mubr.msk.bf16.mxu1 %vm1863_vm9, %v10935_v29  ;;  %v7867_v29 = vld [vmem:[%s11639_s7 + $0x28c] ss:$12 sps:$4 sm:$0xff]   ;;  %v7876_v28 = vld [vmem:[%s11639_s7 + $0x2d4] ss:$12 sps:$4 sm:$0xff]  }
 0x844   :  { %4549 = vmatprep.subr.bf16.mxu0 %v7828_v4  ;;  %4592 = vmatprep.subr.bf16.mxu1 %v11916_v6  ;;  %v7877_v4 = vld [vmem:[%s11639_s7 + $0x2d0] ss:$12 sps:$4 sm:$0xff]  }
 0x846   :  { %4550 = vmatpush1.bf16.msra.mxu0 %v7829_v33  ;;  %4593 = vmatpush1.bf16.msra.mxu1 %v7830_v34  ;;  %v7878_v33 = vld [vmem:[%s11639_s7 + $0x2d8] ss:$12 sps:$4 sm:$0xff]  }
 0x847   :  { %4551 = vmatprep.subr.bf16.mxu0 %v7831_v49  ;;  %4594 = vmatprep.subr.bf16.mxu1 %v11916_v6  ;;  %v7879_v34 = vld [vmem:[%s11639_s7 + $0x2ec] ss:$12 sps:$4 sm:$0xff]   ;;  %v7880_v49 = vld [vmem:[%s11639_s7 + $0x2e8] ss:$12 sps:$4 sm:$0xff]  }
 0x84a   :  { %4552 = vmatpush1.bf16.msra.mxu0 %v7832_v24  ;;  %4595 = vmatpush1.bf16.msra.mxu1 %v7833_v19  ;;  %v7881_v24 = vld [vmem:[%s11639_s7 + $0x2f0] ss:$12 sps:$4 sm:$0xff]  }
 0x84b   :  { %4553 = vmatprep.subr.bf16.mxu0 %v7834_v51  ;;  %4596 = vmatprep.subr.bf16.mxu1 %v11916_v6  ;;  %v7882_v19 = vld [vmem:[%s11639_s7 + $0x304] ss:$12 sps:$4 sm:$0xff]   ;;  %v7883_v51 = vld [vmem:[%s11639_s7 + $0x300] ss:$12 sps:$4 sm:$0xff]  }
 0x84e   :  { %4554 = vmatpush1.bf16.msra.mxu0 %v7835_v53  ;;  %4597 = vmatpush1.bf16.msra.mxu1 %v7836_v13  ;;  %v7884_v53 = vld [vmem:[%s11639_s7 + $0x308] ss:$12 sps:$4 sm:$0xff]  }
 0x84f   :  { %4555 = vmatprep.subr.bf16.mxu0 %v7837_v43  ;;  %4598 = vmatprep.subr.bf16.mxu1 %v11916_v6  ;;  %v7885_v13 = vld [vmem:[%s11639_s7 + $0x31c] ss:$12 sps:$4 sm:$0xff]   ;;  %v7886_v43 = vld [vmem:[%s11639_s7 + $0x318] ss:$12 sps:$4 sm:$0xff]  }
 0x852   :  { %4556 = vmatpush1.bf16.msra.mxu0 %v7838_v50  ;;  %4599 = vmatpush1.bf16.msra.mxu1 %v7839_v54  ;;  %v7887_v50 = vld [vmem:[%s11639_s7 + $0x320] ss:$12 sps:$4 sm:$0xff]  }
 0x853   :  { %4557 = vmatprep.subr.bf16.mxu0 %v7840_v31  ;;  %4600 = vmatprep.subr.bf16.mxu1 %v11916_v6  ;;  %v7888_v54 = vld [vmem:[%s11639_s7 + $0x334] ss:$12 sps:$4 sm:$0xff]   ;;  %v7889_v31 = vld [vmem:[%s11639_s7 + $0x330] ss:$12 sps:$4 sm:$0xff]  }
 0x856   :  { %4558 = vmatpush1.bf16.msra.mxu0 %v7841_v61  ;;  %4601 = vmatpush1.bf16.msra.mxu1 %v7842_v37  ;;  %v7890_v61 = vld [vmem:[%s11639_s7 + $0x338] ss:$12 sps:$4 sm:$0xff]  }
 0x857   :  { %4559 = vmatprep.subr.bf16.mxu0 %v7843_v45  ;;  %4602 = vmatprep.subr.bf16.mxu1 %v11916_v6  ;;  %v7891_v37 = vld [vmem:[%s11639_s7 + $0x34c] ss:$12 sps:$4 sm:$0xff]   ;;  %v7892_v45 = vld [vmem:[%s11639_s7 + $0x348] ss:$12 sps:$4 sm:$0xff]  }
 0x85a   :  { %4560 = vmatpush1.bf16.msra.mxu0 %v7844_v0  ;;  %4603 = vmatpush1.bf16.msra.mxu1 %v7845_v52  ;;  %v7893_v0 = vld [vmem:[%s11639_s7 + $0x350] ss:$12 sps:$4 sm:$0xff]  }
 0x85b   :  { %4561 = vmatprep.subr.bf16.mxu0 %v7846_v60  ;;  %4604 = vmatprep.subr.bf16.mxu1 %v11916_v6  ;;  %v7894_v52 = vld [vmem:[%s11639_s7 + $0x364] ss:$12 sps:$4 sm:$0xff]   ;;  %v7895_v60 = vld [vmem:[%s11639_s7 + $0x360] ss:$12 sps:$4 sm:$0xff]  }
 0x85e   :  { %4562 = vmatpush1.bf16.msra.mxu0 %v7847_v38  ;;  %4605 = vmatpush1.bf16.msra.mxu1 %v7848_v17  ;;  %v7896_v38 = vld [vmem:[%s11639_s7 + $0x368] ss:$12 sps:$4 sm:$0xff]  }
 0x85f   :  { %4563 = vmatprep.subr.bf16.mxu0 %v7849_v7  ;;  %4606 = vmatprep.subr.bf16.mxu1 %v11916_v6  ;;  %v7897_v17 = vld [vmem:[%s11639_s7 + $0x37c] ss:$12 sps:$4 sm:$0xff]   ;;  %v7898_v7 = vld [vmem:[%s11639_s7 + $0x378] ss:$12 sps:$4 sm:$0xff]  }
 0x862   :  { %4564 = vmatpush1.bf16.msra.mxu0 %v7850_v8  ;;  %4607 = vmatpush1.bf16.msra.mxu1 %v7851_v10  ;;  %v7899_v8 = vld [vmem:[%s11639_s7 + $0x380] ss:$12 sps:$4 sm:$0xff]  }
 0x863   :  { %4565 = vmatprep.subr.bf16.mxu0 %v7852_v12  ;;  %4608 = vmatprep.subr.bf16.mxu1 %v11916_v6  ;;  %v7900_v10 = vld [vmem:[%s11639_s7 + $0x394] ss:$12 sps:$4 sm:$0xff]   ;;  %v7901_v12 = vld [vmem:[%s11639_s7 + $0x390] ss:$12 sps:$4 sm:$0xff]  }
 0x866   :  { %4566 = vmatpush1.bf16.msra.mxu0 %v7853_v59  ;;  %4609 = vmatpush1.bf16.msra.mxu1 %v7854_v18  ;;  %v7902_v59 = vld [vmem:[%s11639_s7 + $0x398] ss:$12 sps:$4 sm:$0xff]   ;;  %v4633_v18 = vrot.slane %v10933_v23, 1 }
 0x867   :  { %4567 = vmatprep.subr.bf16.mxu0 %v7855_v21  ;;  %4610 = vmatprep.subr.bf16.mxu1 %v11916_v6  ;;  %v12088_v21 = vmov 0.0|0.0  }
 0x86a   :  { %4568 = vmatpush1.bf16.msra.mxu0 %v7856_v27  ;;  %4611 = vmatpush1.bf16.msra.mxu1 %v7857_v32 }
 0x86b   :  { %4569 = vmatprep.subr.bf16.mxu0 %v7858_v41  ;;  %4612 = vmatprep.subr.bf16.mxu1 %v11916_v6 }
 0x86e   :  { %4570 = vmatpush1.bf16.msra.mxu0 %v7859_v42  ;;  %4613 = vmatpush1.bf16.msra.mxu1 %v7860_v46 }
 0x86f   :  { %4571 = vmatprep.subr.bf16.mxu0 %v7861_v47  ;;  %4614 = vmatprep.subr.bf16.mxu1 %v11916_v6 }
 0x872   :  { %4572 = vmatpush1.bf16.msra.mxu0 %v7862_v55  ;;  %4615 = vmatpush1.bf16.msra.mxu1 %v7863_v58 }
 0x873   :  { %4639 = vmatprep.subr.bf16.mxu0 %v7864_v3  ;;  %4682 = vmatprep.subr.bf16.mxu1 %v11916_v6 }
 0x875   :  { %4580 = vmatmul.mubr.bf16.vlgmr.msra.gmra.mrb[48].mxu0 %v10933_v23  ;;  %4623 = vmatmul.mubr.bf16.vlgmr.msra.gmra.mrb[64].mxu1 %v10933_v23 }
 0x876   :  { %4640 = vmatpush1.bf16.msra.mxu0 %v7865_v20  ;;  %6374 = vmatprep.mubr.msk.bf16.mxu0 %vm1863_vm9, %v4634_v5 }
 0x877   :  { %4683 = vmatpush1.bf16.msra.mxu1 %v7866_v30  ;;  %6375 = vmatprep.mubr.msk.bf16.mxu1 %vm1863_vm9, %v4634_v5 }
 0x878   :  { %4641 = vmatprep.subr.bf16.mxu0 %v7867_v29  ;;  %4684 = vmatprep.subr.bf16.mxu1 %v11916_v6 }
 0x87a   :  { %4642 = vmatpush1.bf16.msra.mxu0 %v7868_v40 }
 0x87b   :  { %4685 = vmatpush1.bf16.msra.mxu1 %v7869_v48  ;;  %4643 = vmatprep.subr.bf16.mxu0 %v7870_v63  ;;  %v12089_v63 = vld [vmem:[#allocation85_spill] sm:$0xff] }
 0x87c   :  { %4686 = vmatprep.subr.bf16.mxu1 %v11916_v6 }
 0x87e   :  { %4644 = vmatpush1.bf16.msra.mxu0 %v7871_v26 }
 0x87f   :  { %4687 = vmatpush1.bf16.msra.mxu1 %v7872_v16  ;;  %4645 = vmatprep.subr.bf16.mxu0 %v7873_v22 }
 0x880   :  { %4688 = vmatprep.subr.bf16.mxu1 %v11916_v6 }
 0x882   :  { %4646 = vmatpush1.bf16.msra.mxu0 %v7874_v25 }
 0x883   :  { %4689 = vmatpush1.bf16.msra.mxu1 %v7875_v9  ;;  %4647 = vmatprep.subr.bf16.mxu0 %v7876_v28  ;;  %v12090_v9 = vld [vmem:[#allocation86_spill] sm:$0xff] }
 0x884   :  { %4690 = vmatprep.subr.bf16.mxu1 %v11916_v6 }
 0x886   :  { %4648 = vmatpush1.bf16.msra.mxu0 %v7877_v4 }
 0x887   :  { %4691 = vmatpush1.bf16.msra.mxu1 %v7878_v33  ;;  %4649 = vmatprep.subr.bf16.mxu0 %v7879_v34 }
 0x888   :  { %4692 = vmatprep.subr.bf16.mxu1 %v11916_v6 }
 0x88a   :  { %4650 = vmatpush1.bf16.msra.mxu0 %v7880_v49 }
 0x88b   :  { %4693 = vmatpush1.bf16.msra.mxu1 %v7881_v24  ;;  %4651 = vmatprep.subr.bf16.mxu0 %v7882_v19  ;;  %v12091_v24 = vld [vmem:[#allocation87_spill] sm:$0xff] }
 0x88c   :  { %4694 = vmatprep.subr.bf16.mxu1 %v11916_v6 }
 0x88e   :  { %4652 = vmatpush1.bf16.msra.mxu0 %v7883_v51 }
 0x88f   :  { %4695 = vmatpush1.bf16.msra.mxu1 %v7884_v53  ;;  %4653 = vmatprep.subr.bf16.mxu0 %v7885_v13 }
 0x890   :  { %4696 = vmatprep.subr.bf16.mxu1 %v11916_v6 }
 0x892   :  { %4654 = vmatpush1.bf16.msra.mxu0 %v7886_v43  ;;  %v12141_v43 = vld [vmem:[#allocation134_spill] sm:$0xff] }
 0x893   :  { %4697 = vmatpush1.bf16.msra.mxu1 %v7887_v50  ;;  %4655 = vmatprep.subr.bf16.mxu0 %v7888_v54  ;;  %v7903_v50 = vld [vmem:[%s11641_s9] sm:$0x1f] }
 0x894   :  { %4698 = vmatprep.subr.bf16.mxu1 %v11916_v6  ;;  %v12093_v54 = vld [vmem:[#allocation89_spill] sm:$0xff] }
 0x896   :  { %4656 = vmatpush1.bf16.msra.mxu0 %v7889_v31  ;;  %v7904_v31 = vld [vmem:[%s11642_s10] sm:$0x1f] }
 0x897   :  { %4699 = vmatpush1.bf16.msra.mxu1 %v7890_v61  ;;  %4657 = vmatprep.subr.bf16.mxu0 %v7891_v37  ;;  %v12094_v61 = vld [vmem:[#allocation92_spill] sm:$0xff]  ;;  %v12095_v37 = vld [vmem:[#allocation90_spill] sm:$0xff] }
 0x898   :  { %4700 = vmatprep.subr.bf16.mxu1 %v11916_v6 }
 0x89a   :  { %4658 = vmatpush1.bf16.msra.mxu0 %v7892_v45  ;;  %v12096_v45 = vld [vmem:[#allocation95_spill] sm:$0xff] }
 0x89b   :  { %4701 = vmatpush1.bf16.msra.mxu1 %v7893_v0  ;;  %4659 = vmatprep.subr.bf16.mxu0 %v7894_v52  ;;  %v12097_v0 = vld [vmem:[#allocation91_spill] sm:$0xff]  ;;  %v12098_v52 = vld [vmem:[#allocation96_spill] sm:$0xff] }
 0x89c   :  { %4702 = vmatprep.subr.bf16.mxu1 %v11916_v6 }
 0x89e   :  { %4660 = vmatpush1.bf16.msra.mxu0 %v7895_v60  ;;  %v12099_v60 = vld [vmem:[#allocation93_spill] sm:$0xff] }
 0x89f   :  { %4703 = vmatpush1.bf16.msra.mxu1 %v7896_v38  ;;  %4661 = vmatprep.subr.bf16.mxu0 %v7897_v17  ;;  %v12100_v38 = vld [vmem:[#allocation99_spill] sm:$0xff]  ;;  %v12101_v17 = vld [vmem:[#allocation94_spill] sm:$0xff] }
 0x8a0   :  { %4704 = vmatprep.subr.bf16.mxu1 %v11916_v6 }
 0x8a2   :  { %4662 = vmatpush1.bf16.msra.mxu0 %v7898_v7  ;;  %v12102_v7 = vld [vmem:[#allocation100_spill] sm:$0xff] }
 0x8a3   :  { %4705 = vmatpush1.bf16.msra.mxu1 %v7899_v8  ;;  %4663 = vmatprep.subr.bf16.mxu0 %v7900_v10  ;;  %v12103_v8 = vld [vmem:[#allocation97_spill] sm:$0xff]  ;;  %v12104_v10 = vld [vmem:[#allocation103_spill] sm:$0xff] }
 0x8a4   :  { %4706 = vmatprep.subr.bf16.mxu1 %v11916_v6 }
 0x8a6   :  { %4664 = vmatpush1.bf16.msra.mxu0 %v7901_v12  ;;  %v12105_v12 = vld [vmem:[#allocation98_spill] sm:$0xff] }
 0x8a7   :  { %4707 = vmatpush1.bf16.msra.mxu1 %v7902_v59  ;;  %v12106_v59 = vld [vmem:[#allocation104_spill] sm:$0xff] }
 0x8a8   :  { %7220 = vmatprep.subr.bf16.mxu1 %v12088_v21 }
 0x8a9   :  { %4672 = vmatmul.mubr.bf16.vlgmr.msra.gmra.mrb[48].mxu0 %v4633_v18 }
 0x8aa   :  { %4715 = vmatmul.mubr.bf16.vlgmr.msra.gmra.mrb[68].mxu1 %v4633_v18  ;;  %4808 = vmatprep.mubr.f32.mxu0 %v11917_v44  ;;  %v12107_v18 = vld [vmem:[#allocation101_spill] sm:$0xff] }
 0x8ab   :  { %6492 = vmatprep.mubr.msk.f32.mxu1 %vm7933_vm13, %v11917_v44 }
 0x914   :  { %v4538_v27 = vpop.f32.mrb[60].mxu1 }
 0x915   :  { %v4540_v32 = vpop.f32.mrb[61].mxu1 }
 0x916   :  { %v4541_v41 = vpop.f32.mrb[62].mxu1  ;;  %v12110_v32 = vld [vmem:[#allocation108_spill] sm:$0xff] }
 0x917   :  { %v4543_v42 = vpop.f32.mrb[63].mxu1 }
 0x918   :  { %v12112_v42 = vld [vmem:[#allocation111_spill] sm:$0xff] }
 0x948   :  { %v4624_v46 = vpop.f32.mrb[64].mxu1 }
 0x949   :  { %v4625_v47 = vadd.f32 %v4624_v46, %v4538_v27  ;;  %v4626_v55 = vpop.f32.mrb[65].mxu1  ;;  %v12109_v27 = vld [vmem:[#allocation102_spill] sm:$0xff] }
 0x94a   :  { %v4627_v58 = vpop.f32.mrb[66].mxu1  ;;  %v12113_v46 = vld [vmem:[#allocation106_spill] sm:$0xff]  ;;  %v12115_v55 = vld [vmem:[#allocation109_spill] sm:$0xff] }
 0x94b   :  { %v4628_v3 = vadd.f32 %v4627_v58, %v4541_v41  ;;  %v4629_v5 = vpop.f32.mrb[67].mxu1  ;;  %v12111_v41 = vld [vmem:[#allocation105_spill] sm:$0xff]  ;;  %v12116_v58 = vld [vmem:[#allocation115_spill] sm:$0xff] }
 0x94c   :  { %v12118_v5 = vld [vmem:[#allocation116_spill] sm:$0xff] }
 0x97c   :  { %v4673_v23 = vpop.f32.mrb[48].mxu0 }
 0x97d   :  { %v4716_v20 = vpop.f32.mrb[68].mxu1  ;;  %v4675_v30 = vpop.f32.mrb[49].mxu0  ;;  %v4729_v26 = vadd.f32 %v4673_v23, %v12089_v63  ;;  %v12119_v23 = vld [vmem:[#allocation113_spill] sm:$0xff] }
 0x97e   :  { %v4725_v29 = vadd.f32 %v4716_v20, %v4625_v47  ;;  %v4718_v40 = vpop.f32.mrb[69].mxu1  ;;  %v4677_v48 = vpop.f32.mrb[50].mxu0  ;;  %v4730_v28 = vadd.f32 %v4675_v30, %v12090_v9  ;;  %v12114_v47 = vld [vmem:[#allocation112_spill] sm:$0xff]  ;;  %v12120_v20 = vld [vmem:[#allocation119_spill] sm:$0xff]  ;;  %v12121_v30 = vld [vmem:[#allocation114_spill] sm:$0xff] }
 0x97f   :  { %v4732_v16 = vadd.f32 %v4677_v48, %v12089_v63  ;;  %v4719_v22 = vpop.f32.mrb[70].mxu1  ;;  %v4679_v25 = vpop.f32.mrb[51].mxu0  ;;  %v12123_v40 = vld [vmem:[#allocation117_spill] sm:$0xff]  ;;  %v12124_v48 = vld [vmem:[#allocation123_spill] sm:$0xff]  ;;  %v12125_v63 = vld [vmem:[#allocation118_spill] sm:$0xff] }
 0x980   :  { %v4728_v4 = vadd.f32 %v4719_v22, %v4628_v3  ;;  %v4733_v33 = vadd.f32 %v4679_v25, %v12090_v9  ;;  %v4721_v34 = vpop.f32.mrb[71].mxu1  ;;  %v4731_v19 = vadd.f32 %v4725_v29, %v12091_v24  ;;  %v12117_v3 = vld [vmem:[#allocation110_spill] sm:$0xff]  ;;  %v12122_v29 = vld [vmem:[#allocation120_spill] sm:$0xff]  ;;  %v12128_v22 = vld [vmem:[#allocation127_spill] sm:$0xff] }
 0x981   :  { %v7217_v49 = vpack.c.bf16 %v4732_v16, %v4729_v26  ;;  %v12126_v26 = vld [vmem:[#allocation124_spill] sm:$0xff]  ;;  %v12127_v16 = vld [vmem:[#allocation121_spill] sm:$0xff]  ;;  %v12129_v25 = vld [vmem:[#allocation122_spill] sm:$0xff] }
 0x982   :  { %v4734_v51 = vadd.f32 %v4728_v4, %v12091_v24  ;;  %v7214_v53 = vpack.c.bf16 %v4733_v33, %v4730_v28  ;;  %v12130_v9 = vld [vmem:[#allocation128_spill] sm:$0xff]  ;;  %v12131_v28 = vld [vmem:[#allocation125_spill] sm:$0xff]  ;;  %v12132_v4 = vld [vmem:[#allocation131_spill] sm:$0xff] }
 0x983   :  { %v12133_v33 = vld [vmem:[#allocation126_spill] sm:$0xff]  ;;  %v12134_v34 = vld [vmem:[#allocation132_spill] sm:$0xff]  ;;  %v12136_v24 = vld [vmem:[#allocation135_spill] sm:$0xff] }
 0x984   :  { %v7221_v13 = vpack.c.bf16 %v4734_v51, %v4731_v19  ;;  %7216 = vmatprep.subr.msk.bf16.mxu0 %vm9681_vm11, %v7214_v53  ;;  %v12137_v19 = vld [vmem:[#allocation130_spill] sm:$0xff]  ;;  %v12138_v51 = vld [vmem:[#allocation136_spill] sm:$0xff] }
 0x985   :  { %7219 = vmatpush1.bf16.msk.msra.mxu0 %vm9681_vm11, %v7217_v49 }
 0x986   :  { %7223 = vmatpush3.bf16.msk.msra.mxu1 %vm9681_vm11, %v7221_v13  ;;  %7226 = vmatprep.subr.msk.bf16.mxu0 %vm9681_vm11, %v7214_v53  ;;  %v12139_v53 = vld [vmem:[#allocation133_spill] sm:$0xff] }
 0x987   :  { %7230 = vmatprep.subr.bf16.mxu1 %v12088_v21  ;;  %v12108_v21 = vld [vmem:[#allocation107_spill] sm:$0xff] }
 0x988   :  { %6378 = vmatmul.mubr.msk.f32.vlgmr.msra.gmra.mrb[52].mxu0 %vm2627_vm12, %v7903_v50 }
 0x989   :  { %6493 = vmatmul.mubr.msk.f32.vlgmr.msra.gmra.mrb[72].mxu1 %vm2627_vm12, %v7903_v50  ;;  %7229 = vmatpush1.bf16.msk.msra.mxu0 %vm9681_vm11, %v7217_v49  ;;  %v12135_v49 = vld [vmem:[#allocation129_spill] sm:$0xff]  ;;  %v12142_v50 = vld [vmem:[#allocation140_spill] sm:$0xff] }
 0x98a   :  { %7233 = vmatpush3.bf16.msk.msra.mxu1 %vm9681_vm11, %v7221_v13  ;;  %4949 = vmatprep.mubr.f32.mxu0 %v11917_v44  ;;  %v12140_v13 = vld [vmem:[#allocation139_spill] sm:$0xff] }
 0x98b   :  { %6499 = vmatprep.mubr.msk.f32.mxu1 %vm7933_vm13, %v11917_v44  ;;  %7235 = vmatprep.subr.bf16.mxu0 %v12093_v54  ;;  %v12143_v54 = vld [vmem:[#allocation137_spill] sm:$0xff] }
 0x98c   :  { %6383 = vmatmul.mubr.msk.f32.vlgmr.msra.gmra.mrb[54].mxu0 %vm2627_vm12, %v7904_v31  ;;  %7323 = vmatprep.subr.bf16.mxu1 %v12094_v61  ;;  %v12145_v61 = vld [vmem:[#allocation138_spill] sm:$0xff] }
 0x98d   :  { %6500 = vmatmul.mubr.msk.f32.vlgmr.msra.gmra.mrb[74].mxu1 %vm2627_vm12, %v7904_v31  ;;  %7237 = vmatpush1.bf16.msra.mxu0 %v12095_v37  ;;  %v12144_v31 = vld [vmem:[#allocation143_spill] sm:$0xff]  ;;  %v12146_v37 = vld [vmem:[#allocation144_spill] sm:$0xff] }
 0x98e   :  { %7325 = vmatpush1.bf16.msra.mxu1 %v12096_v45  ;;  %7239 = vmatprep.subr.bf16.mxu0 %v12097_v0  ;;  %v12147_v45 = vld [vmem:[#allocation141_spill] sm:$0xff]  ;;  %v12148_v0 = vld [vmem:[#allocation146_spill] sm:$0xff] }
 0x98f   :  { %7327 = vmatprep.subr.bf16.mxu1 %v12098_v52  ;;  %v12149_v52 = vld [vmem:[#allocation142_spill] sm:$0xff] }
 0x991   :  { %7241 = vmatpush1.bf16.msra.mxu0 %v12099_v60  ;;  %v12150_v60 = vld [vmem:[#allocation147_spill] sm:$0xff] }
 0x992   :  { %7329 = vmatpush1.bf16.msra.mxu1 %v12100_v38  ;;  %7243 = vmatprep.subr.bf16.mxu0 %v12101_v17  ;;  %v12151_v38 = vld [vmem:[#allocation145_spill] sm:$0xff]  ;;  %v12152_v17 = vld [vmem:[#allocation148_spill] sm:$0xff] }
 0x993   :  { %7331 = vmatprep.subr.bf16.mxu1 %v12102_v7  ;;  %v12153_v7 = vld [vmem:[#allocation149_spill] sm:$0xff] }
 0x995   :  { %7245 = vmatpush1.bf16.msra.mxu0 %v12103_v8  ;;  %v12154_v8 = vld [vmem:[#allocation150_spill] sm:$0xff] }
 0x996   :  { %7333 = vmatpush1.bf16.msra.mxu1 %v12104_v10  ;;  %7247 = vmatprep.subr.bf16.mxu0 %v12105_v12  ;;  %v12155_v10 = vld [vmem:[#allocation151_spill] sm:$0xff]  ;;  %v12156_v12 = vld [vmem:[#allocation152_spill] sm:$0xff] }
 0x997   :  { %7335 = vmatprep.subr.bf16.mxu1 %v12106_v59  ;;  %v12157_v59 = vld [vmem:[#allocation153_spill] sm:$0xff] }
 0x999   :  { %7249 = vmatpush1.bf16.msra.mxu0 %v12107_v18  ;;  %v12158_v18 = vld [vmem:[#allocation154_spill] sm:$0xff] }
 0x99a   :  { %7337 = vmatpush1.bf16.msra.mxu1 %v12108_v21  ;;  %7251 = vmatprep.subr.bf16.mxu0 %v12109_v27 }
 0x99b   :  { %7339 = vmatprep.subr.bf16.mxu1 %v12110_v32 }
 0x99d   :  { %7253 = vmatpush1.bf16.msra.mxu0 %v12111_v41 }
 0x99e   :  { %7341 = vmatpush1.bf16.msra.mxu1 %v12112_v42  ;;  %7255 = vmatprep.subr.bf16.mxu0 %v12113_v46 }
 0x99f   :  { %7343 = vmatprep.subr.bf16.mxu1 %v12114_v47 }
 0x9a1   :  { %7257 = vmatpush1.bf16.msra.mxu0 %v12115_v55 }
 0x9a2   :  { %7345 = vmatpush1.bf16.msra.mxu1 %v12116_v58  ;;  %7259 = vmatprep.subr.bf16.mxu0 %v12117_v3 }
 0x9a3   :  { %7347 = vmatprep.subr.bf16.mxu1 %v12118_v5 }
 0x9a5   :  { %7261 = vmatpush1.bf16.msra.mxu0 %v12119_v23  ;;  %v12159_v23 = vld [vmem:[#allocation155_spill] sm:$0xff] }
 0x9a6   :  { %7349 = vmatpush1.bf16.msra.mxu1 %v12120_v20  ;;  %7263 = vmatprep.subr.bf16.mxu0 %v12121_v30  ;;  %v12160_v20 = vld [vmem:[#allocation156_spill] sm:$0xff]  ;;  %v12161_v30 = vld [vmem:[#allocation157_spill] sm:$0xff] }
 0x9a7   :  { %7351 = vmatprep.subr.bf16.mxu1 %v12122_v29  ;;  %v12162_v29 = vld [vmem:[#allocation158_spill] sm:$0xff] }
 0x9a9   :  { %7265 = vmatpush1.bf16.msra.mxu0 %v12123_v40  ;;  %v12163_v40 = vld [vmem:[#allocation159_spill] sm:$0xff] }
 0x9aa   :  { %7353 = vmatpush1.bf16.msra.mxu1 %v12124_v48  ;;  %7267 = vmatprep.subr.bf16.mxu0 %v12125_v63  ;;  %v12164_v48 = vld [vmem:[#allocation160_spill] sm:$0xff]  ;;  %v12165_v63 = vld [vmem:[#allocation161_spill] sm:$0xff] }
 0x9ab   :  { %7355 = vmatprep.subr.bf16.mxu1 %v12126_v26  ;;  %v12166_v26 = vld [vmem:[#allocation162_spill] sm:$0xff] }
 0x9ad   :  { %7269 = vmatpush1.bf16.msra.mxu0 %v12127_v16  ;;  %v12167_v16 = vld [vmem:[#allocation163_spill] sm:$0xff] }
 0x9ae   :  { %7357 = vmatpush1.bf16.msra.mxu1 %v12128_v22  ;;  %7271 = vmatprep.subr.bf16.mxu0 %v12129_v25  ;;  %v12168_v22 = vld [vmem:[#allocation164_spill] sm:$0xff]  ;;  %v12169_v25 = vld [vmem:[#allocation165_spill] sm:$0xff] }
 0x9af   :  { %7359 = vmatprep.subr.bf16.mxu1 %v12130_v9  ;;  %v12170_v9 = vld [vmem:[#allocation166_spill] sm:$0xff] }
 0x9b1   :  { %7273 = vmatpush1.bf16.msra.mxu0 %v12131_v28  ;;  %v12171_v28 = vld [vmem:[#allocation167_spill] sm:$0xff] }
 0x9b2   :  { %7361 = vmatpush1.bf16.msra.mxu1 %v12132_v4  ;;  %7275 = vmatprep.subr.bf16.mxu0 %v12133_v33  ;;  %v7721_v4 = vld [vmem:[%s11645_s13 + $0x20] sm:$0xff]   ;;  %v7722_v33 = vld [vmem:[%s11645_s13 + $0x78] sm:$0xff]  }
 0x9b3   :  { %7363 = vmatprep.subr.bf16.mxu1 %v12134_v34  ;;  %v7723_v34 = vld [vmem:[%s11645_s13 + $0x28] sm:$0xff]  }
 0x9b5   :  { %7277 = vmatpush1.bf16.msra.mxu0 %v12135_v49  ;;  %v7724_v49 = vld [vmem:[%s11645_s13 + $0x80] sm:$0xff]  }
 0x9b6   :  { %7365 = vmatpush1.bf16.msra.mxu1 %v12136_v24  ;;  %7279 = vmatprep.subr.bf16.mxu0 %v12137_v19  ;;  %v7725_v24 = vld [vmem:[%s11645_s13 + $0x30] sm:$0xff]   ;;  %v7726_v19 = vld [vmem:[%s11645_s13 + $0x88] sm:$0xff]  }
 0x9b7   :  { %7367 = vmatprep.subr.bf16.mxu1 %v12138_v51  ;;  %v7727_v51 = vld [vmem:[%s11645_s13 + $0x38] sm:$0xff]  }
 0x9b9   :  { %7281 = vmatpush1.bf16.msra.mxu0 %v12139_v53  ;;  %v7728_v53 = vld [vmem:[%s11645_s13 + $0x90] sm:$0xff]  }
 0x9ba   :  { %7369 = vmatpush1.bf16.msra.mxu1 %v12140_v13  ;;  %7283 = vmatprep.subr.bf16.mxu0 %v12141_v43  ;;  %v7729_v13 = vld [vmem:[%s11645_s13 + $0x40] sm:$0xff]   ;;  %v7730_v43 = vld [vmem:[%s11645_s13 + $0x98] sm:$0xff]  }
 0x9bb   :  { %7371 = vmatprep.subr.bf16.mxu1 %v12142_v50  ;;  %v7731_v50 = vld [vmem:[%s11645_s13 + $0x48] sm:$0xff]  }
 0x9bd   :  { %7285 = vmatpush1.bf16.msra.mxu0 %v12143_v54  ;;  %v12172_v54 = vmax.f32 %v10617_v56, %v10619_v57 }
 0x9be   :  { %7373 = vmatpush1.bf16.msra.mxu1 %v12144_v31  ;;  %7287 = vmatprep.subr.bf16.mxu0 %v12145_v61  ;;  %v12173_v61 = vld [vmem:[#allocation168_spill] sm:$0xff] }
 0x9bf   :  { %7375 = vmatprep.subr.bf16.mxu1 %v12146_v37  ;;  %v11422_v31 = vmax.f32 %v12172_v54, 0.0  ;;  %v12174_v37 = vld [vmem:[#allocation169_spill] sm:$0xff]  ;;  %v7751_v54 = vld [vmem:[%s11645_s13 + $0x138] sm:$0xff]  }
 0x9c1   :  { %7289 = vmatpush1.bf16.msra.mxu0 %v12147_v45  ;;  %v12175_v45 = vmax.f32 %v12173_v61, %v12174_v37  ;;  %v5723_v37 = vrot.slane %v11422_v31, 3 }
 0x9c2   :  { %7377 = vmatpush1.bf16.msra.mxu1 %v12148_v0  ;;  %7291 = vmatprep.subr.bf16.mxu0 %v12149_v52 }
 0x9c3   :  { %7379 = vmatprep.subr.bf16.mxu1 %v12150_v60  ;;  %v3397_v0 = vmax.f32 %v12175_v45, 0.0  ;;  %v7752_v45 = vld [vmem:[%s11645_s13 + $0x140] sm:$0xff]  }
 0x9c5   :  { %7293 = vmatpush1.bf16.msra.mxu0 %v12151_v38 }
 0x9c6   :  { %7381 = vmatpush1.bf16.msra.mxu1 %v12152_v17  ;;  %7295 = vmatprep.subr.bf16.mxu0 %v12153_v7 }
 0x9c7   :  { %7383 = vmatprep.subr.bf16.mxu1 %v12154_v8 }
 0x9c9   :  { %7297 = vmatpush1.bf16.msra.mxu0 %v12155_v10 }
 0x9ca   :  { %7385 = vmatpush1.bf16.msra.mxu1 %v12156_v12  ;;  %7299 = vmatprep.subr.bf16.mxu0 %v12157_v59  ;;  %v5353_v12 = vrot.slane %v11422_v31, 1 }
 0x9cb   :  { %7387 = vmatprep.subr.bf16.mxu1 %v12158_v18  ;;  %v5354_v18 = vrot.slane %v3397_v0, 1 }
 0xa5b   :  { %v4810_v21 = vpop.f32.mrb[52].mxu0 }
 0xa5c   :  { %v4812_v27 = vpop.f32.mrb[53].mxu0  ;;  %v4881_v32 = vpop.f32.mrb[72].mxu1 }
 0xa5d   :  { %v6494_v41 = vpop.f32.mrb[73].mxu1 }
 0xa5f   :  { %v4951_v42 = vpop.f32.mrb[54].mxu0 }
 0xa60   :  { %v5026_v46 = vmax.f32 %v4810_v21, %v4951_v42  ;;  %v4953_v47 = vpop.f32.mrb[55].mxu0  ;;  %v5022_v55 = vpop.f32.mrb[74].mxu1 }
 0xa61   :  { %v5027_v58 = vmax.f32 %v4812_v27, %v4953_v47  ;;  %v5028_v3 = vmax.f32 %v4881_v32, %v5022_v55  ;;  %v6501_v5 = vpop.f32.mrb[75].mxu1  ;;  %v5588_v32 = vrot.slane %v3397_v0, 2  ;;  %v5724_v55 = vrot.slane %v3397_v0, 3 }
 0xa63   :  { %5096 = vmatprep.mubr.f32.mxu0 %v5027_v58  ;;  %5238 = vmatprep.mubr.f32.mxu1 %v5027_v58 }
 0xa64   :  { %5097 = vmatmul.mubr.f32.vlgmr.msra.gmra.mrb[56].mxu0 %v5026_v46  ;;  %5239 = vmatmul.mubr.f32.vlgmr.msra.gmra.mrb[76].mxu1 %v5026_v46  ;;  %v7732_v46 = vld [vmem:[%s11645_s13 + $0xa0] sm:$0xff]  }
 0xa65   :  { %7301 = vmatpush1.bf16.msra.mxu0 %v12159_v23  ;;  %7389 = vmatpush1.bf16.msra.mxu1 %v12160_v20  ;;  %v5860_v20 = vrot.slane %v3397_v0, 4 }
 0xa66   :  { %7303 = vmatprep.subr.bf16.mxu0 %v12161_v30  ;;  %7391 = vmatprep.subr.bf16.mxu1 %v12162_v29 }
 0xa67   :  { %5167 = vmatprep.mubr.f32.mxu0 %v11917_v44  ;;  %5309 = vmatprep.mubr.f32.mxu1 %v11917_v44 }
 0xa69   :  { %7305 = vmatpush1.bf16.msra.mxu0 %v12163_v40  ;;  %7393 = vmatpush1.bf16.msra.mxu1 %v12164_v48  ;;  %v7733_v40 = vld [vmem:[%s11645_s13 + $0xf0] sm:$0xff]  }
 0xa6a   :  { %7307 = vmatprep.subr.bf16.mxu0 %v12165_v63  ;;  %7395 = vmatprep.subr.bf16.mxu1 %v12166_v26 }
 0xa6d   :  { %7309 = vmatpush1.bf16.msra.mxu0 %v12167_v16  ;;  %7397 = vmatpush1.bf16.msra.mxu1 %v12168_v22  ;;  %v5859_v16 = vrot.slane %v11422_v31, 4 }
 0xa6e   :  { %7311 = vmatprep.subr.bf16.mxu0 %v12169_v25  ;;  %7399 = vmatprep.subr.bf16.mxu1 %v12170_v9  ;;  %v7734_v25 = vld [vmem:[%s11645_s13 + $0xa8] sm:$0xff]  }
 0xa71   :  { %7313 = vmatpush1.bf16.msra.mxu0 %v10440_v36  ;;  %7401 = vmatpush1.bf16.msra.mxu1 %v10442_v2  ;;  %v7712_v36 = vld [vmem:[%s11645_s13 + $0x50] sm:$0xff]   ;;  %v7713_v2 = vld [vmem:[%s11645_s13] sm:$0xff]  }
 0xa72   :  { %7315 = vmatprep.subr.bf16.mxu0 %v10455_v15  ;;  %7403 = vmatprep.subr.bf16.mxu1 %v10457_v39  ;;  %v7714_v15 = vld [vmem:[%s11645_s13 + $0x58] sm:$0xff]   ;;  %v7715_v39 = vld [vmem:[%s11645_s13 + $0x8] sm:$0xff]  }
 0xa75   :  { %7317 = vmatpush1.bf16.msra.mxu0 %v10479_v35  ;;  %7405 = vmatpush1.bf16.msra.mxu1 %v12171_v28  ;;  %v7716_v35 = vld [vmem:[%s11645_s13 + $0x60] sm:$0xff]  }
 0xa76   :  { %7319 = vmatprep.subr.bf16.mxu0 %v10496_v1  ;;  %7407 = vmatprep.subr.bf16.mxu1 %v10498_v62  ;;  %v7717_v1 = vld [vmem:[%s11645_s13 + $0x10] sm:$0xff]   ;;  %v7718_v62 = vld [vmem:[%s11645_s13 + $0x68] sm:$0xff]  }
 0xa79   :  { %7321 = vmatpush1.bf16.msra.mxu0 %v10511_v11  ;;  %7409 = vmatpush1.bf16.msra.mxu1 %v10513_v14  ;;  %v7719_v11 = vld [vmem:[%s11645_s13 + $0x18] sm:$0xff]   ;;  %v7720_v14 = vld [vmem:[%s11645_s13 + $0x70] sm:$0xff]  }
 0xa7a   :  { %5444 = vmatprep.subr.bf16.mxu0 %v11916_v6  ;;  %5547 = vmatprep.subr.bf16.mxu1 %v11916_v6 }
 0xa7c   :  { %6386 = vmatmul.mubr.msk.f32.vlgmr.msra.gmra.mrb[56].mxu0 %vm3018_vm14, %v5028_v3  ;;  %6387 = vmatmul.mubr.msk.f32.vlgmr.msra.gmra.mrb[76].mxu1 %vm3018_vm14, %v5028_v3 }
 0xa7d   :  { %5445 = vmatpush1.bf16.msra.mxu0 %v7712_v36  ;;  %5548 = vmatpush1.bf16.msra.mxu1 %v7713_v2  ;;  %v7735_v2 = vld [vmem:[%s11645_s13 + $0xf8] sm:$0xff]  }
 0xa7e   :  { %5446 = vmatprep.subr.bf16.mxu0 %v11916_v6  ;;  %5549 = vmatprep.subr.bf16.mxu1 %v11916_v6 }
 0xa81   :  { %5447 = vmatpush1.bf16.msra.mxu0 %v7714_v15  ;;  %5550 = vmatpush1.bf16.msra.mxu1 %v7715_v39  ;;  %v7736_v15 = vld [vmem:[%s11645_s13 + $0xb0] sm:$0xff]   ;;  %v7737_v39 = vld [vmem:[%s11645_s13 + $0x100] sm:$0xff]  }
 0xa82   :  { %5448 = vmatprep.subr.bf16.mxu0 %v11916_v6  ;;  %5551 = vmatprep.subr.bf16.mxu1 %v11916_v6 }
 0xa85   :  { %5449 = vmatpush1.bf16.msra.mxu0 %v7716_v35  ;;  %5552 = vmatpush1.bf16.msra.mxu1 %v7717_v1  ;;  %v7738_v35 = vld [vmem:[%s11645_s13 + $0xb8] sm:$0xff]   ;;  %v7739_v1 = vld [vmem:[%s11645_s13 + $0x108] sm:$0xff]  }
 0xa86   :  { %5450 = vmatprep.subr.bf16.mxu0 %v11916_v6  ;;  %5553 = vmatprep.subr.bf16.mxu1 %v11916_v6 }
 0xa89   :  { %5451 = vmatpush1.bf16.msra.mxu0 %v7718_v62  ;;  %5554 = vmatpush1.bf16.msra.mxu1 %v7719_v11  ;;  %v7740_v62 = vld [vmem:[%s11645_s13 + $0xc0] sm:$0xff]   ;;  %v7741_v11 = vld [vmem:[%s11645_s13 + $0x110] sm:$0xff]  }
 0xa8a   :  { %5452 = vmatprep.subr.bf16.mxu0 %v11916_v6  ;;  %5555 = vmatprep.subr.bf16.mxu1 %v11916_v6 }
 0xa8d   :  { %5453 = vmatpush1.bf16.msra.mxu0 %v7720_v14  ;;  %5556 = vmatpush1.bf16.msra.mxu1 %v7721_v4  ;;  %v7742_v14 = vld [vmem:[%s11645_s13 + $0xc8] sm:$0xff]   ;;  %v7743_v4 = vld [vmem:[%s11645_s13 + $0x118] sm:$0xff]  }
 0xa8e   :  { %5454 = vmatprep.subr.bf16.mxu0 %v11916_v6  ;;  %5557 = vmatprep.subr.bf16.mxu1 %v11916_v6 }
 0xa91   :  { %5455 = vmatpush1.bf16.msra.mxu0 %v7722_v33  ;;  %5558 = vmatpush1.bf16.msra.mxu1 %v7723_v34  ;;  %v7744_v33 = vld [vmem:[%s11645_s13 + $0xd0] sm:$0xff]   ;;  %v7745_v34 = vld [vmem:[%s11645_s13 + $0x120] sm:$0xff]  }
 0xa92   :  { %5456 = vmatprep.subr.bf16.mxu0 %v11916_v6  ;;  %5559 = vmatprep.subr.bf16.mxu1 %v11916_v6 }
 0xa95   :  { %5457 = vmatpush1.bf16.msra.mxu0 %v7724_v49  ;;  %5560 = vmatpush1.bf16.msra.mxu1 %v7725_v24  ;;  %v7746_v49 = vld [vmem:[%s11645_s13 + $0xd8] sm:$0xff]   ;;  %v7747_v24 = vld [vmem:[%s11645_s13 + $0x128] sm:$0xff]  }
 0xa96   :  { %5458 = vmatprep.subr.bf16.mxu0 %v11916_v6  ;;  %5561 = vmatprep.subr.bf16.mxu1 %v11916_v6 }
 0xa99   :  { %5459 = vmatpush1.bf16.msra.mxu0 %v7726_v19  ;;  %5562 = vmatpush1.bf16.msra.mxu1 %v7727_v51  ;;  %v7748_v19 = vld [vmem:[%s11645_s13 + $0xe0] sm:$0xff]   ;;  %v7749_v51 = vld [vmem:[%s11645_s13 + $0x130] sm:$0xff]  }
 0xa9a   :  { %5460 = vmatprep.subr.bf16.mxu0 %v11916_v6  ;;  %5563 = vmatprep.subr.bf16.mxu1 %v11916_v6 }
 0xa9d   :  { %5461 = vmatpush1.bf16.msra.mxu0 %v7728_v53  ;;  %5564 = vmatpush1.bf16.msra.mxu1 %v7729_v13  ;;  %v7750_v13 = vld [vmem:[%s11645_s13 + $0xe8] sm:$0xff]  }
 0xa9e   :  { %5462 = vmatprep.subr.bf16.mxu0 %v11916_v6  ;;  %5565 = vmatprep.subr.bf16.mxu1 %v11916_v6 }
 0xaa1   :  { %5463 = vmatpush1.bf16.msra.mxu0 %v7730_v43  ;;  %5566 = vmatpush1.bf16.msra.mxu1 %v7731_v50  ;;  %v5587_v43 = vrot.slane %v11422_v31, 2 }
 0xaa2   :  { %5682 = vmatprep.subr.bf16.mxu0 %v11916_v6  ;;  %5818 = vmatprep.subr.bf16.mxu1 %v11916_v6 }
 0xb4f   :  { %v5169_v52 = vpop.f32.mrb[56].mxu0  ;;  %v5311_v60 = vpop.f32.mrb[76].mxu1 }
 0xb50   :  { %v5316_v38 = vmax.f32 %v5169_v52, %v5311_v60  ;;  %v5171_v17 = vpop.f32.mrb[57].mxu0  ;;  %v5313_v7 = vpop.f32.mrb[77].mxu1 }
 0xb51   :  { %v5317_v8 = vmax.f32 %v5171_v17, %v5313_v7  ;;  %v7754_v17 = vld [vmem:[%s11645_s13 + $0x150] sm:$0xff]   ;;  %v7755_v7 = vld [vmem:[%s11645_s13 + $0x158] sm:$0xff]  }
 0xb52   :  { %v11427_v10 = vmax.f32 %v5316_v38, 0.0 }
 0xb53   :  { %v5319_v59 = vmax.f32 %v5317_v8, 0.0  ;;  %v7756_v8 = vld [vmem:[%s11645_s13 + $0x160] sm:$0xff]  }
 0xb54   :  { %v5357_v56 = vsel %vm5326_vm15, %v5353_v12, %v11427_v10  ;;  %v5322_v57 = vrot.slane %v11427_v10, 7  ;;  %v5863_v22 = vrot.slane %v11427_v10, 3  ;;  %v5591_v53 = vrot.slane %v11427_v10, 1  ;;  %v7758_v12 = vld [vmem:[%s11645_s13 + $0x170] sm:$0xff]  }
 0xb55   :  { %v5358_v21 = vsel %vm5326_vm15, %v5354_v18, %v5319_v59  ;;  %v5323_v27 = vrot.slane %v5319_v59, 7  ;;  %v5592_v41 = vrot.slane %v5319_v59, 1  ;;  %v5728_v58 = vrot.slane %v5319_v59, 2  ;;  %v7760_v18 = vld [vmem:[%s11645_s13 + $0x180] sm:$0xff]  }
 0xb56   :  { %v5360_v42 = vpack.c.bf16 %v5358_v21, %v5358_v21  ;;  %v5327_v47 = vsel %vm5326_vm15, %v11422_v31, %v5322_v57  ;;  %v5359_v3 = vpack.c.bf16 %v5357_v56, %v5357_v56  ;;  %v5864_v63 = vrot.slane %v5319_v59, 3  ;;  %v7753_v31 = vld [vmem:[%s11645_s13 + $0x148] sm:$0xff]   ;;  %v7759_v59 = vld [vmem:[%s11645_s13 + $0x178] sm:$0xff]   ;;  %v7762_v21 = vld [vmem:[%s11647_s15] sm:$0xff]  }
 0xb57   :  { %v5328_v5 = vsel %vm5326_vm15, %v3397_v0, %v5323_v27  ;;  %v5596_v23 = vsel %vm5326_vm15, %v5588_v32, %v5592_v41  ;;  %v5732_v48 = vsel %vm5326_vm15, %v5724_v55, %v5728_v58  ;;  %v5329_v26 = vpack.c.bf16 %v5327_v47, %v5327_v47  ;;  %v7761_v56 = vld [vmem:[%s11645_s13 + $0x188] sm:$0xff]   ;;  %v7765_v32 = vld [vmem:[%s11647_s15 + $0x18] sm:$0xff]   ;;  %v7766_v41 = vld [vmem:[%s11647_s15 + $0x20] sm:$0xff]  }
 0xb58   :  { %6398 = vmatprep.mubr.msk.bf16.mxu0 %vm1107_vm8, %v5360_v42  ;;  %v5330_v30 = vpack.c.bf16 %v5328_v5, %v5328_v5  ;;  %v5598_v29 = vpack.c.bf16 %v5596_v23, %v5596_v23  ;;  %v11453_v9 = vsel %vm5326_vm15, %v5860_v20, %v5864_v63  ;;  %v5734_v28 = vpack.c.bf16 %v5732_v48, %v5732_v48  ;;  %v7763_v27 = vld [vmem:[%s11647_s15 + $0x8] sm:$0xff]   ;;  %v7769_v47 = vld [vmem:[%s11647_s15 + $0x38] sm:$0xff]  }
 0xb59   :  { %5477 = vmatmul.mubr.bf16.vlgmr.msra.gmra.mrb[60].mxu0 %v5359_v3  ;;  %v11457_v36 = vsel %vm5326_vm15, %v5859_v16, %v5863_v22  ;;  %v5727_v50 = vrot.slane %v11427_v10, 2  ;;  %v5595_v61 = vsel %vm5326_vm15, %v5587_v43, %v5591_v53  ;;  %v5870_v60 = vpack.c.bf16 %v11453_v9, %v11453_v9  ;;  %v7757_v10 = vld [vmem:[%s11645_s13 + $0x168] sm:$0xff]  }
 0xb5a   :  { %5683 = vmatpush1.bf16.msra.mxu0 %v7732_v46  ;;  %6409 = vmatprep.mubr.msk.bf16.mxu1 %vm1107_vm8, %v5330_v30  ;;  %v5597_v52 = vpack.c.bf16 %v5595_v61, %v5595_v61  ;;  %v5869_v57 = vpack.c.bf16 %v11457_v36, %v11457_v36  ;;  %v7767_v42 = vld [vmem:[%s11647_s15 + $0x28] sm:$0xff]   ;;  %v7768_v46 = vld [vmem:[%s11647_s15 + $0x30] sm:$0xff]  }
 0xb5b   :  { %6420 = vmatprep.mubr.msk.bf16.mxu0 %vm1107_vm8, %v5598_v29  ;;  %5580 = vmatmul.mubr.bf16.vlgmr.msra.gmra.mrb[80].mxu1 %v5329_v26  ;;  %v5731_v0 = vsel %vm5326_vm15, %v5723_v37, %v5727_v50 }
 0xb5c   :  { %5819 = vmatpush1.bf16.msra.mxu1 %v7733_v40  ;;  %5684 = vmatprep.subr.bf16.mxu0 %v11916_v6  ;;  %v5733_v38 = vpack.c.bf16 %v5731_v0, %v5731_v0 }
 0xb5d   :  { %6431 = vmatprep.mubr.msk.bf16.mxu1 %vm1107_vm8, %v5734_v28  ;;  %5820 = vmatprep.subr.bf16.mxu1 %v11916_v6 }
 0xb5e   :  { %5685 = vmatpush1.bf16.msra.mxu0 %v7734_v25 }
 0xb5f   :  { %5686 = vmatprep.subr.bf16.mxu0 %v11916_v6 }
 0xb60   :  { %5821 = vmatpush1.bf16.msra.mxu1 %v7735_v2 }
 0xb61   :  { %5822 = vmatprep.subr.bf16.mxu1 %v11916_v6 }
 0xb62   :  { %5687 = vmatpush1.bf16.msra.mxu0 %v7736_v15  ;;  %v6443_v15 = vld [vmem:[%s11646_s14] ss:$0 sm:$0xff]  ;;  %s7905_s14 = scalar_lea.vmem %s6124_s3, 32 }
 0xb63   :  { %5688 = vmatprep.subr.bf16.mxu0 %v11916_v6  ;;  %p7906_p0 = scmp.ne.s32.totalorder %s6124_s3, %s7905_s14  ;;  %p7911_p2 = scmp.lt.s32.totalorder %s7905_s14, %s7905_s14 }
 0xb64   :  { %5823 = vmatpush1.bf16.msra.mxu1 %v7737_v39 }
 0xb65   :  { %5824 = vmatprep.subr.bf16.mxu1 %v11916_v6  ;;  %p7912_p3 = por %p7911_p2, %p7910_p1 }
 0xb66   :  { %5689 = vmatpush1.bf16.msra.mxu0 %v7738_v35 }
 0xb67   :  { %5690 = vmatprep.subr.bf16.mxu0 %v11916_v6  ;;  %p7913_p4 = pnand %p7912_p3, %p7906_p0 }
 0xb68   :  { %5825 = vmatpush1.bf16.msra.mxu1 %v7739_v1 }
 0xb69   :  { %5826 = vmatprep.subr.bf16.mxu1 %v11916_v6 }
 0xb6a   :  { %5691 = vmatpush1.bf16.msra.mxu0 %v7740_v62 }
 0xb6b   :  { %5692 = vmatprep.subr.bf16.mxu0 %v11916_v6 }
 0xb6c   :  { %5827 = vmatpush1.bf16.msra.mxu1 %v7741_v11 }
 0xb6d   :  { %5828 = vmatprep.subr.bf16.mxu1 %v11916_v6 }
 0xb6e   :  { %5693 = vmatpush1.bf16.msra.mxu0 %v7742_v14 }
 0xb6f   :  { %5694 = vmatprep.subr.bf16.mxu0 %v11916_v6 }
 0xb70   :  { %5829 = vmatpush1.bf16.msra.mxu1 %v7743_v4 }
 0xb71   :  { %5830 = vmatprep.subr.bf16.mxu1 %v11916_v6 }
 0xb72   :  { %5695 = vmatpush1.bf16.msra.mxu0 %v7744_v33  ;;  %v6444_v33 = vld [vmem:[%s11648_s16] ss:$0 sm:$0xff] }
 0xb73   :  { %5696 = vmatprep.subr.bf16.mxu0 %v11916_v6 }
 0xb74   :  { %5831 = vmatpush1.bf16.msra.mxu1 %v7745_v34 }
 0xb75   :  { %5832 = vmatprep.subr.bf16.mxu1 %v11916_v6 }
 0xb76   :  { %5697 = vmatpush1.bf16.msra.mxu0 %v7746_v49 }
 0xb77   :  { %5698 = vmatprep.subr.bf16.mxu0 %v11916_v6 }
 0xb78   :  { %5833 = vmatpush1.bf16.msra.mxu1 %v7747_v24 }
 0xb79   :  { %5834 = vmatprep.subr.bf16.mxu1 %v11916_v6 }
 0xb7a   :  { %5699 = vmatpush1.bf16.msra.mxu0 %v7748_v19 }
 0xb7b   :  { %5700 = vmatprep.subr.bf16.mxu0 %v11916_v6 }
 0xb7c   :  { %5835 = vmatpush1.bf16.msra.mxu1 %v7749_v51 }
 0xb7d   :  { %5836 = vmatprep.subr.bf16.mxu1 %v11916_v6 }
 0xb7e   :  { %5701 = vmatpush1.bf16.msra.mxu0 %v7750_v13 }
 0xb7f   :  { %5954 = vmatprep.subr.bf16.mxu0 %v11916_v6 }
 0xb80   :  { %5837 = vmatpush1.bf16.msra.mxu1 %v7751_v54 }
 0xb81   :  { %5715 = vmatmul.mubr.bf16.vlgmr.msra.gmra.mrb[64].mxu0 %v5597_v52  ;;  %6502 = vmatprep.subr.bf16.mxu1 %v11917_v44 }
 0xb82   :  { %5955 = vmatpush1.bf16.msra.mxu0 %v7752_v45  ;;  %6442 = vmatprep.mubr.msk.bf16.mxu0 %vm1107_vm8, %v5870_v60 }
 0xb83   :  { %5851 = vmatmul.mubr.bf16.vlgmr.msra.gmra.mrb[84].mxu1 %v5733_v38  ;;  %5956 = vmatprep.subr.bf16.mxu0 %v11916_v6 }
 0xb84   :  { %6518 = vmatprep.mubr.msk.bf16.mxu1 %vm7933_vm13, %v11917_v44  ;;  %6503 = vmatpush3.bf16.msra.mxu1 %v7762_v21 }
 0xb85   :  { %6504 = vmatprep.subr.bf16.mxu1 %v11917_v44 }
 0xb86   :  { %5957 = vmatpush1.bf16.msra.mxu0 %v7753_v31 }
 0xb87   :  { %5958 = vmatprep.subr.bf16.mxu0 %v11916_v6 }
 0xb88   :  { %6505 = vmatpush3.bf16.msra.mxu1 %v7763_v27 }
 0xb89   :  { %6506 = vmatprep.subr.bf16.mxu1 %v11917_v44 }
 0xb8a   :  { %5959 = vmatpush1.bf16.msra.mxu0 %v7754_v17 }
 0xb8b   :  { %5960 = vmatprep.subr.bf16.mxu0 %v11916_v6 }
 0xb8e   :  { %5961 = vmatpush1.bf16.msra.mxu0 %v7755_v7 }
 0xb8f   :  { %5962 = vmatprep.subr.bf16.mxu0 %v11916_v6 }
 0xb92   :  { %5963 = vmatpush1.bf16.msra.mxu0 %v7756_v8 }
 0xb93   :  { %5964 = vmatprep.subr.bf16.mxu0 %v11916_v6 }
 0xb96   :  { %5965 = vmatpush1.bf16.msra.mxu0 %v7757_v10 }
 0xb97   :  { %5966 = vmatprep.subr.bf16.mxu0 %v11916_v6 }
 0xb9a   :  { %5967 = vmatpush1.bf16.msra.mxu0 %v7758_v12 }
 0xb9b   :  { %5968 = vmatprep.subr.bf16.mxu0 %v11916_v6 }
 0xb9e   :  { %5969 = vmatpush1.bf16.msra.mxu0 %v7759_v59 }
 0xb9f   :  { %5970 = vmatprep.subr.bf16.mxu0 %v11916_v6 }
 0xba2   :  { %5971 = vmatpush1.bf16.msra.mxu0 %v7760_v18 }
 0xba3   :  { %5972 = vmatprep.subr.bf16.mxu0 %v11916_v6  ;;  %v7764_v6 = vld [vmem:[%s11647_s15 + $0x10] sm:$0xff]  }
 0xba4   :  { %6507 = vmatpush3.bf16.msra.mxu1 %v7764_v6 }
 0xba5   :  { %6508 = vmatprep.subr.bf16.mxu1 %v11917_v44 }
 0xba6   :  { %5973 = vmatpush1.bf16.msra.mxu0 %v7761_v56 }
 0xba8   :  { %6509 = vmatpush3.bf16.msra.mxu1 %v7765_v32 }
 0xba9   :  { %5987 = vmatmul.mubr.bf16.vlgmr.msra.gmra.mrb[68].mxu0 %v5869_v57  ;;  %6510 = vmatprep.subr.bf16.mxu1 %v11917_v44 }
 0xbac   :  { %6511 = vmatpush3.bf16.msra.mxu1 %v7766_v41 }
 0xbad   :  { %6512 = vmatprep.subr.bf16.mxu1 %v11917_v44 }
 0xbb0   :  { %6513 = vmatpush3.bf16.msra.mxu1 %v7767_v42 }
 0xbb1   :  { %6514 = vmatprep.subr.bf16.mxu1 %v11917_v44 }
 0xbb4   :  { %6515 = vmatpush3.bf16.msra.mxu1 %v7768_v46 }
 0xbb5   :  { %6516 = vmatprep.subr.bf16.mxu1 %v11917_v44 }
 0xbb8   :  { %6517 = vmatpush3.bf16.msra.mxu1 %v7769_v47 }
 0xc2c   :  { %v5478_v55 = vpop.f32.mrb[60].mxu0 }
 0xc2d   :  { %v5480_v58 = vpop.f32.mrb[61].mxu0 }
 0xc2e   :  { %v5481_v3 = vpop.f32.mrb[62].mxu0  ;;  %v5581_v5 = vpop.f32.mrb[80].mxu1 }
 0xc2f   :  { %v5582_v23 = vadd.f32 %v5581_v5, %v5478_v55  ;;  %v5482_v20 = vpop.f32.mrb[63].mxu0  ;;  %v5583_v30 = vpop.f32.mrb[81].mxu1 }
 0xc30   :  { %v5584_v29 = vpop.f32.mrb[82].mxu1 }
 0xc31   :  { %v5585_v40 = vpop.f32.mrb[83].mxu1 }
 0xc54   :  { %v5716_v48 = vpop.f32.mrb[64].mxu0 }
 0xc55   :  { %v5722_v63 = vadd.f32 %v5716_v48, %v5582_v23  ;;  %v5718_v26 = vpop.f32.mrb[65].mxu0 }
 0xc56   :  { %v5719_v16 = vpop.f32.mrb[66].mxu0  ;;  %v5852_v22 = vpop.f32.mrb[84].mxu1 }
 0xc57   :  { %v5858_v44 = vadd.f32 %v5852_v22, %v5722_v63  ;;  %v5720_v25 = vpop.f32.mrb[67].mxu0  ;;  %v5854_v9 = vpop.f32.mrb[85].mxu1 }
 0xc58   :  { %v5855_v28 = vpop.f32.mrb[86].mxu1 }
 0xc59   :  { %v5856_v36 = vpop.f32.mrb[87].mxu1 }
 0xc7c   :  { %v5988_v2 = vpop.f32.mrb[68].mxu0 }
 0xc7d   :  { %v5994_v39 = vadd.f32 %v5988_v2, %v5858_v44  ;;  %v5990_v35 = vpop.f32.mrb[69].mxu0 }
 0xc7e   :  { %v5991_v1 = vpop.f32.mrb[70].mxu0 }
 0xc7f   :  { %v6002_v62 = vadd.f32 %v6443_v15, %v5994_v39  ;;  %v5992_v11 = vpop.f32.mrb[71].mxu0 }
 0xc81   :  { %v6003_v14 = vmax.f32 %v6002_v62, 0.0 }
 0xc83   :  { %v6004_v4 = vpack.c.bf16 %v6003_v14, %v6003_v14 }
 0xc85   :  { %6519 = vmatmul.mubr.bf16.vlgmr.msra.gmra.mrb[88].mxu1 %v6004_v4 }
 0xd58   :  { %v6110_v34 = vpop.f32.mrb[88].mxu1 }
 0xd59   :  { %v6111_v49 = vadd.f32 %v6444_v33, %v6110_v34  ;;  %v6520_v24 = vpop.f32.mrb[89].mxu1 }
 0xd5a   :  { %v6113_v19 = vpop.f32.mrb[90].mxu1 }
 0xd5b   :  { %6116 = vst [vmem:[#allocation2] sm:$0x3] %v6111_v49  ;;  %v6521_v51 = vpop.f32.mrb[91].mxu1 }
 0xd5c   :  { %7916 = shalt.err (!%p7913_p4)
}
 0xd5d   :  { %s7917_s16 = scalar_lea.hbm %s11649_s17, 32 }
 0xd5e   :  { %p7918_p5 = scmp.ne.s32.totalorder %s11649_s17, %s7917_s16  ;;  %p7921_p6 = scmp.lt.u32.totalorder %s7917_s16, %s11649_s17 }
 0xd60   :  { %p7923_p7 = pnand %p7921_p6, %p7918_p5 }
 0xd62   :  { %7926 = shalt.err (!%p7923_p7)
}
 0xd63   :  { %6126 = dma.vmem_to_hbm [thread:$0]  %s6124_s3, 32, %s11649_s17, [#allocation3]  }
 0xd64   :  { %7927 = dma.done.wait [#allocation3], 32  }
 0xd65   :  { %7928 = vsyncadd [#allocation3], 4294967264 }
 0xd66   :  { %6130 = vsyncpa [#allocation3], 1 }

</bundles_post_ra>
